<compile_context>
chip_gen: v6e
topology: v6e:2x2x1
jax: 0.10.0
libtpu: 0.0.40
codegen_flags: <defaults>
</compile_context>

<pallas_src>
import jax
import jax.numpy as jnp
from jax.experimental import pallas as pl
from jax.experimental.pallas import tpu as pltpu

NUM_LAYERS = 5
_OUT_LANES = 128
_BN_EPS = 1e-5


# ---------------------------------------------------------------------------
# Fused Pallas kernel: full ReinforcePolicy forward (grid axis = GNN layer)
# ---------------------------------------------------------------------------

def _policy_kernel(
    # graph inputs (constant block index -> VMEM resident across layer steps)
    hv_ref, hc_ref, vpos_ref, vneg_ref, cpos_ref, cneg_ref,
    # per-layer message MLPs (pos / neg kept separate: no block-diag zero
    # FLOPs, no non-128-aligned lane slices)
    fmvp_w1, fmvp_b1, fmvp_w2, fmvp_b2,
    fmvn_w1, fmvn_b1, fmvn_w2, fmvn_b2,
    fmcp_w1, fmcp_b1, fmcp_w2, fmcp_b2,
    fmcn_w1, fmcn_b1, fmcn_w2, fmcn_b2,
    # per-layer update MLPs (w1 split into h- / m- halves == MLP on cat([h,m],1))
    fuv_w1h, fuv_w1m, fuv_b1, fuv_w2, fuv_b2,
    fuc_w1h, fuc_w1m, fuc_b1, fuc_w2, fuc_b2,
    # per-layer BatchNorm affine params (f32)
    bnv_g, bnv_b, bnc_g, bnc_b,
    # readout (last linear zero-padded to 128 output lanes)
    ro_w1, ro_b1, ro_w2, ro_b2,
    # output: (Nv, 128) f32, column 0 is the policy logit
    out_ref,
    # f32 activation carry (persists across the layer grid axis)
    hv_scr, hc_scr,
):
    l = pl.program_id(0)

    @pl.when(l == 0)
    def _():
        hv_scr[...] = hv_ref[...].astype(jnp.float32)
        hc_scr[...] = hc_ref[...].astype(jnp.float32)

    def dot(a, b):
        return jnp.dot(a, b, preferred_element_type=jnp.float32)

    def mlp2(x, w1, b1, w2, b2):
        # Linear -> ReLU -> Linear -> ReLU, bf16 matmul inputs, f32 accumulate
        h1 = jnp.maximum(dot(x, w1[...]) + b1[...], 0.0).astype(jnp.bfloat16)
        return jnp.maximum(dot(h1, w2[...]) + b2[...], 0.0).astype(jnp.bfloat16)

    def batchnorm(x, g, b):
        # BatchNorm1d(track_running_stats=False): batch mean / biased var.
        # Single-pass stats in f32, fused scale/shift application.
        inv_n = 1.0 / x.shape[0]
        mean = jnp.sum(x, axis=0, keepdims=True) * inv_n
        msq = jnp.sum(x * x, axis=0, keepdims=True) * inv_n
        var = msq - mean * mean
        scale = jax.lax.rsqrt(var + _BN_EPS) * g
        shift = b - mean * scale
        return x * scale + shift

    hv = hv_scr[...].astype(jnp.bfloat16)
    hc = hc_scr[...].astype(jnp.bfloat16)

    # --- message: four separate pos/neg MLPs; adjacency split in the wrapper,
    #     so spmm over cat([m_pos; m_neg], 0) becomes two accumulated matmuls.
    m_v_pos = mlp2(hc, fmvp_w1, fmvp_b1, fmvp_w2, fmvp_b2)   # (Nc, h)
    m_v_neg = mlp2(hc, fmvn_w1, fmvn_b1, fmvn_w2, fmvn_b2)   # (Nc, h)
    m_c_pos = mlp2(hv, fmcp_w1, fmcp_b1, fmcp_w2, fmcp_b2)   # (Nv, h)
    m_c_neg = mlp2(hv, fmcn_w1, fmcn_b1, fmcn_w2, fmcn_b2)   # (Nv, h)
    mv = (dot(vpos_ref[...], m_v_pos)
          + dot(vneg_ref[...], m_v_neg)).astype(jnp.bfloat16)      # (Nv, h)
    mc = (dot(cpos_ref[...], m_c_pos)
          + dot(cneg_ref[...], m_c_neg)).astype(jnp.bfloat16)      # (Nc, h)

    # --- update: split-weight matmul == MLP over cat([h, m], dim=1);
    #     single expression so the two dots accumulate in the MRB on v7x.
    u1v = jnp.maximum(dot(hv, fuv_w1h[...]) + dot(mv, fuv_w1m[...])
                      + fuv_b1[...], 0.0).astype(jnp.bfloat16)
    hv_new = jnp.maximum(dot(u1v, fuv_w2[...]) + fuv_b2[...], 0.0)
    u1c = jnp.maximum(dot(hc, fuc_w1h[...]) + dot(mc, fuc_w1m[...])
                      + fuc_b1[...], 0.0).astype(jnp.bfloat16)
    hc_new = jnp.maximum(dot(u1c, fuc_w2[...]) + fuc_b2[...], 0.0)

    # --- fused BatchNorm epilogue (whole-graph batch statistics, f32) --------
    hv_out = batchnorm(hv_new, bnv_g[...], bnv_b[...])
    hc_out = batchnorm(hc_new, bnc_g[...], bnc_b[...])
    hv_scr[...] = hv_out
    hc_scr[...] = hc_out

    # --- policy readout on the last layer step (lane-dense padded output) ----
    @pl.when(l == pl.num_programs(0) - 1)
    def _():
        r1 = jnp.maximum(dot(hv_out.astype(jnp.bfloat16), ro_w1[...])
                         + ro_b1[...], 0.0).astype(jnp.bfloat16)
        out_ref[...] = (dot(r1, ro_w2[...]) + ro_b2[...]).astype(out_ref.dtype)


# ---------------------------------------------------------------------------
# Parameter init (deterministic, PyTorch-style uniform fan-in init, f32)
# ---------------------------------------------------------------------------

def init_linear(key, din, dout):
    kw, kb = jax.random.split(key)
    bound = 1.0 / float(din) ** 0.5
    w = jax.random.uniform(kw, (din, dout), jnp.float32, -bound, bound)
    b = jax.random.uniform(kb, (1, dout), jnp.float32, -bound, bound)
    return w, b


def init_mlp2(key, din, dout):
    k1, k2 = jax.random.split(key)
    w1, b1 = init_linear(k1, din, dout)
    w2, b2 = init_linear(k2, dout, dout)
    return (w1, b1, w2, b2)


def init_graphconv(key, din, dout):
    ks = jax.random.split(key, 6)
    return {
        "fmv_pos": init_mlp2(ks[0], din, dout),
        "fmc_pos": init_mlp2(ks[1], din, dout),
        "fmv_neg": init_mlp2(ks[2], din, dout),
        "fmc_neg": init_mlp2(ks[3], din, dout),
        "fuv": init_mlp2(ks[4], din + dout, dout),
        "fuc": init_mlp2(ks[5], din + dout, dout),
    }


def init_readout(key, din, dout, hidden):
    k1, k2 = jax.random.split(key)
    w1, b1 = init_linear(k1, din, hidden)
    w2, b2 = init_linear(k2, hidden, dout)
    return (w1, b1, w2, b2)


def init_reinforce_policy(key, input_size, gnn_hidden, readout_hidden):
    keys = jax.random.split(key, 6)
    convs = [init_graphconv(keys[0], input_size, gnn_hidden)]
    for i in range(1, NUM_LAYERS):
        convs.append(init_graphconv(keys[i], gnn_hidden, gnn_hidden))
    bns = [((jnp.ones((1, gnn_hidden), jnp.float32),
             jnp.zeros((1, gnn_hidden), jnp.float32)),
            (jnp.ones((1, gnn_hidden), jnp.float32),
             jnp.zeros((1, gnn_hidden), jnp.float32))) for _ in range(NUM_LAYERS)]
    readout = init_readout(keys[5], gnn_hidden, 1, readout_hidden)
    return {"conv": convs, "bn": bns, "readout": readout}


# ---------------------------------------------------------------------------
# One-time weight packing: split fuv/fuc w1, pad layer-1 fan-in to `hidden`,
# stack all 5 layers, cast matmul operands to bf16, pad readout to 128 lanes.
# ---------------------------------------------------------------------------

def prep_params(params, input_size, hidden):
    assert input_size <= hidden, "layer-1 fan-in padding assumes input_size <= hidden"

    def pad_rows(w):
        return jnp.pad(w, ((0, hidden - w.shape[0]), (0, 0)))

    def as_w(x):  # matmul operands -> bf16 (biases / BN params stay f32)
        return x.astype(jnp.bfloat16)

    msg = {k: ([], [], [], []) for k in ("fmvp", "fmvn", "fmcp", "fmcn")}
    upd = {k: ([], [], [], [], []) for k in ("fuv", "fuc")}
    bn = ([], [], [], [])

    for l, p in enumerate(params["conv"]):
        din = input_size if l == 0 else hidden
        for key, src in (("fmvp", "fmv_pos"), ("fmvn", "fmv_neg"),
                         ("fmcp", "fmc_pos"), ("fmcn", "fmc_neg")):
            w1, b1, w2, b2 = p[src]
            dst = msg[key]
            dst[0].append(as_w(pad_rows(w1)))     # (h, h)
            dst[1].append(b1)                     # (1, h) f32
            dst[2].append(as_w(w2))               # (h, h)
            dst[3].append(b2)                     # (1, h) f32
        for key in ("fuv", "fuc"):
            w1, b1, w2, b2 = p[key]
            dst = upd[key]
            dst[0].append(as_w(pad_rows(w1[:din])))   # h-half, (h, h)
            dst[1].append(as_w(w1[din:]))             # m-half, (h, h)
            dst[2].append(b1)
            dst[3].append(as_w(w2))
            dst[4].append(b2)
        (gv, bv), (gc, bc) = params["bn"][l]
        bn[0].append(gv); bn[1].append(bv); bn[2].append(gc); bn[3].append(bc)

    ro_w1, ro_b1, ro_w2, ro_b2 = params["readout"]
    ro_w2p = as_w(jnp.pad(ro_w2, ((0, 0), (0, _OUT_LANES - ro_w2.shape[1]))))
    ro_b2p = jnp.pad(ro_b2, ((0, 0), (0, _OUT_LANES - ro_b2.shape[1])))

    stack = lambda xs: tuple(jnp.stack(x, axis=0) for x in xs)
    return {
        "fmvp": stack(msg["fmvp"]), "fmvn": stack(msg["fmvn"]),
        "fmcp": stack(msg["fmcp"]), "fmcn": stack(msg["fmcn"]),
        "fuv": stack(upd["fuv"]), "fuc": stack(upd["fuc"]),
        "bn": stack(bn),
        "readout": (as_w(ro_w1), ro_b1, ro_w2p, ro_b2p),
    }


# ---------------------------------------------------------------------------
# Forward pass: one fused pallas_call, grid over GNN layers
# ---------------------------------------------------------------------------

def reinforce_policy_apply(prepped, hv, hc, vadj, cadj, out_size=1):
    hidden = prepped["fuv"][3].shape[-1]
    Nv, Nc = hv.shape[0], hc.shape[0]

    # pad raw input features up to `hidden` (matches zero-padded layer-1 w1)
    hv_p = jnp.pad(hv, ((0, 0), (0, hidden - hv.shape[1]))).astype(jnp.bfloat16)
    hc_p = jnp.pad(hc, ((0, 0), (0, hidden - hc.shape[1]))).astype(jnp.bfloat16)
    # split adjacency once (pos/neg column halves), bf16 (values are 0/1)
    vpos = vadj[:, :Nc].astype(jnp.bfloat16)
    vneg = vadj[:, Nc:].astype(jnp.bfloat16)
    cpos = cadj[:, :Nv].astype(jnp.bfloat16)
    cneg = cadj[:, Nv:].astype(jnp.bfloat16)

    const_args = (hv_p, hc_p, vpos, vneg, cpos, cneg)
    layer_args = (*prepped["fmvp"], *prepped["fmvn"],
                  *prepped["fmcp"], *prepped["fmcn"],
                  *prepped["fuv"], *prepped["fuc"], *prepped["bn"])
    ro_args = prepped["readout"]
    args = (*const_args, *layer_args, *ro_args)

    def const_spec(shape):
        nd = len(shape)
        return pl.BlockSpec(tuple(shape), lambda l, _n=nd: (0,) * _n)

    def layer_spec(shape):
        # stacked (NUM_LAYERS, ...) array: select the current layer's block,
        # squeezing the layer dim — weights are DMA'd per layer (pipelined).
        nd = len(shape)
        return pl.BlockSpec((None,) + tuple(shape[1:]),
                            lambda l, _n=nd: (l,) + (0,) * (_n - 1))

    in_specs = ([const_spec(a.shape) for a in const_args]
                + [layer_spec(a.shape) for a in layer_args]
                + [const_spec(a.shape) for a in ro_args])

    out_shape = jax.ShapeDtypeStruct((Nv, _OUT_LANES), jnp.float32)
    out = pl.pallas_call(
        _policy_kernel,
        out_shape=out_shape,
        grid_spec=pltpu.PrefetchScalarGridSpec(
            num_scalar_prefetch=0,
            grid=(NUM_LAYERS,),
            in_specs=in_specs,
            out_specs=const_spec(out_shape.shape),
            scratch_shapes=[pltpu.VMEM((Nv, hidden), jnp.float32),
                            pltpu.VMEM((Nc, hidden), jnp.float32)],
        ),
        compiler_params=pltpu.CompilerParams(
            dimension_semantics=("arbitrary",),
            vmem_limit_bytes=32 * 1024 * 1024),
    )(*args)
    # readout result lives in the first `out_size` lanes of the padded output
    return out[:, :out_size]


# ---------------------------------------------------------------------------
# Demo
# ---------------------------------------------------------------------------

if __name__ == "__main__":
    input_size = 4
    gnn_hidden = 32
    readout_hidden = 32
    Nv, Nc = 8, 8

    root = jax.random.PRNGKey(0)
    kp, kv, kc, kav, kac = jax.random.split(root, 5)

    raw_params = init_reinforce_policy(kp, input_size, gnn_hidden, readout_hidden)
    prepped = prep_params(raw_params, input_size, gnn_hidden)

    hv = jax.random.normal(kv, (Nv, input_size), jnp.float32)   # data.x[0]
    hc = jax.random.normal(kc, (Nc, input_size), jnp.float32)   # data.x[1]
    # dense bipartite adjacencies (sparse in torch; spmm -> dense MXU matmul)
    vadj = jax.random.bernoulli(kav, 0.4, (Nv, 2 * Nc)).astype(jnp.float32)
    cadj = jax.random.bernoulli(kac, 0.4, (Nc, 2 * Nv)).astype(jnp.float32)

    out = jax.jit(reinforce_policy_apply)(prepped, hv, hc, vadj, cadj)
    out = jax.block_until_ready(out)

    assert out.shape == (Nv, 1) and out.dtype == jnp.float32
    assert bool(jnp.all(jnp.isfinite(out)))
    print("KERNEL_OK")
</pallas_src>

<mosaic_0001>
module attributes {stable_mosaic.version = 11 : i64} {
  func.func @_policy_kernel(%arg0: i32, %arg1: memref<8x32xbf16, #tpu.memory_space<vmem>>, %arg2: memref<8x32xbf16, #tpu.memory_space<vmem>>, %arg3: memref<8x8xbf16, #tpu.memory_space<vmem>>, %arg4: memref<8x8xbf16, #tpu.memory_space<vmem>>, %arg5: memref<8x8xbf16, #tpu.memory_space<vmem>>, %arg6: memref<8x8xbf16, #tpu.memory_space<vmem>>, %arg7: memref<1x32x32xbf16, #tpu.memory_space<vmem>>, %arg8: memref<1x1x32xf32, #tpu.memory_space<vmem>>, %arg9: memref<1x32x32xbf16, #tpu.memory_space<vmem>>, %arg10: memref<1x1x32xf32, #tpu.memory_space<vmem>>, %arg11: memref<1x32x32xbf16, #tpu.memory_space<vmem>>, %arg12: memref<1x1x32xf32, #tpu.memory_space<vmem>>, %arg13: memref<1x32x32xbf16, #tpu.memory_space<vmem>>, %arg14: memref<1x1x32xf32, #tpu.memory_space<vmem>>, %arg15: memref<1x32x32xbf16, #tpu.memory_space<vmem>>, %arg16: memref<1x1x32xf32, #tpu.memory_space<vmem>>, %arg17: memref<1x32x32xbf16, #tpu.memory_space<vmem>>, %arg18: memref<1x1x32xf32, #tpu.memory_space<vmem>>, %arg19: memref<1x32x32xbf16, #tpu.memory_space<vmem>>, %arg20: memref<1x1x32xf32, #tpu.memory_space<vmem>>, %arg21: memref<1x32x32xbf16, #tpu.memory_space<vmem>>, %arg22: memref<1x1x32xf32, #tpu.memory_space<vmem>>, %arg23: memref<1x32x32xbf16, #tpu.memory_space<vmem>>, %arg24: memref<1x32x32xbf16, #tpu.memory_space<vmem>>, %arg25: memref<1x1x32xf32, #tpu.memory_space<vmem>>, %arg26: memref<1x32x32xbf16, #tpu.memory_space<vmem>>, %arg27: memref<1x1x32xf32, #tpu.memory_space<vmem>>, %arg28: memref<1x32x32xbf16, #tpu.memory_space<vmem>>, %arg29: memref<1x32x32xbf16, #tpu.memory_space<vmem>>, %arg30: memref<1x1x32xf32, #tpu.memory_space<vmem>>, %arg31: memref<1x32x32xbf16, #tpu.memory_space<vmem>>, %arg32: memref<1x1x32xf32, #tpu.memory_space<vmem>>, %arg33: memref<1x1x32xf32, #tpu.memory_space<vmem>>, %arg34: memref<1x1x32xf32, #tpu.memory_space<vmem>>, %arg35: memref<1x1x32xf32, #tpu.memory_space<vmem>>, %arg36: memref<1x1x32xf32, #tpu.memory_space<vmem>>, %arg37: memref<32x32xbf16, #tpu.memory_space<vmem>>, %arg38: memref<1x32xf32, #tpu.memory_space<vmem>>, %arg39: memref<32x128xbf16, #tpu.memory_space<vmem>>, %arg40: memref<1x128xf32, #tpu.memory_space<vmem>>, %arg41: memref<8x128xf32, #tpu.memory_space<vmem>>, %arg42: memref<8x32xf32, #tpu.memory_space<vmem>>, %arg43: memref<8x32xf32, #tpu.memory_space<vmem>>) attributes {dimension_semantics = [#tpu.dimension_semantics<arbitrary>], iteration_bounds = array<i64: 5>, scalar_prefetch = 0 : i64, scratch_operands = 2 : i64, tpu.core_type = #tpu.core_type<tc>, window_params = [{pipeline_mode = #tpu.pipeline_mode<synchronous>, transform_indices = @transform_0, window_bounds = array<i64: 8, 32>}, {pipeline_mode = #tpu.pipeline_mode<synchronous>, transform_indices = @transform_1, window_bounds = array<i64: 8, 32>}, {pipeline_mode = #tpu.pipeline_mode<synchronous>, transform_indices = @transform_2, window_bounds = array<i64: 8, 8>}, {pipeline_mode = #tpu.pipeline_mode<synchronous>, transform_indices = @transform_3, window_bounds = array<i64: 8, 8>}, {pipeline_mode = #tpu.pipeline_mode<synchronous>, transform_indices = @transform_4, window_bounds = array<i64: 8, 8>}, {pipeline_mode = #tpu.pipeline_mode<synchronous>, transform_indices = @transform_5, window_bounds = array<i64: 8, 8>}, {transform_indices = @transform_6, window_bounds = array<i64: 1, 32, 32>}, {transform_indices = @transform_7, window_bounds = array<i64: 1, 1, 32>}, {transform_indices = @transform_8, window_bounds = array<i64: 1, 32, 32>}, {transform_indices = @transform_9, window_bounds = array<i64: 1, 1, 32>}, {transform_indices = @transform_10, window_bounds = array<i64: 1, 32, 32>}, {transform_indices = @transform_11, window_bounds = array<i64: 1, 1, 32>}, {transform_indices = @transform_12, window_bounds = array<i64: 1, 32, 32>}, {transform_indices = @transform_13, window_bounds = array<i64: 1, 1, 32>}, {transform_indices = @transform_14, window_bounds = array<i64: 1, 32, 32>}, {transform_indices = @transform_15, window_bounds = array<i64: 1, 1, 32>}, {transform_indices = @transform_16, window_bounds = array<i64: 1, 32, 32>}, {transform_indices = @transform_17, window_bounds = array<i64: 1, 1, 32>}, {transform_indices = @transform_18, window_bounds = array<i64: 1, 32, 32>}, {transform_indices = @transform_19, window_bounds = array<i64: 1, 1, 32>}, {transform_indices = @transform_20, window_bounds = array<i64: 1, 32, 32>}, {transform_indices = @transform_21, window_bounds = array<i64: 1, 1, 32>}, {transform_indices = @transform_22, window_bounds = array<i64: 1, 32, 32>}, {transform_indices = @transform_23, window_bounds = array<i64: 1, 32, 32>}, {transform_indices = @transform_24, window_bounds = array<i64: 1, 1, 32>}, {transform_indices = @transform_25, window_bounds = array<i64: 1, 32, 32>}, {transform_indices = @transform_26, window_bounds = array<i64: 1, 1, 32>}, {transform_indices = @transform_27, window_bounds = array<i64: 1, 32, 32>}, {transform_indices = @transform_28, window_bounds = array<i64: 1, 32, 32>}, {transform_indices = @transform_29, window_bounds = array<i64: 1, 1, 32>}, {transform_indices = @transform_30, window_bounds = array<i64: 1, 32, 32>}, {transform_indices = @transform_31, window_bounds = array<i64: 1, 1, 32>}, {transform_indices = @transform_32, window_bounds = array<i64: 1, 1, 32>}, {transform_indices = @transform_33, window_bounds = array<i64: 1, 1, 32>}, {transform_indices = @transform_34, window_bounds = array<i64: 1, 1, 32>}, {transform_indices = @transform_35, window_bounds = array<i64: 1, 1, 32>}, {pipeline_mode = #tpu.pipeline_mode<synchronous>, transform_indices = @transform_36, window_bounds = array<i64: 32, 32>}, {pipeline_mode = #tpu.pipeline_mode<synchronous>, transform_indices = @transform_37, window_bounds = array<i64: 1, 32>}, {pipeline_mode = #tpu.pipeline_mode<synchronous>, transform_indices = @transform_38, window_bounds = array<i64: 32, 128>}, {pipeline_mode = #tpu.pipeline_mode<synchronous>, transform_indices = @transform_39, window_bounds = array<i64: 1, 128>}, {pipeline_mode = #tpu.pipeline_mode<synchronous>, transform_indices = @transform_40, window_bounds = array<i64: 8, 128>}]} {
    %c0_i32 = arith.constant 0 : i32
    %0 = arith.cmpi eq, %arg0, %c0_i32 : i32
    %1 = arith.extui %0 : i1 to i32
    %c0_i32_0 = arith.constant 0 : i32
    %2 = arith.cmpi ne, %1, %c0_i32_0 : i32
    scf.if %2 {
      %c0_146 = arith.constant 0 : index
      %c0_147 = arith.constant 0 : index
      %200 = vector.load %arg1[%c0_146, %c0_147] : memref<8x32xbf16, #tpu.memory_space<vmem>>, vector<8x32xbf16>
      %201 = arith.extf %200 : vector<8x32xbf16> to vector<8x32xf32>
      %c0_148 = arith.constant 0 : index
      %c0_149 = arith.constant 0 : index
      %202 = vector.load %arg42[%c0_148, %c0_149] : memref<8x32xf32, #tpu.memory_space<vmem>>, vector<8x32xf32>
      tpu.vector_store %arg42[%c0_148, %c0_149], %201 {strides = array<i32>} : memref<8x32xf32, #tpu.memory_space<vmem>>, vector<8x32xf32>,
      %c0_150 = arith.constant 0 : index
      %c0_151 = arith.constant 0 : index
      %203 = vector.load %arg2[%c0_150, %c0_151] : memref<8x32xbf16, #tpu.memory_space<vmem>>, vector<8x32xbf16>
      %204 = arith.extf %203 : vector<8x32xbf16> to vector<8x32xf32>
      %c0_152 = arith.constant 0 : index
      %c0_153 = arith.constant 0 : index
      %205 = vector.load %arg43[%c0_152, %c0_153] : memref<8x32xf32, #tpu.memory_space<vmem>>, vector<8x32xf32>
      tpu.vector_store %arg43[%c0_152, %c0_153], %204 {strides = array<i32>} : memref<8x32xf32, #tpu.memory_space<vmem>>, vector<8x32xf32>,
    } else {
    }
    %c0 = arith.constant 0 : index
    %c0_1 = arith.constant 0 : index
    %3 = vector.load %arg42[%c0, %c0_1] : memref<8x32xf32, #tpu.memory_space<vmem>>, vector<8x32xf32>
    %4 = arith.truncf %3 : vector<8x32xf32> to vector<8x32xbf16>
    %c0_2 = arith.constant 0 : index
    %c0_3 = arith.constant 0 : index
    %5 = vector.load %arg43[%c0_2, %c0_3] : memref<8x32xf32, #tpu.memory_space<vmem>>, vector<8x32xf32>
    %6 = arith.truncf %5 : vector<8x32xf32> to vector<8x32xbf16>
    %c0_4 = arith.constant 0 : index
    %c0_5 = arith.constant 0 : index
    %c0_6 = arith.constant 0 : index
    %7 = vector.load %arg7[%c0_4, %c0_5, %c0_6] : memref<1x32x32xbf16, #tpu.memory_space<vmem>>, vector<1x32x32xbf16>
    %8 = vector.shape_cast %7 : vector<1x32x32xbf16> to vector<32x32xbf16>
    %cst = arith.constant dense<0.000000e+00> : vector<8x32xf32>
    %9 = tpu.matmul %6, %8, %cst {dimension_numbers = #tpu.dot_dimension_numbers<[1], [0], [0], [1], [0, 0, 1, 1], [], []>} : vector<8x32xbf16>, vector<32x32xbf16>, vector<8x32xf32> -> vector<8x32xf32>
    %c0_7 = arith.constant 0 : index
    %c0_8 = arith.constant 0 : index
    %c0_9 = arith.constant 0 : index
    %10 = vector.load %arg8[%c0_7, %c0_8, %c0_9] : memref<1x1x32xf32, #tpu.memory_space<vmem>>, vector<1x1x32xf32>
    %11 = vector.shape_cast %10 : vector<1x1x32xf32> to vector<1x32xf32>
    %12 = vector.broadcast %11 : vector<1x32xf32> to vector<8x32xf32>
    %13 = arith.addf %9, %12 : vector<8x32xf32>
    %cst_10 = arith.constant 0.000000e+00 : f32
    %14 = vector.broadcast %cst_10 : f32 to vector<8x32xf32>
    %15 = arith.maximumf %13, %14 : vector<8x32xf32>
    %16 = arith.truncf %15 : vector<8x32xf32> to vector<8x32xbf16>
    %c0_11 = arith.constant 0 : index
    %c0_12 = arith.constant 0 : index
    %c0_13 = arith.constant 0 : index
    %17 = vector.load %arg9[%c0_11, %c0_12, %c0_13] : memref<1x32x32xbf16, #tpu.memory_space<vmem>>, vector<1x32x32xbf16>
    %18 = vector.shape_cast %17 : vector<1x32x32xbf16> to vector<32x32xbf16>
    %cst_14 = arith.constant dense<0.000000e+00> : vector<8x32xf32>
    %19 = tpu.matmul %16, %18, %cst_14 {dimension_numbers = #tpu.dot_dimension_numbers<[1], [0], [0], [1], [0, 0, 1, 1], [], []>} : vector<8x32xbf16>, vector<32x32xbf16>, vector<8x32xf32> -> vector<8x32xf32>
    %c0_15 = arith.constant 0 : index
    %c0_16 = arith.constant 0 : index
    %c0_17 = arith.constant 0 : index
    %20 = vector.load %arg10[%c0_15, %c0_16, %c0_17] : memref<1x1x32xf32, #tpu.memory_space<vmem>>, vector<1x1x32xf32>
    %21 = vector.shape_cast %20 : vector<1x1x32xf32> to vector<1x32xf32>
    %22 = vector.broadcast %21 : vector<1x32xf32> to vector<8x32xf32>
    %23 = arith.addf %19, %22 : vector<8x32xf32>
    %cst_18 = arith.constant 0.000000e+00 : f32
    %24 = vector.broadcast %cst_18 : f32 to vector<8x32xf32>
    %25 = arith.maximumf %23, %24 : vector<8x32xf32>
    %26 = arith.truncf %25 : vector<8x32xf32> to vector<8x32xbf16>
    %c0_19 = arith.constant 0 : index
    %c0_20 = arith.constant 0 : index
    %c0_21 = arith.constant 0 : index
    %27 = vector.load %arg11[%c0_19, %c0_20, %c0_21] : memref<1x32x32xbf16, #tpu.memory_space<vmem>>, vector<1x32x32xbf16>
    %28 = vector.shape_cast %27 : vector<1x32x32xbf16> to vector<32x32xbf16>
    %cst_22 = arith.constant dense<0.000000e+00> : vector<8x32xf32>
    %29 = tpu.matmul %6, %28, %cst_22 {dimension_numbers = #tpu.dot_dimension_numbers<[1], [0], [0], [1], [0, 0, 1, 1], [], []>} : vector<8x32xbf16>, vector<32x32xbf16>, vector<8x32xf32> -> vector<8x32xf32>
    %c0_23 = arith.constant 0 : index
    %c0_24 = arith.constant 0 : index
    %c0_25 = arith.constant 0 : index
    %30 = vector.load %arg12[%c0_23, %c0_24, %c0_25] : memref<1x1x32xf32, #tpu.memory_space<vmem>>, vector<1x1x32xf32>
    %31 = vector.shape_cast %30 : vector<1x1x32xf32> to vector<1x32xf32>
    %32 = vector.broadcast %31 : vector<1x32xf32> to vector<8x32xf32>
    %33 = arith.addf %29, %32 : vector<8x32xf32>
    %cst_26 = arith.constant 0.000000e+00 : f32
    %34 = vector.broadcast %cst_26 : f32 to vector<8x32xf32>
    %35 = arith.maximumf %33, %34 : vector<8x32xf32>
    %36 = arith.truncf %35 : vector<8x32xf32> to vector<8x32xbf16>
    %c0_27 = arith.constant 0 : index
    %c0_28 = arith.constant 0 : index
    %c0_29 = arith.constant 0 : index
    %37 = vector.load %arg13[%c0_27, %c0_28, %c0_29] : memref<1x32x32xbf16, #tpu.memory_space<vmem>>, vector<1x32x32xbf16>
    %38 = vector.shape_cast %37 : vector<1x32x32xbf16> to vector<32x32xbf16>
    %cst_30 = arith.constant dense<0.000000e+00> : vector<8x32xf32>
    %39 = tpu.matmul %36, %38, %cst_30 {dimension_numbers = #tpu.dot_dimension_numbers<[1], [0], [0], [1], [0, 0, 1, 1], [], []>} : vector<8x32xbf16>, vector<32x32xbf16>, vector<8x32xf32> -> vector<8x32xf32>
    %c0_31 = arith.constant 0 : index
    %c0_32 = arith.constant 0 : index
    %c0_33 = arith.constant 0 : index
    %40 = vector.load %arg14[%c0_31, %c0_32, %c0_33] : memref<1x1x32xf32, #tpu.memory_space<vmem>>, vector<1x1x32xf32>
    %41 = vector.shape_cast %40 : vector<1x1x32xf32> to vector<1x32xf32>
    %42 = vector.broadcast %41 : vector<1x32xf32> to vector<8x32xf32>
    %43 = arith.addf %39, %42 : vector<8x32xf32>
    %cst_34 = arith.constant 0.000000e+00 : f32
    %44 = vector.broadcast %cst_34 : f32 to vector<8x32xf32>
    %45 = arith.maximumf %43, %44 : vector<8x32xf32>
    %46 = arith.truncf %45 : vector<8x32xf32> to vector<8x32xbf16>
    %c0_35 = arith.constant 0 : index
    %c0_36 = arith.constant 0 : index
    %c0_37 = arith.constant 0 : index
    %47 = vector.load %arg15[%c0_35, %c0_36, %c0_37] : memref<1x32x32xbf16, #tpu.memory_space<vmem>>, vector<1x32x32xbf16>
    %48 = vector.shape_cast %47 : vector<1x32x32xbf16> to vector<32x32xbf16>
    %cst_38 = arith.constant dense<0.000000e+00> : vector<8x32xf32>
    %49 = tpu.matmul %4, %48, %cst_38 {dimension_numbers = #tpu.dot_dimension_numbers<[1], [0], [0], [1], [0, 0, 1, 1], [], []>} : vector<8x32xbf16>, vector<32x32xbf16>, vector<8x32xf32> -> vector<8x32xf32>
    %c0_39 = arith.constant 0 : index
    %c0_40 = arith.constant 0 : index
    %c0_41 = arith.constant 0 : index
    %50 = vector.load %arg16[%c0_39, %c0_40, %c0_41] : memref<1x1x32xf32, #tpu.memory_space<vmem>>, vector<1x1x32xf32>
    %51 = vector.shape_cast %50 : vector<1x1x32xf32> to vector<1x32xf32>
    %52 = vector.broadcast %51 : vector<1x32xf32> to vector<8x32xf32>
    %53 = arith.addf %49, %52 : vector<8x32xf32>
    %cst_42 = arith.constant 0.000000e+00 : f32
    %54 = vector.broadcast %cst_42 : f32 to vector<8x32xf32>
    %55 = arith.maximumf %53, %54 : vector<8x32xf32>
    %56 = arith.truncf %55 : vector<8x32xf32> to vector<8x32xbf16>
    %c0_43 = arith.constant 0 : index
    %c0_44 = arith.constant 0 : index
    %c0_45 = arith.constant 0 : index
    %57 = vector.load %arg17[%c0_43, %c0_44, %c0_45] : memref<1x32x32xbf16, #tpu.memory_space<vmem>>, vector<1x32x32xbf16>
    %58 = vector.shape_cast %57 : vector<1x32x32xbf16> to vector<32x32xbf16>
    %cst_46 = arith.constant dense<0.000000e+00> : vector<8x32xf32>
    %59 = tpu.matmul %56, %58, %cst_46 {dimension_numbers = #tpu.dot_dimension_numbers<[1], [0], [0], [1], [0, 0, 1, 1], [], []>} : vector<8x32xbf16>, vector<32x32xbf16>, vector<8x32xf32> -> vector<8x32xf32>
    %c0_47 = arith.constant 0 : index
    %c0_48 = arith.constant 0 : index
    %c0_49 = arith.constant 0 : index
    %60 = vector.load %arg18[%c0_47, %c0_48, %c0_49] : memref<1x1x32xf32, #tpu.memory_space<vmem>>, vector<1x1x32xf32>
    %61 = vector.shape_cast %60 : vector<1x1x32xf32> to vector<1x32xf32>
    %62 = vector.broadcast %61 : vector<1x32xf32> to vector<8x32xf32>
    %63 = arith.addf %59, %62 : vector<8x32xf32>
    %cst_50 = arith.constant 0.000000e+00 : f32
    %64 = vector.broadcast %cst_50 : f32 to vector<8x32xf32>
    %65 = arith.maximumf %63, %64 : vector<8x32xf32>
    %66 = arith.truncf %65 : vector<8x32xf32> to vector<8x32xbf16>
    %c0_51 = arith.constant 0 : index
    %c0_52 = arith.constant 0 : index
    %c0_53 = arith.constant 0 : index
    %67 = vector.load %arg19[%c0_51, %c0_52, %c0_53] : memref<1x32x32xbf16, #tpu.memory_space<vmem>>, vector<1x32x32xbf16>
    %68 = vector.shape_cast %67 : vector<1x32x32xbf16> to vector<32x32xbf16>
    %cst_54 = arith.constant dense<0.000000e+00> : vector<8x32xf32>
    %69 = tpu.matmul %4, %68, %cst_54 {dimension_numbers = #tpu.dot_dimension_numbers<[1], [0], [0], [1], [0, 0, 1, 1], [], []>} : vector<8x32xbf16>, vector<32x32xbf16>, vector<8x32xf32> -> vector<8x32xf32>
    %c0_55 = arith.constant 0 : index
    %c0_56 = arith.constant 0 : index
    %c0_57 = arith.constant 0 : index
    %70 = vector.load %arg20[%c0_55, %c0_56, %c0_57] : memref<1x1x32xf32, #tpu.memory_space<vmem>>, vector<1x1x32xf32>
    %71 = vector.shape_cast %70 : vector<1x1x32xf32> to vector<1x32xf32>
    %72 = vector.broadcast %71 : vector<1x32xf32> to vector<8x32xf32>
    %73 = arith.addf %69, %72 : vector<8x32xf32>
    %cst_58 = arith.constant 0.000000e+00 : f32
    %74 = vector.broadcast %cst_58 : f32 to vector<8x32xf32>
    %75 = arith.maximumf %73, %74 : vector<8x32xf32>
    %76 = arith.truncf %75 : vector<8x32xf32> to vector<8x32xbf16>
    %c0_59 = arith.constant 0 : index
    %c0_60 = arith.constant 0 : index
    %c0_61 = arith.constant 0 : index
    %77 = vector.load %arg21[%c0_59, %c0_60, %c0_61] : memref<1x32x32xbf16, #tpu.memory_space<vmem>>, vector<1x32x32xbf16>
    %78 = vector.shape_cast %77 : vector<1x32x32xbf16> to vector<32x32xbf16>
    %cst_62 = arith.constant dense<0.000000e+00> : vector<8x32xf32>
    %79 = tpu.matmul %76, %78, %cst_62 {dimension_numbers = #tpu.dot_dimension_numbers<[1], [0], [0], [1], [0, 0, 1, 1], [], []>} : vector<8x32xbf16>, vector<32x32xbf16>, vector<8x32xf32> -> vector<8x32xf32>
    %c0_63 = arith.constant 0 : index
    %c0_64 = arith.constant 0 : index
    %c0_65 = arith.constant 0 : index
    %80 = vector.load %arg22[%c0_63, %c0_64, %c0_65] : memref<1x1x32xf32, #tpu.memory_space<vmem>>, vector<1x1x32xf32>
    %81 = vector.shape_cast %80 : vector<1x1x32xf32> to vector<1x32xf32>
    %82 = vector.broadcast %81 : vector<1x32xf32> to vector<8x32xf32>
    %83 = arith.addf %79, %82 : vector<8x32xf32>
    %cst_66 = arith.constant 0.000000e+00 : f32
    %84 = vector.broadcast %cst_66 : f32 to vector<8x32xf32>
    %85 = arith.maximumf %83, %84 : vector<8x32xf32>
    %86 = arith.truncf %85 : vector<8x32xf32> to vector<8x32xbf16>
    %c0_67 = arith.constant 0 : index
    %c0_68 = arith.constant 0 : index
    %87 = vector.load %arg3[%c0_67, %c0_68] : memref<8x8xbf16, #tpu.memory_space<vmem>>, vector<8x8xbf16>
    %cst_69 = arith.constant dense<0.000000e+00> : vector<8x32xf32>
    %88 = tpu.matmul %87, %26, %cst_69 {dimension_numbers = #tpu.dot_dimension_numbers<[1], [0], [0], [1], [0, 0, 1, 1], [], []>} : vector<8x8xbf16>, vector<8x32xbf16>, vector<8x32xf32> -> vector<8x32xf32>
    %c0_70 = arith.constant 0 : index
    %c0_71 = arith.constant 0 : index
    %89 = vector.load %arg4[%c0_70, %c0_71] : memref<8x8xbf16, #tpu.memory_space<vmem>>, vector<8x8xbf16>
    %cst_72 = arith.constant dense<0.000000e+00> : vector<8x32xf32>
    %90 = tpu.matmul %89, %46, %cst_72 {dimension_numbers = #tpu.dot_dimension_numbers<[1], [0], [0], [1], [0, 0, 1, 1], [], []>} : vector<8x8xbf16>, vector<8x32xbf16>, vector<8x32xf32> -> vector<8x32xf32>
    %91 = arith.addf %88, %90 : vector<8x32xf32>
    %92 = arith.truncf %91 : vector<8x32xf32> to vector<8x32xbf16>
    %c0_73 = arith.constant 0 : index
    %c0_74 = arith.constant 0 : index
    %93 = vector.load %arg5[%c0_73, %c0_74] : memref<8x8xbf16, #tpu.memory_space<vmem>>, vector<8x8xbf16>
    %cst_75 = arith.constant dense<0.000000e+00> : vector<8x32xf32>
    %94 = tpu.matmul %93, %66, %cst_75 {dimension_numbers = #tpu.dot_dimension_numbers<[1], [0], [0], [1], [0, 0, 1, 1], [], []>} : vector<8x8xbf16>, vector<8x32xbf16>, vector<8x32xf32> -> vector<8x32xf32>
    %c0_76 = arith.constant 0 : index
    %c0_77 = arith.constant 0 : index
    %95 = vector.load %arg6[%c0_76, %c0_77] : memref<8x8xbf16, #tpu.memory_space<vmem>>, vector<8x8xbf16>
    %cst_78 = arith.constant dense<0.000000e+00> : vector<8x32xf32>
    %96 = tpu.matmul %95, %86, %cst_78 {dimension_numbers = #tpu.dot_dimension_numbers<[1], [0], [0], [1], [0, 0, 1, 1], [], []>} : vector<8x8xbf16>, vector<8x32xbf16>, vector<8x32xf32> -> vector<8x32xf32>
    %97 = arith.addf %94, %96 : vector<8x32xf32>
    %98 = arith.truncf %97 : vector<8x32xf32> to vector<8x32xbf16>
    %c0_79 = arith.constant 0 : index
    %c0_80 = arith.constant 0 : index
    %c0_81 = arith.constant 0 : index
    %99 = vector.load %arg23[%c0_79, %c0_80, %c0_81] : memref<1x32x32xbf16, #tpu.memory_space<vmem>>, vector<1x32x32xbf16>
    %100 = vector.shape_cast %99 : vector<1x32x32xbf16> to vector<32x32xbf16>
    %cst_82 = arith.constant dense<0.000000e+00> : vector<8x32xf32>
    %101 = tpu.matmul %4, %100, %cst_82 {dimension_numbers = #tpu.dot_dimension_numbers<[1], [0], [0], [1], [0, 0, 1, 1], [], []>} : vector<8x32xbf16>, vector<32x32xbf16>, vector<8x32xf32> -> vector<8x32xf32>
    %c0_83 = arith.constant 0 : index
    %c0_84 = arith.constant 0 : index
    %c0_85 = arith.constant 0 : index
    %102 = vector.load %arg24[%c0_83, %c0_84, %c0_85] : memref<1x32x32xbf16, #tpu.memory_space<vmem>>, vector<1x32x32xbf16>
    %103 = vector.shape_cast %102 : vector<1x32x32xbf16> to vector<32x32xbf16>
    %cst_86 = arith.constant dense<0.000000e+00> : vector<8x32xf32>
    %104 = tpu.matmul %92, %103, %cst_86 {dimension_numbers = #tpu.dot_dimension_numbers<[1], [0], [0], [1], [0, 0, 1, 1], [], []>} : vector<8x32xbf16>, vector<32x32xbf16>, vector<8x32xf32> -> vector<8x32xf32>
    %105 = arith.addf %101, %104 : vector<8x32xf32>
    %c0_87 = arith.constant 0 : index
    %c0_88 = arith.constant 0 : index
    %c0_89 = arith.constant 0 : index
    %106 = vector.load %arg25[%c0_87, %c0_88, %c0_89] : memref<1x1x32xf32, #tpu.memory_space<vmem>>, vector<1x1x32xf32>
    %107 = vector.shape_cast %106 : vector<1x1x32xf32> to vector<1x32xf32>
    %108 = vector.broadcast %107 : vector<1x32xf32> to vector<8x32xf32>
    %109 = arith.addf %105, %108 : vector<8x32xf32>
    %cst_90 = arith.constant 0.000000e+00 : f32
    %110 = vector.broadcast %cst_90 : f32 to vector<8x32xf32>
    %111 = arith.maximumf %109, %110 : vector<8x32xf32>
    %112 = arith.truncf %111 : vector<8x32xf32> to vector<8x32xbf16>
    %c0_91 = arith.constant 0 : index
    %c0_92 = arith.constant 0 : index
    %c0_93 = arith.constant 0 : index
    %113 = vector.load %arg26[%c0_91, %c0_92, %c0_93] : memref<1x32x32xbf16, #tpu.memory_space<vmem>>, vector<1x32x32xbf16>
    %114 = vector.shape_cast %113 : vector<1x32x32xbf16> to vector<32x32xbf16>
    %cst_94 = arith.constant dense<0.000000e+00> : vector<8x32xf32>
    %115 = tpu.matmul %112, %114, %cst_94 {dimension_numbers = #tpu.dot_dimension_numbers<[1], [0], [0], [1], [0, 0, 1, 1], [], []>} : vector<8x32xbf16>, vector<32x32xbf16>, vector<8x32xf32> -> vector<8x32xf32>
    %c0_95 = arith.constant 0 : index
    %c0_96 = arith.constant 0 : index
    %c0_97 = arith.constant 0 : index
    %116 = vector.load %arg27[%c0_95, %c0_96, %c0_97] : memref<1x1x32xf32, #tpu.memory_space<vmem>>, vector<1x1x32xf32>
    %117 = vector.shape_cast %116 : vector<1x1x32xf32> to vector<1x32xf32>
    %118 = vector.broadcast %117 : vector<1x32xf32> to vector<8x32xf32>
    %119 = arith.addf %115, %118 : vector<8x32xf32>
    %cst_98 = arith.constant 0.000000e+00 : f32
    %120 = vector.broadcast %cst_98 : f32 to vector<8x32xf32>
    %121 = arith.maximumf %119, %120 : vector<8x32xf32>
    %c0_99 = arith.constant 0 : index
    %c0_100 = arith.constant 0 : index
    %c0_101 = arith.constant 0 : index
    %122 = vector.load %arg28[%c0_99, %c0_100, %c0_101] : memref<1x32x32xbf16, #tpu.memory_space<vmem>>, vector<1x32x32xbf16>
    %123 = vector.shape_cast %122 : vector<1x32x32xbf16> to vector<32x32xbf16>
    %cst_102 = arith.constant dense<0.000000e+00> : vector<8x32xf32>
    %124 = tpu.matmul %6, %123, %cst_102 {dimension_numbers = #tpu.dot_dimension_numbers<[1], [0], [0], [1], [0, 0, 1, 1], [], []>} : vector<8x32xbf16>, vector<32x32xbf16>, vector<8x32xf32> -> vector<8x32xf32>
    %c0_103 = arith.constant 0 : index
    %c0_104 = arith.constant 0 : index
    %c0_105 = arith.constant 0 : index
    %125 = vector.load %arg29[%c0_103, %c0_104, %c0_105] : memref<1x32x32xbf16, #tpu.memory_space<vmem>>, vector<1x32x32xbf16>
    %126 = vector.shape_cast %125 : vector<1x32x32xbf16> to vector<32x32xbf16>
    %cst_106 = arith.constant dense<0.000000e+00> : vector<8x32xf32>
    %127 = tpu.matmul %98, %126, %cst_106 {dimension_numbers = #tpu.dot_dimension_numbers<[1], [0], [0], [1], [0, 0, 1, 1], [], []>} : vector<8x32xbf16>, vector<32x32xbf16>, vector<8x32xf32> -> vector<8x32xf32>
    %128 = arith.addf %124, %127 : vector<8x32xf32>
    %c0_107 = arith.constant 0 : index
    %c0_108 = arith.constant 0 : index
    %c0_109 = arith.constant 0 : index
    %129 = vector.load %arg30[%c0_107, %c0_108, %c0_109] : memref<1x1x32xf32, #tpu.memory_space<vmem>>, vector<1x1x32xf32>
    %130 = vector.shape_cast %129 : vector<1x1x32xf32> to vector<1x32xf32>
    %131 = vector.broadcast %130 : vector<1x32xf32> to vector<8x32xf32>
    %132 = arith.addf %128, %131 : vector<8x32xf32>
    %cst_110 = arith.constant 0.000000e+00 : f32
    %133 = vector.broadcast %cst_110 : f32 to vector<8x32xf32>
    %134 = arith.maximumf %132, %133 : vector<8x32xf32>
    %135 = arith.truncf %134 : vector<8x32xf32> to vector<8x32xbf16>
    %c0_111 = arith.constant 0 : index
    %c0_112 = arith.constant 0 : index
    %c0_113 = arith.constant 0 : index
    %136 = vector.load %arg31[%c0_111, %c0_112, %c0_113] : memref<1x32x32xbf16, #tpu.memory_space<vmem>>, vector<1x32x32xbf16>
    %137 = vector.shape_cast %136 : vector<1x32x32xbf16> to vector<32x32xbf16>
    %cst_114 = arith.constant dense<0.000000e+00> : vector<8x32xf32>
    %138 = tpu.matmul %135, %137, %cst_114 {dimension_numbers = #tpu.dot_dimension_numbers<[1], [0], [0], [1], [0, 0, 1, 1], [], []>} : vector<8x32xbf16>, vector<32x32xbf16>, vector<8x32xf32> -> vector<8x32xf32>
    %c0_115 = arith.constant 0 : index
    %c0_116 = arith.constant 0 : index
    %c0_117 = arith.constant 0 : index
    %139 = vector.load %arg32[%c0_115, %c0_116, %c0_117] : memref<1x1x32xf32, #tpu.memory_space<vmem>>, vector<1x1x32xf32>
    %140 = vector.shape_cast %139 : vector<1x1x32xf32> to vector<1x32xf32>
    %141 = vector.broadcast %140 : vector<1x32xf32> to vector<8x32xf32>
    %142 = arith.addf %138, %141 : vector<8x32xf32>
    %cst_118 = arith.constant 0.000000e+00 : f32
    %143 = vector.broadcast %cst_118 : f32 to vector<8x32xf32>
    %144 = arith.maximumf %142, %143 : vector<8x32xf32>
    %c0_119 = arith.constant 0 : index
    %c0_120 = arith.constant 0 : index
    %c0_121 = arith.constant 0 : index
    %145 = vector.load %arg33[%c0_119, %c0_120, %c0_121] : memref<1x1x32xf32, #tpu.memory_space<vmem>>, vector<1x1x32xf32>
    %146 = vector.shape_cast %145 : vector<1x1x32xf32> to vector<1x32xf32>
    %c0_122 = arith.constant 0 : index
    %c0_123 = arith.constant 0 : index
    %c0_124 = arith.constant 0 : index
    %147 = vector.load %arg34[%c0_122, %c0_123, %c0_124] : memref<1x1x32xf32, #tpu.memory_space<vmem>>, vector<1x1x32xf32>
    %148 = vector.shape_cast %147 : vector<1x1x32xf32> to vector<1x32xf32>
    %cst_125 = arith.constant dense<0.000000e+00> : vector<32xf32>
    %149 = vector.multi_reduction <add>, %121, %cst_125 [0] : vector<8x32xf32> to vector<32xf32>
    %150 = vector.shape_cast %149 : vector<32xf32> to vector<1x32xf32>
    %cst_126 = arith.constant 1.250000e-01 : f32
    %151 = vector.broadcast %cst_126 : f32 to vector<1x32xf32>
    %152 = arith.mulf %150, %151 : vector<1x32xf32>
    %153 = arith.mulf %121, %121 : vector<8x32xf32>
    %cst_127 = arith.constant dense<0.000000e+00> : vector<32xf32>
    %154 = vector.multi_reduction <add>, %153, %cst_127 [0] : vector<8x32xf32> to vector<32xf32>
    %155 = vector.shape_cast %154 : vector<32xf32> to vector<1x32xf32>
    %cst_128 = arith.constant 1.250000e-01 : f32
    %156 = vector.broadcast %cst_128 : f32 to vector<1x32xf32>
    %157 = arith.mulf %155, %156 : vector<1x32xf32>
    %158 = arith.mulf %152, %152 : vector<1x32xf32>
    %159 = arith.subf %157, %158 : vector<1x32xf32>
    %cst_129 = arith.constant 9.99999974E-6 : f32
    %160 = vector.broadcast %cst_129 : f32 to vector<1x32xf32>
    %161 = arith.addf %159, %160 : vector<1x32xf32>
    %162 = math.rsqrt %161 : vector<1x32xf32>
    %163 = arith.mulf %162, %146 : vector<1x32xf32>
    %164 = arith.mulf %152, %163 : vector<1x32xf32>
    %165 = arith.subf %148, %164 : vector<1x32xf32>
    %166 = vector.broadcast %163 : vector<1x32xf32> to vector<8x32xf32>
    %167 = arith.mulf %121, %166 : vector<8x32xf32>
    %168 = vector.broadcast %165 : vector<1x32xf32> to vector<8x32xf32>
    %169 = arith.addf %167, %168 : vector<8x32xf32>
    %c0_130 = arith.constant 0 : index
    %c0_131 = arith.constant 0 : index
    %c0_132 = arith.constant 0 : index
    %170 = vector.load %arg35[%c0_130, %c0_131, %c0_132] : memref<1x1x32xf32, #tpu.memory_space<vmem>>, vector<1x1x32xf32>
    %171 = vector.shape_cast %170 : vector<1x1x32xf32> to vector<1x32xf32>
    %c0_133 = arith.constant 0 : index
    %c0_134 = arith.constant 0 : index
    %c0_135 = arith.constant 0 : index
    %172 = vector.load %arg36[%c0_133, %c0_134, %c0_135] : memref<1x1x32xf32, #tpu.memory_space<vmem>>, vector<1x1x32xf32>
    %173 = vector.shape_cast %172 : vector<1x1x32xf32> to vector<1x32xf32>
    %cst_136 = arith.constant dense<0.000000e+00> : vector<32xf32>
    %174 = vector.multi_reduction <add>, %144, %cst_136 [0] : vector<8x32xf32> to vector<32xf32>
    %175 = vector.shape_cast %174 : vector<32xf32> to vector<1x32xf32>
    %cst_137 = arith.constant 1.250000e-01 : f32
    %176 = vector.broadcast %cst_137 : f32 to vector<1x32xf32>
    %177 = arith.mulf %175, %176 : vector<1x32xf32>
    %178 = arith.mulf %144, %144 : vector<8x32xf32>
    %cst_138 = arith.constant dense<0.000000e+00> : vector<32xf32>
    %179 = vector.multi_reduction <add>, %178, %cst_138 [0] : vector<8x32xf32> to vector<32xf32>
    %180 = vector.shape_cast %179 : vector<32xf32> to vector<1x32xf32>
    %cst_139 = arith.constant 1.250000e-01 : f32
    %181 = vector.broadcast %cst_139 : f32 to vector<1x32xf32>
    %182 = arith.mulf %180, %181 : vector<1x32xf32>
    %183 = arith.mulf %177, %177 : vector<1x32xf32>
    %184 = arith.subf %182, %183 : vector<1x32xf32>
    %cst_140 = arith.constant 9.99999974E-6 : f32
    %185 = vector.broadcast %cst_140 : f32 to vector<1x32xf32>
    %186 = arith.addf %184, %185 : vector<1x32xf32>
    %187 = math.rsqrt %186 : vector<1x32xf32>
    %188 = arith.mulf %187, %171 : vector<1x32xf32>
    %189 = arith.mulf %177, %188 : vector<1x32xf32>
    %190 = arith.subf %173, %189 : vector<1x32xf32>
    %191 = vector.broadcast %188 : vector<1x32xf32> to vector<8x32xf32>
    %192 = arith.mulf %144, %191 : vector<8x32xf32>
    %193 = vector.broadcast %190 : vector<1x32xf32> to vector<8x32xf32>
    %194 = arith.addf %192, %193 : vector<8x32xf32>
    %c0_141 = arith.constant 0 : index
    %c0_142 = arith.constant 0 : index
    %195 = vector.load %arg42[%c0_141, %c0_142] : memref<8x32xf32, #tpu.memory_space<vmem>>, vector<8x32xf32>
    tpu.vector_store %arg42[%c0_141, %c0_142], %169 {strides = array<i32>} : memref<8x32xf32, #tpu.memory_space<vmem>>, vector<8x32xf32>,
    %c0_143 = arith.constant 0 : index
    %c0_144 = arith.constant 0 : index
    %196 = vector.load %arg43[%c0_143, %c0_144] : memref<8x32xf32, #tpu.memory_space<vmem>>, vector<8x32xf32>
    tpu.vector_store %arg43[%c0_143, %c0_144], %194 {strides = array<i32>} : memref<8x32xf32, #tpu.memory_space<vmem>>, vector<8x32xf32>,
    %c4_i32 = arith.constant 4 : i32
    %197 = arith.cmpi eq, %arg0, %c4_i32 : i32
    %198 = arith.extui %197 : i1 to i32
    %c0_i32_145 = arith.constant 0 : i32
    %199 = arith.cmpi ne, %198, %c0_i32_145 : i32
    scf.if %199 {
      %200 = arith.truncf %169 : vector<8x32xf32> to vector<8x32xbf16>
      %c0_146 = arith.constant 0 : index
      %c0_147 = arith.constant 0 : index
      %201 = vector.load %arg37[%c0_146, %c0_147] : memref<32x32xbf16, #tpu.memory_space<vmem>>, vector<32x32xbf16>
      %cst_148 = arith.constant dense<0.000000e+00> : vector<8x32xf32>
      %202 = tpu.matmul %200, %201, %cst_148 {dimension_numbers = #tpu.dot_dimension_numbers<[1], [0], [0], [1], [0, 0, 1, 1], [], []>} : vector<8x32xbf16>, vector<32x32xbf16>, vector<8x32xf32> -> vector<8x32xf32>
      %c0_149 = arith.constant 0 : index
      %c0_150 = arith.constant 0 : index
      %203 = vector.load %arg38[%c0_149, %c0_150] : memref<1x32xf32, #tpu.memory_space<vmem>>, vector<1x32xf32>
      %204 = vector.broadcast %203 : vector<1x32xf32> to vector<8x32xf32>
      %205 = arith.addf %202, %204 : vector<8x32xf32>
      %cst_151 = arith.constant 0.000000e+00 : f32
      %206 = vector.broadcast %cst_151 : f32 to vector<8x32xf32>
      %207 = arith.maximumf %205, %206 : vector<8x32xf32>
      %208 = arith.truncf %207 : vector<8x32xf32> to vector<8x32xbf16>
      %c0_152 = arith.constant 0 : index
      %c0_153 = arith.constant 0 : index
      %209 = vector.load %arg39[%c0_152, %c0_153] : memref<32x128xbf16, #tpu.memory_space<vmem>>, vector<32x128xbf16>
      %cst_154 = arith.constant dense<0.000000e+00> : vector<8x128xf32>
      %210 = tpu.matmul %208, %209, %cst_154 {dimension_numbers = #tpu.dot_dimension_numbers<[1], [0], [0], [1], [0, 0, 1, 1], [], []>} : vector<8x32xbf16>, vector<32x128xbf16>, vector<8x128xf32> -> vector<8x128xf32>
      %c0_155 = arith.constant 0 : index
      %c0_156 = arith.constant 0 : index
      %211 = vector.load %arg40[%c0_155, %c0_156] : memref<1x128xf32, #tpu.memory_space<vmem>>, vector<1x128xf32>
      %212 = vector.broadcast %211 : vector<1x128xf32> to vector<8x128xf32>
      %213 = arith.addf %210, %212 : vector<8x128xf32>
      %c0_157 = arith.constant 0 : index
      %c0_158 = arith.constant 0 : index
      %214 = vector.load %arg41[%c0_157, %c0_158] : memref<8x128xf32, #tpu.memory_space<vmem>>, vector<8x128xf32>
      tpu.vector_store %arg41[%c0_157, %c0_158], %213 {strides = array<i32>} : memref<8x128xf32, #tpu.memory_space<vmem>>, vector<8x128xf32>,
    } else {
    }
    return
  }
  func.func @transform_0(%arg0: i32) -> (i32, i32) {
    %c0_i32 = arith.constant 0 : i32
    %c0_i32_0 = arith.constant 0 : i32
    %c0_i32_1 = arith.constant 0 : i32
    return %c0_i32, %c0_i32_0 : i32, i32
  }
  func.func @transform_1(%arg0: i32) -> (i32, i32) {
    %c0_i32 = arith.constant 0 : i32
    %c0_i32_0 = arith.constant 0 : i32
    %c0_i32_1 = arith.constant 0 : i32
    return %c0_i32, %c0_i32_0 : i32, i32
  }
  func.func @transform_2(%arg0: i32) -> (i32, i32) {
    %c0_i32 = arith.constant 0 : i32
    %c0_i32_0 = arith.constant 0 : i32
    %c0_i32_1 = arith.constant 0 : i32
    return %c0_i32, %c0_i32_0 : i32, i32
  }
  func.func @transform_3(%arg0: i32) -> (i32, i32) {
    %c0_i32 = arith.constant 0 : i32
    %c0_i32_0 = arith.constant 0 : i32
    %c0_i32_1 = arith.constant 0 : i32
    return %c0_i32, %c0_i32_0 : i32, i32
  }
  func.func @transform_4(%arg0: i32) -> (i32, i32) {
    %c0_i32 = arith.constant 0 : i32
    %c0_i32_0 = arith.constant 0 : i32
    %c0_i32_1 = arith.constant 0 : i32
    return %c0_i32, %c0_i32_0 : i32, i32
  }
  func.func @transform_5(%arg0: i32) -> (i32, i32) {
    %c0_i32 = arith.constant 0 : i32
    %c0_i32_0 = arith.constant 0 : i32
    %c0_i32_1 = arith.constant 0 : i32
    return %c0_i32, %c0_i32_0 : i32, i32
  }
  func.func @transform_6(%arg0: i32) -> (i32, i32, i32) {
    %c0_i32 = arith.constant 0 : i32
    %c0_i32_0 = arith.constant 0 : i32
    %c0_i32_1 = arith.constant 0 : i32
    return %arg0, %c0_i32, %c0_i32_0 : i32, i32, i32
  }
  func.func @transform_7(%arg0: i32) -> (i32, i32, i32) {
    %c0_i32 = arith.constant 0 : i32
    %c0_i32_0 = arith.constant 0 : i32
    %c0_i32_1 = arith.constant 0 : i32
    return %arg0, %c0_i32, %c0_i32_0 : i32, i32, i32
  }
  func.func @transform_8(%arg0: i32) -> (i32, i32, i32) {
    %c0_i32 = arith.constant 0 : i32
    %c0_i32_0 = arith.constant 0 : i32
    %c0_i32_1 = arith.constant 0 : i32
    return %arg0, %c0_i32, %c0_i32_0 : i32, i32, i32
  }
  func.func @transform_9(%arg0: i32) -> (i32, i32, i32) {
    %c0_i32 = arith.constant 0 : i32
    %c0_i32_0 = arith.constant 0 : i32
    %c0_i32_1 = arith.constant 0 : i32
    return %arg0, %c0_i32, %c0_i32_0 : i32, i32, i32
  }
  func.func @transform_10(%arg0: i32) -> (i32, i32, i32) {
    %c0_i32 = arith.constant 0 : i32
    %c0_i32_0 = arith.constant 0 : i32
    %c0_i32_1 = arith.constant 0 : i32
    return %arg0, %c0_i32, %c0_i32_0 : i32, i32, i32
  }
  func.func @transform_11(%arg0: i32) -> (i32, i32, i32) {
    %c0_i32 = arith.constant 0 : i32
    %c0_i32_0 = arith.constant 0 : i32
    %c0_i32_1 = arith.constant 0 : i32
    return %arg0, %c0_i32, %c0_i32_0 : i32, i32, i32
  }
  func.func @transform_12(%arg0: i32) -> (i32, i32, i32) {
    %c0_i32 = arith.constant 0 : i32
    %c0_i32_0 = arith.constant 0 : i32
    %c0_i32_1 = arith.constant 0 : i32
    return %arg0, %c0_i32, %c0_i32_0 : i32, i32, i32
  }
  func.func @transform_13(%arg0: i32) -> (i32, i32, i32) {
    %c0_i32 = arith.constant 0 : i32
    %c0_i32_0 = arith.constant 0 : i32
    %c0_i32_1 = arith.constant 0 : i32
    return %arg0, %c0_i32, %c0_i32_0 : i32, i32, i32
  }
  func.func @transform_14(%arg0: i32) -> (i32, i32, i32) {
    %c0_i32 = arith.constant 0 : i32
    %c0_i32_0 = arith.constant 0 : i32
    %c0_i32_1 = arith.constant 0 : i32
    return %arg0, %c0_i32, %c0_i32_0 : i32, i32, i32
  }
  func.func @transform_15(%arg0: i32) -> (i32, i32, i32) {
    %c0_i32 = arith.constant 0 : i32
    %c0_i32_0 = arith.constant 0 : i32
    %c0_i32_1 = arith.constant 0 : i32
    return %arg0, %c0_i32, %c0_i32_0 : i32, i32, i32
  }
  func.func @transform_16(%arg0: i32) -> (i32, i32, i32) {
    %c0_i32 = arith.constant 0 : i32
    %c0_i32_0 = arith.constant 0 : i32
    %c0_i32_1 = arith.constant 0 : i32
    return %arg0, %c0_i32, %c0_i32_0 : i32, i32, i32
  }
  func.func @transform_17(%arg0: i32) -> (i32, i32, i32) {
    %c0_i32 = arith.constant 0 : i32
    %c0_i32_0 = arith.constant 0 : i32
    %c0_i32_1 = arith.constant 0 : i32
    return %arg0, %c0_i32, %c0_i32_0 : i32, i32, i32
  }
  func.func @transform_18(%arg0: i32) -> (i32, i32, i32) {
    %c0_i32 = arith.constant 0 : i32
    %c0_i32_0 = arith.constant 0 : i32
    %c0_i32_1 = arith.constant 0 : i32
    return %arg0, %c0_i32, %c0_i32_0 : i32, i32, i32
  }
  func.func @transform_19(%arg0: i32) -> (i32, i32, i32) {
    %c0_i32 = arith.constant 0 : i32
    %c0_i32_0 = arith.constant 0 : i32
    %c0_i32_1 = arith.constant 0 : i32
    return %arg0, %c0_i32, %c0_i32_0 : i32, i32, i32
  }
  func.func @transform_20(%arg0: i32) -> (i32, i32, i32) {
    %c0_i32 = arith.constant 0 : i32
    %c0_i32_0 = arith.constant 0 : i32
    %c0_i32_1 = arith.constant 0 : i32
    return %arg0, %c0_i32, %c0_i32_0 : i32, i32, i32
  }
  func.func @transform_21(%arg0: i32) -> (i32, i32, i32) {
    %c0_i32 = arith.constant 0 : i32
    %c0_i32_0 = arith.constant 0 : i32
    %c0_i32_1 = arith.constant 0 : i32
    return %arg0, %c0_i32, %c0_i32_0 : i32, i32, i32
  }
  func.func @transform_22(%arg0: i32) -> (i32, i32, i32) {
    %c0_i32 = arith.constant 0 : i32
    %c0_i32_0 = arith.constant 0 : i32
    %c0_i32_1 = arith.constant 0 : i32
    return %arg0, %c0_i32, %c0_i32_0 : i32, i32, i32
  }
  func.func @transform_23(%arg0: i32) -> (i32, i32, i32) {
    %c0_i32 = arith.constant 0 : i32
    %c0_i32_0 = arith.constant 0 : i32
    %c0_i32_1 = arith.constant 0 : i32
    return %arg0, %c0_i32, %c0_i32_0 : i32, i32, i32
  }
  func.func @transform_24(%arg0: i32) -> (i32, i32, i32) {
    %c0_i32 = arith.constant 0 : i32
    %c0_i32_0 = arith.constant 0 : i32
    %c0_i32_1 = arith.constant 0 : i32
    return %arg0, %c0_i32, %c0_i32_0 : i32, i32, i32
  }
  func.func @transform_25(%arg0: i32) -> (i32, i32, i32) {
    %c0_i32 = arith.constant 0 : i32
    %c0_i32_0 = arith.constant 0 : i32
    %c0_i32_1 = arith.constant 0 : i32
    return %arg0, %c0_i32, %c0_i32_0 : i32, i32, i32
  }
  func.func @transform_26(%arg0: i32) -> (i32, i32, i32) {
    %c0_i32 = arith.constant 0 : i32
    %c0_i32_0 = arith.constant 0 : i32
    %c0_i32_1 = arith.constant 0 : i32
    return %arg0, %c0_i32, %c0_i32_0 : i32, i32, i32
  }
  func.func @transform_27(%arg0: i32) -> (i32, i32, i32) {
    %c0_i32 = arith.constant 0 : i32
    %c0_i32_0 = arith.constant 0 : i32
    %c0_i32_1 = arith.constant 0 : i32
    return %arg0, %c0_i32, %c0_i32_0 : i32, i32, i32
  }
  func.func @transform_28(%arg0: i32) -> (i32, i32, i32) {
    %c0_i32 = arith.constant 0 : i32
    %c0_i32_0 = arith.constant 0 : i32
    %c0_i32_1 = arith.constant 0 : i32
    return %arg0, %c0_i32, %c0_i32_0 : i32, i32, i32
  }
  func.func @transform_29(%arg0: i32) -> (i32, i32, i32) {
    %c0_i32 = arith.constant 0 : i32
    %c0_i32_0 = arith.constant 0 : i32
    %c0_i32_1 = arith.constant 0 : i32
    return %arg0, %c0_i32, %c0_i32_0 : i32, i32, i32
  }
  func.func @transform_30(%arg0: i32) -> (i32, i32, i32) {
    %c0_i32 = arith.constant 0 : i32
    %c0_i32_0 = arith.constant 0 : i32
    %c0_i32_1 = arith.constant 0 : i32
    return %arg0, %c0_i32, %c0_i32_0 : i32, i32, i32
  }
  func.func @transform_31(%arg0: i32) -> (i32, i32, i32) {
    %c0_i32 = arith.constant 0 : i32
    %c0_i32_0 = arith.constant 0 : i32
    %c0_i32_1 = arith.constant 0 : i32
    return %arg0, %c0_i32, %c0_i32_0 : i32, i32, i32
  }
  func.func @transform_32(%arg0: i32) -> (i32, i32, i32) {
    %c0_i32 = arith.constant 0 : i32
    %c0_i32_0 = arith.constant 0 : i32
    %c0_i32_1 = arith.constant 0 : i32
    return %arg0, %c0_i32, %c0_i32_0 : i32, i32, i32
  }
  func.func @transform_33(%arg0: i32) -> (i32, i32, i32) {
    %c0_i32 = arith.constant 0 : i32
    %c0_i32_0 = arith.constant 0 : i32
    %c0_i32_1 = arith.constant 0 : i32
    return %arg0, %c0_i32, %c0_i32_0 : i32, i32, i32
  }
  func.func @transform_34(%arg0: i32) -> (i32, i32, i32) {
    %c0_i32 = arith.constant 0 : i32
    %c0_i32_0 = arith.constant 0 : i32
    %c0_i32_1 = arith.constant 0 : i32
    return %arg0, %c0_i32, %c0_i32_0 : i32, i32, i32
  }
  func.func @transform_35(%arg0: i32) -> (i32, i32, i32) {
    %c0_i32 = arith.constant 0 : i32
    %c0_i32_0 = arith.constant 0 : i32
    %c0_i32_1 = arith.constant 0 : i32
    return %arg0, %c0_i32, %c0_i32_0 : i32, i32, i32
  }
  func.func @transform_36(%arg0: i32) -> (i32, i32) {
    %c0_i32 = arith.constant 0 : i32
    %c0_i32_0 = arith.constant 0 : i32
    %c0_i32_1 = arith.constant 0 : i32
    return %c0_i32, %c0_i32_0 : i32, i32
  }
  func.func @transform_37(%arg0: i32) -> (i32, i32) {
    %c0_i32 = arith.constant 0 : i32
    %c0_i32_0 = arith.constant 0 : i32
    %c0_i32_1 = arith.constant 0 : i32
    return %c0_i32, %c0_i32_0 : i32, i32
  }
  func.func @transform_38(%arg0: i32) -> (i32, i32) {
    %c0_i32 = arith.constant 0 : i32
    %c0_i32_0 = arith.constant 0 : i32
    %c0_i32_1 = arith.constant 0 : i32
    return %c0_i32, %c0_i32_0 : i32, i32
  }
  func.func @transform_39(%arg0: i32) -> (i32, i32) {
    %c0_i32 = arith.constant 0 : i32
    %c0_i32_0 = arith.constant 0 : i32
    %c0_i32_1 = arith.constant 0 : i32
    return %c0_i32, %c0_i32_0 : i32, i32
  }
  func.func @transform_40(%arg0: i32) -> (i32, i32) {
    %c0_i32 = arith.constant 0 : i32
    %c0_i32_0 = arith.constant 0 : i32
    %c0_i32_1 = arith.constant 0 : i32
    return %c0_i32, %c0_i32_0 : i32, i32
  }
}

</mosaic_0001>

<bundles_post_ra>
// kernel: reinforce_policy_apply.1
= control target key start
LH: loop header
LB: loop body
LE: loop exit
PB: predicated region body
PF: predicated region fallthrough
CT: control target
= control target key end

     0   :  { %s5367_s6 = smov 1   ;;  %s5368_s10 = smov 2   ;;  %s6577_s0 = inlined_call_operand.smem [shape: u32[41], index: -1, kind: input, shape index: {}] }
   0x1   :  { %s5446_s5 = sld [smem:[%s6577_s0]]   ;;  %s5369_s14 = smov 3  }
   0x2   :  { %s5451_s9 = sld [smem:[%s6577_s0 + %s5367_s6]]   ;;  %s5370_s18 = smov 4  }
   0x3   :  { %s5456_s13 = sld [smem:[%s6577_s0 + %s5368_s10]]   ;;  %s5371_s22 = smov 5  }
   0x4   :  { %s5461_s17 = sld [smem:[%s6577_s0 + %s5369_s14]]   ;;  %s5372_s26 = smov 6  }
   0x5   :  { %s5466_s21 = sld [smem:[%s6577_s0 + %s5370_s18]]   ;;  %s5373_s30 = smov 7  }
   0x6   :  { %s5471_s25 = sld [smem:[%s6577_s0 + %s5371_s22]]   ;;  %s5374_s4 = smov 8  }
   0x7   :  { %6623 = sst [smem:[#allocation55_spill]] %s5446_s5  ;;  %s5375_s10 = smov 9  }
   0x8   :  { %6624 = sst [smem:[#allocation56_spill]] %s5451_s9  ;;  %s5376_s15 = smov 10  }
   0x9   :  { %6625 = sst [smem:[#allocation57_spill]] %s5456_s13  ;;  %s5377_s20 = smov 11  }
   0xa   :  { %6626 = sst [smem:[#allocation58_spill]] %s5461_s17  ;;  %s5379_s1 = smov 13  }
   0xb   :  { %6627 = sst [smem:[#allocation59_spill]] %s5466_s21  ;;  %s5380_s7 = smov 14  }
   0xc   :  { %6628 = sst [smem:[#allocation60_spill]] %s5471_s25  ;;  %s5382_s22 = smov 16  }
   0xd   :  { %s5476_s29 = sld [smem:[%s6577_s0 + %s5372_s26]]   ;;  %s5378_s26 = smov 12  }
   0xe   :  { %s5481_s3 = sld [smem:[%s6577_s0 + %s5373_s30]]   ;;  %s5383_s28 = smov 17  }
   0xf   :  { %s5486_s8 = sld [smem:[%s6577_s0 + %s5374_s4]]  }
  0x10   :  { %s5491_s14 = sld [smem:[%s6577_s0 + %s5375_s10]]  }
  0x11   :  { %s5496_s19 = sld [smem:[%s6577_s0 + %s5376_s15]]   ;;  %s5381_s15 = smov 15  }
  0x12   :  { %s5501_s24 = sld [smem:[%s6577_s0 + %s5377_s20]]  }
  0x13   :  { %6629 = sst [smem:[#allocation61_spill]] %s5476_s29 }
  0x14   :  { %6630 = sst [smem:[#allocation62_spill]] %s5481_s3 }
  0x15   :  { %6631 = sst [smem:[#allocation63_spill]] %s5486_s8 }
  0x16   :  { %6632 = sst [smem:[#allocation64_spill]] %s5491_s14 }
  0x17   :  { %6633 = sst [smem:[#allocation65_spill]] %s5496_s19 }
  0x18   :  { %s5506_s30 = sld [smem:[%s6577_s0 + %s5378_s26]]  }
  0x19   :  { %s5511_s6 = sld [smem:[%s6577_s0 + %s5379_s1]]  }
  0x1a   :  { %s5516_s12 = sld [smem:[%s6577_s0 + %s5380_s7]]   ;;  %s5384_s7 = smov 18  }
  0x1b   :  { %s5521_s20 = sld [smem:[%s6577_s0 + %s5381_s15]]   ;;  %s5385_s15 = smov 19  }
  0x1c   :  { %s5526_s27 = sld [smem:[%s6577_s0 + %s5382_s22]]   ;;  %s5386_s22 = smov 20  }
  0x1d   :  { %s5531_s4 = sld [smem:[%s6577_s0 + %s5383_s28]]   ;;  %s5387_s28 = smov 21  }
  0x1e   :  { %6634 = sst [smem:[#allocation66_spill]] %s5506_s30 }
  0x1f   :  { %6635 = sst [smem:[#allocation67_spill]] %s5511_s6 }
  0x20   :  { %6636 = sst [smem:[#allocation68_spill]] %s5516_s12 }
  0x21   :  { %6637 = sst [smem:[#allocation69_spill]] %s5521_s20 }
  0x22   :  { %6638 = sst [smem:[#allocation70_spill]] %s5526_s27 }
  0x23   :  { %6639 = sst [smem:[#allocation71_spill]] %s5531_s4 }
  0x24   :  { %s5536_s25 = sld [smem:[%s6577_s0 + %s5384_s7]]   ;;  %s5388_s7 = smov 22  }
  0x25   :  { %s5541_s21 = sld [smem:[%s6577_s0 + %s5385_s15]]   ;;  %s5389_s15 = smov 23  }
  0x26   :  { %s5546_s17 = sld [smem:[%s6577_s0 + %s5386_s22]]   ;;  %s5390_s22 = smov 24  }
  0x27   :  { %s5551_s13 = sld [smem:[%s6577_s0 + %s5387_s28]]   ;;  %s5391_s28 = smov 25  }
  0x28   :  { %s5556_s9 = sld [smem:[%s6577_s0 + %s5388_s7]]   ;;  %s5392_s7 = smov 26  }
  0x29   :  { %s5561_s5 = sld [smem:[%s6577_s0 + %s5389_s15]]   ;;  %s5393_s15 = smov 27  }
  0x2a   :  { %6640 = sst [smem:[#allocation72_spill]] %s5536_s25 }
  0x2b   :  { %6641 = sst [smem:[#allocation73_spill]] %s5541_s21 }
  0x2c   :  { %s5566_s21 = sld [smem:[%s6577_s0 + %s5390_s22]]   ;;  %s5394_s22 = smov 28  }
  0x2d   :  { %6642 = sst [smem:[#allocation74_spill]] %s5551_s13 }
  0x2e   :  { %6643 = sst [smem:[#allocation75_spill]] %s5556_s9 }
  0x2f   :  { %6644 = sst [smem:[#allocation76_spill]] %s5561_s5 }
  0x30   :  { %s5571_s20 = sld [smem:[%s6577_s0 + %s5391_s28]]   ;;  %s5395_s28 = smov 29  }
  0x31   :  { %s5576_s14 = sld [smem:[%s6577_s0 + %s5392_s7]]   ;;  %s5396_s7 = smov 30  }
  0x32   :  { %s5581_s29 = sld [smem:[%s6577_s0 + %s5393_s15]]   ;;  %s5397_s15 = smov 31  }
  0x33   :  { %s5586_s3 = sld [smem:[%s6577_s0 + %s5394_s22]]   ;;  %s5398_s22 = smov 32  }
  0x34   :  { %s5596_s5 = sld [smem:[%s6577_s0 + %s5396_s7]]   ;;  %s5400_s7 = smov 34  }
  0x35   :  { %s5606_s13 = sld [smem:[%s6577_s0 + %s5398_s22]]   ;;  %s5402_s22 = smov 36  }
  0x36   :  { %6645 = sst [smem:[#allocation77_spill]] %s5571_s20 }
  0x37   :  { %s5591_s20 = sld [smem:[%s6577_s0 + %s5395_s28]]   ;;  %s5399_s28 = smov 33  }
  0x38   :  { %6646 = sst [smem:[#allocation78_spill]] %s5581_s29 }
  0x39   :  { %6647 = sst [smem:[#allocation79_spill]] %s5586_s3 }
  0x3a   :  { %6649 = sst [smem:[#allocation81_spill]] %s5596_s5 }
  0x3b   :  { %s5601_s29 = sld [smem:[%s6577_s0 + %s5397_s15]]   ;;  %s5401_s15 = smov 35  }
  0x3c   :  { %6651 = sst [smem:[#allocation83_spill]] %s5606_s13 }
  0x3d   :  { %6648 = sst [smem:[#allocation80_spill]] %s5591_s20 }
  0x3e   :  { %s5611_s20 = sld [smem:[%s6577_s0 + %s5399_s28]]   ;;  %s5403_s28 = smov 37  }
  0x3f   :  { %s5616_s25 = sld [smem:[%s6577_s0 + %s5400_s7]]   ;;  %s5404_s7 = smov 38  }
  0x40   :  { %s5626_s13 = sld [smem:[%s6577_s0 + %s5402_s22]]   ;;  %s5406_s22 = smov 40  }
  0x41   :  { %6650 = sst [smem:[#allocation82_spill]] %s5601_s29 }
  0x42   :  { %s5621_s29 = sld [smem:[%s6577_s0 + %s5401_s15]]   ;;  %s5405_s15 = smov 39  }
  0x43   :  { %s5636_s27 = sld [smem:[%s6577_s0 + %s5404_s7]]  }
  0x44   :  { %6652 = sst [smem:[#allocation84_spill]] %s5611_s20 }
  0x45   :  { %s5631_s20 = sld [smem:[%s6577_s0 + %s5403_s28]]  }
  0x46   :  { %6654 = sst [smem:[#allocation86_spill]] %s5626_s13 }
  0x47   :  { %s5646_s13 = sld [smem:[%s6577_s0 + %s5406_s22]]  }
  0x48   :  { %6653 = sst [smem:[#allocation85_spill]] %s5621_s29 }
  0x49   :  { %6656 = sst [smem:[#allocation88_spill]] %s5636_s27 }
  0x4a   :  { %s5641_s29 = sld [smem:[%s6577_s0 + %s5405_s15]]  }
  0x4b   :  { %6655 = sst [smem:[#allocation87_spill]] %s5631_s20 }
  0x4d   :  { %6658 = sst [smem:[#allocation90_spill]] %s5646_s13 }
  0x50   :  { %6657 = sst [smem:[#allocation89_spill]] %s5641_s29 }
  0x51   :  { %86 = vsyncpa [#allocation5], 0 }
  0x52   :  { %88 = vsyncpa [#allocation5 + $0x1], 0 }
  0x53   :  { %89 = vsyncpa [#allocation7], 0 }
  0x54   :  { %91 = vsyncpa [#allocation7 + $0x1], 0 }
  0x55   :  { %92 = vsyncpa [#allocation10], 0 }
  0x56   :  { %94 = vsyncpa [#allocation10 + $0x1], 0 }
  0x57   :  { %95 = vsyncpa [#allocation13], 0 }
  0x58   :  { %97 = vsyncpa [#allocation13 + $0x1], 0 }
  0x59   :  { %98 = vsyncpa [#allocation16], 0 }
  0x5a   :  { %100 = vsyncpa [#allocation16 + $0x1], 0 }
  0x5b   :  { %101 = vsyncpa [#allocation19], 0 }
  0x5c   :  { %103 = vsyncpa [#allocation19 + $0x1], 0 }
  0x5d   :  { %104 = vsyncpa [#allocation22], 0 }
  0x5e   :  { %106 = vsyncpa [#allocation22 + $0x1], 0 }
  0x5f   :  { %107 = vsyncpa [#allocation25], 0 }
  0x60   :  { %109 = vsyncpa [#allocation25 + $0x1], 0 }
  0x61   :  { %110 = vsyncpa [#allocation28], 0 }
  0x62   :  { %112 = vsyncpa [#allocation28 + $0x1], 0 }
  0x63   :  { %113 = vsyncpa [#allocation31], 0 }
  0x64   :  { %115 = vsyncpa [#allocation31 + $0x1], 0 }
  0x65   :  { %116 = vsyncpa [#allocation34], 0 }
  0x66   :  { %118 = vsyncpa [#allocation34 + $0x1], 0 }
  0x67   :  { %119 = vsyncpa [#allocation37], 0 }
  0x68   :  { %121 = vsyncpa [#allocation37 + $0x1], 0 }
  0x69   :  { %122 = vsyncpa [#allocation40], 0  ;;  %s5648_s0 = smov 0   ;;  %s5650_s28 = smov 0  }
  0x6a   :  { %s5652_s1 = smov 0   ;;  %s5654_s2 = smov 0  }
  0x6b LB: > { %s6659_s12 = sld [smem:[#allocation68_spill]]  ;;  %s5667_s7 = sadd.s32 4294967295, %s5365_s2   ;;  %s5353_s0 = sphi %s5648_s0, %s6770_s0   ;;  %s5365_s2 = sphi %s5654_s2, %s6769_s2   ;;  %s5361_s1 = sphi %s5652_s1, %s6772_s1   ;;  %s5357_s28 = sphi %s5650_s28, %s6771_s28  }
  0x6c   : > { %s6660_s9 = sld [smem:[#allocation75_spill]]  ;;  %s5670_s10 = sadd.s32 1, %s5365_s2  }
  0x6d   : > { %s6661_s8 = sld [smem:[#allocation63_spill]]  ;;  %s310_s11 = ssub.s32 %s5365_s2, %s5670_s10 }
  0x6e   : > { %s6662_s6 = sld [smem:[#allocation67_spill]]  ;;  %s313_s15 = sadd.s32 1, %s5361_s1 }
  0x6f   : > { %s6663_s5 = sld [smem:[#allocation81_spill]]  ;;  %p311_p0 = scmp.eq.s32.totalorder %s310_s11, 0 }
  0x70   : > { %s6664_s4 = sld [smem:[#allocation71_spill]]  ;;  %p320_p1 = scmp.ne.s32.totalorder %s5361_s1, %s5357_s28 }
  0x71   : > { %s6665_s3 = sld [smem:[#allocation79_spill]]  ;;  %p321_p2 = scmp.eq.s32.totalorder %s5365_s2, 0 }
  0x72   : > { %s6666_s30 = sld [smem:[#allocation66_spill]]  ;;  %p326_p3 = scmp.ne.s32.totalorder %s5357_s28, %s5353_s0 }
  0x73   : > { %s6667_s19 = sld [smem:[#allocation65_spill]]  ;;  %p5682_p4 = por %p321_p2, %p320_p1 }
  0x74   : > { %6668 = sst [smem:[#allocation91_spill]] %s5357_s28  ;;  %p6590_p5 = scmp.eq.s32.totalorder %s5667_s7, 0 }
  0x75   : > { %6669 = sst [smem:[#allocation92_spill]] %s5361_s1  ;;  %p4089_p6 = scmp.ge.s32.totalorder %s5365_s2, 1 }
  0x76   : > { %6670 = sst [smem:[#allocation93_spill]] %s5667_s7  ;;  %p1144_p7 = scmp.lt.s32.totalorder %s5365_s2, 6 }
  0x77   : > { %6671 = sst [smem:[#allocation94_spill]] %s5670_s10  ;;  %p5691_p8 = por %p6590_p5, %p326_p3 }
  0x78   : > { %s5680_s16 = scalar_select %p311_p0, %s5361_s1, %s313_s15  }
  0x79   : > { %s6673_s18 = scalar_select %p5682_p4, 1, 0 }
  0x7a   : > { %6672 = sst [smem:[#allocation95_spill]] %s5680_s16  ;;  %p5696_p10 = pnand %p4089_p6, %p1144_p7 }
  0x7b   : > { %s6674_s22 = scalar_select %p5691_p8, 1, 0 }
  0x7c   : > { %s6676_s23 = scalar_select %p5696_p10, 1, 0 }
  0x7d   : > { %6675 = sst [smem:[#allocation96_spill]] %s6674_s22  ;;  %s5407_s26 = smov [#allocation39]  }
  0x7e   : > { %s1178_s0 = sshll.u32 %s5407_s26, 4  ;;  %p4506_p11 = pneg %p5696_p10  ;;  %s1179_s0 = int_to_ptr.vmem [resolvable:$true] %s1178_s0 }
  0x7f   : > { %s5408_s11 = smov [#allocation41]   ;;  %s4644_s10 = scalar_lea.vmem %s1179_s0, 16 }
  0x80   : > { %s1192_s15 = sshll.u32 %s5408_s11, 4  ;;  %p5704_p12 = pnand %p4506_p11, %p6590_p5  ;;  %s1193_s15 = int_to_ptr.vmem [resolvable:$true] %s1192_s15 }
  0x81   : > { %p4645_p0 = scmp.ne.s32.totalorder %s1179_s0, %s4644_s10  ;;  %s4651_s26 = scalar_lea.vmem %s1179_s0, 32 }
  0x82   : > { %p4635_p13 = pneg %p5704_p12  ;;  %p4652_p3 = scmp.lt.s32.totalorder %s1179_s0, %s1179_s0 }
  0x83   : > { %p4653_p6 = scmp.lt.s32.totalorder %s4651_s26, %s4644_s10 }
  0x84   : > { %p4647_p1 = pnand %p4645_p0, %p4635_p13 }
  0x85   : > { %p4654_p7 = por %p4653_p6, %p4652_p3 }
  0x86   : > { %p4648_p2 = pneg %p4647_p1 }
  0x88   : > { %p4655_p9 = pnand %p4654_p7, %p4648_p2 }
  0x8a   : > { %4658 = shalt.err (!%p4655_p9)
}
  0x8b   : > { %s6678_s20 = sld [smem:[#allocation87_spill]]  ;;  %s4670_s11 = scalar_lea.vmem %s1193_s15, 16 }
  0x8c   : > { %p4671_p11 = scmp.ne.s32.totalorder %s1193_s15, %s4670_s11  ;;  %s4677_s13 = scalar_lea.vmem %s1193_s15, 32 }
  0x8d   : > { %p4678_p0 = scmp.lt.s32.totalorder %s1193_s15, %s1193_s15  ;;  %p4679_p1 = scmp.lt.s32.totalorder %s4677_s13, %s4670_s11 }
  0x8e   : > { %p4673_p5 = pnand %p4671_p11, %p4635_p13 }
  0x8f   : > { %p4680_p10 = por %p4679_p1, %p4678_p0 }
  0x90   : > { %p4674_p8 = pneg %p4673_p5 }
  0x91   : > { %4509 = dma.hbm_to_vmem [thread:$0]  (!%p5704_p12), %s6678_s20, 16, %s1179_s0, [#allocation40]  }
  0x92   : > { %p4681_p4 = pnand %p4680_p10, %p4674_p8 }
  0x94   : > { %4684 = shalt.err (!%p4681_p4)
}
  0x95   : > { %s6679_s29 = sld [smem:[#allocation89_spill]]  ;;  %p4092_p9 = scmp.ge.s32.totalorder %s5365_s2, 5 }
  0x96   : > { %s5724_s10 = sand.u32 (!%p4092_p9), 1, %s5361_s1   ;;  %s5727_s13 = sshll.u32 (!%p4092_p9), %s5365_s2, 8 }
  0x97   : > { %1199 = sbr.rel (%p4092_p9) target bundleno = 720 (0x2d0), region = 56  ;;  %s5730_s0 = sshll.u32 (!%p4092_p9), %s5724_s10, 4 }
  0x98   : > { %s5733_s16 = sand.u32 (!%p4092_p9), 1, %s5365_s2   ;;  %s1248_s26 = scalar_lea.vmem (!%p4092_p9), [#allocation6], %s5730_s0 }
  0x99   : > { %s1255_s11 = sshll.u32 (!%p4092_p9), %s1248_s26, 4  ;;  %p6680_p5 = scmp.ne.s32.totalorder (!%p4092_p9), %s6673_s18, 0  ;;  %s5740_s11 = int_to_ptr.vmem [resolvable:$true] %s1255_s11 }
  0x9a   : > { %s4689_s1 = scalar_lea.hbm (!%p4092_p9), %s6667_s19, 1280 }
  0x9b   : > { %4512 = dma.hbm_to_vmem [thread:$0]  (!%p5704_p12), %s6679_s29, 16, %s1193_s15, [#allocation40]  }
  0x9c   : > { %s5737_s15 = scalar_lea.hbm %s6667_s19, %s5727_s13 }
  0x9d   : > { %s4685_s29 = scalar_lea.hbm %s5737_s15, 256  ;;  %p4690_p12 = scmp.lt.s32.totalorder %s5737_s15, %s6667_s19 }
  0x9e   : > { %p4686_p4 = scmp.ne.s32.totalorder %s5737_s15, %s4685_s29  ;;  %p4691_p13 = scmp.lt.s32.totalorder %s4689_s1, %s4685_s29 }
  0xa0   : > { %p4687_p8 = pnand %p4686_p4, %p6680_p5  ;;  %p4692_p2 = por %p4691_p13, %p4690_p12 }
  0xa2   : > { %p4688_p10 = pneg %p4687_p8 }
  0xa4   : > { %p4693_p3 = pnand %p4692_p2, %p4688_p10 }
  0xa6   : > { %4696 = shalt.err (!%p4693_p3)
}
  0xa7   : > { %s4697_s27 = scalar_lea.vmem %s5740_s11, 256  ;;  %s5409_s26 = smov [#allocation6]  }
  0xa8   : > { %p4698_p6 = scmp.ne.s32.totalorder %s5740_s11, %s4697_s27  ;;  %s4701_s20 = sshll.u32 %s5409_s26, 4  ;;  %s4702_s20 = int_to_ptr.vmem [resolvable:$false] %s4701_s20 }
  0xa9   : > { %s4703_s7 = scalar_lea.vmem %s4702_s20, 512  ;;  %p4704_p0 = scmp.lt.s32.totalorder %s5740_s11, %s4702_s20 }
  0xaa   : > { %p4699_p7 = pnand %p4698_p6, %p6680_p5  ;;  %p4705_p1 = scmp.lt.s32.totalorder %s4703_s7, %s4697_s27 }
  0xac   : > { %p4700_p11 = pneg %p4699_p7  ;;  %p4706_p9 = por %p4705_p1, %p4704_p0 }
  0xae   : > { %p4707_p4 = pnand %p4706_p9, %p4700_p11 }
  0xb0   : > { %4710 = shalt.err (!%p4707_p4)
}
  0xb1   : > { %s5410_s29 = smov 64   ;;  %s5411_s1 = smov 4  }
  0xb2   : > { %s6681_s20 = scalar_lea.sflag [#allocation7], %s5733_s16  ;;  %s5766_s27 = scalar_lea.hbm %s6666_s30, %s5727_s13 }
  0xb3   : > { %4457 = dma.hbm_to_vmem [thread:$0]  (%p6680_p5), %s5737_s15, 256, %s5740_s11, %s6681_s20, %s5410_s29, %s5410_s29, %s5411_s1  }
  0xb4   : > { %s1286_s7 = scalar_lea.vmem [#allocation9], %s5730_s0  ;;  %s1283_s19 = scalar_lea.sflag [#allocation10], %s5733_s16 }
  0xb5   : > { %s1293_s26 = sshll.u32 %s1286_s7, 4  ;;  %s4711_s22 = scalar_lea.hbm %s5766_s27, 256  ;;  %s5769_s26 = int_to_ptr.vmem [resolvable:$true] %s1293_s26 }
  0xb6   : > { %p4712_p8 = scmp.ne.s32.totalorder %s5766_s27, %s4711_s22  ;;  %s4715_s28 = scalar_lea.hbm %s6666_s30, 1280 }
  0xb7   : > { %p4716_p13 = scmp.lt.s32.totalorder %s5766_s27, %s6666_s30  ;;  %p4717_p2 = scmp.lt.s32.totalorder %s4715_s28, %s4711_s22 }
  0xb8   : > { %p4713_p10 = pnand %p4712_p8, %p6680_p5 }
  0xb9   : > { %p4718_p3 = por %p4717_p2, %p4716_p13 }
  0xba   : > { %p4714_p12 = pneg %p4713_p10 }
  0xbc   : > { %p4719_p6 = pnand %p4718_p3, %p4714_p12 }
  0xbe   : > { %4722 = shalt.err (!%p4719_p6)
}
  0xbf   : > { %s4723_s15 = scalar_lea.vmem %s5769_s26, 256  ;;  %s5412_s11 = smov [#allocation9]  }
  0xc0   : > { %p4724_p7 = scmp.ne.s32.totalorder %s5769_s26, %s4723_s15  ;;  %s4727_s20 = sshll.u32 %s5412_s11, 4  ;;  %s4728_s20 = int_to_ptr.vmem [resolvable:$false] %s4727_s20 }
  0xc1   : > { %s4729_s7 = scalar_lea.vmem %s4728_s20, 512  ;;  %p4730_p1 = scmp.lt.s32.totalorder %s5769_s26, %s4728_s20 }
  0xc2   : > { %p4725_p11 = pnand %p4724_p7, %p6680_p5  ;;  %p4731_p9 = scmp.lt.s32.totalorder %s4729_s7, %s4723_s15 }
  0xc4   : > { %p4726_p0 = pneg %p4725_p11  ;;  %p4732_p4 = por %p4731_p9, %p4730_p1 }
  0xc6   : > { %p4733_p8 = pnand %p4732_p4, %p4726_p0 }
  0xc8   : > { %4736 = shalt.err (!%p4733_p8)
}
  0xc9   : > { %4459 = dma.hbm_to_vmem [thread:$0]  (%p6680_p5), %s5766_s27, 256, %s5769_s26, %s1283_s19, %s5410_s29, %s5410_s29, %s5411_s1  }
  0xca   : > { %s5795_s28 = scalar_lea.hbm %s6659_s12, %s5727_s13  ;;  %s1324_s22 = scalar_lea.vmem [#allocation12], %s5730_s0 }
  0xcb   : > { %s1331_s15 = sshll.u32 %s1324_s22, 4  ;;  %s5801_s11 = sshll.u32 %s5365_s2, 4  ;;  %s5798_s15 = int_to_ptr.vmem [resolvable:$true] %s1331_s15 }
  0xcc   : > { %s6603_s20 = scalar_lea.sflag [#allocation13], %s5733_s16  ;;  %s4737_s7 = scalar_lea.hbm %s5795_s28, 256 }
  0xcd   : > { %p4738_p10 = scmp.ne.s32.totalorder %s5795_s28, %s4737_s7  ;;  %s4741_s30 = scalar_lea.hbm %s6659_s12, 1280 }
  0xce   : > { %p4742_p2 = scmp.lt.s32.totalorder %s5795_s28, %s6659_s12  ;;  %p4743_p3 = scmp.lt.s32.totalorder %s4741_s30, %s4737_s7 }
  0xcf   : > { %p4739_p12 = pnand %p4738_p10, %p6680_p5 }
  0xd0   : > { %p4744_p6 = por %p4743_p3, %p4742_p2 }
  0xd1   : > { %p4740_p13 = pneg %p4739_p12 }
  0xd3   : > { %p4745_p7 = pnand %p4744_p6, %p4740_p13 }
  0xd5   : > { %4748 = shalt.err (!%p4745_p7)
}
  0xd6   : > { %s4749_s27 = scalar_lea.vmem %s5798_s15, 256  ;;  %s5413_s2 = smov [#allocation12]  }
  0xd7   : > { %p4750_p11 = scmp.ne.s32.totalorder %s5798_s15, %s4749_s27  ;;  %s4753_s26 = sshll.u32 %s5413_s2, 4  ;;  %s4754_s26 = int_to_ptr.vmem [resolvable:$false] %s4753_s26 }
  0xd8   : > { %s4755_s22 = scalar_lea.vmem %s4754_s26, 512  ;;  %p4756_p9 = scmp.lt.s32.totalorder %s5798_s15, %s4754_s26 }
  0xd9   : > { %p4751_p0 = pnand %p4750_p11, %p6680_p5  ;;  %p4757_p4 = scmp.lt.s32.totalorder %s4755_s22, %s4749_s27 }
  0xdb   : > { %p4752_p1 = pneg %p4751_p0  ;;  %p4758_p8 = por %p4757_p4, %p4756_p9 }
  0xdd   : > { %p4759_p10 = pnand %p4758_p8, %p4752_p1 }
  0xdf   : > { %4762 = shalt.err (!%p4759_p10)
}
  0xe0   : > { %4461 = dma.hbm_to_vmem [thread:$0]  (%p6680_p5), %s5795_s28, 256, %s5798_s15, %s6603_s20, %s5410_s29, %s5410_s29, %s5411_s1  }
  0xe1   : > { %s5827_s30 = scalar_lea.hbm %s6664_s4, %s5801_s11  ;;  %s1371_s7 = scalar_lea.vmem [#allocation15], %s5724_s10 }
  0xe2   : > { %s1378_s27 = sshll.u32 %s1371_s7, 4  ;;  %s6604_s2 = scalar_lea.sflag [#allocation16], %s5733_s16  ;;  %s1379_s27 = int_to_ptr.vmem [resolvable:$true] %s1378_s27 }
  0xe3   : > { %s4763_s26 = scalar_lea.hbm %s5827_s30, 16  ;;  %s4767_s22 = scalar_lea.hbm %s6664_s4, 80 }
  0xe4   : > { %p4764_p12 = scmp.ne.s32.totalorder %s5827_s30, %s4763_s26  ;;  %p4768_p3 = scmp.lt.s32.totalorder %s5827_s30, %s6664_s4 }
  0xe5   : > { %p4769_p6 = scmp.lt.s32.totalorder %s4767_s22, %s4763_s26 }
  0xe6   : > { %p4765_p13 = pnand %p4764_p12, %p6680_p5 }
  0xe7   : > { %p4770_p7 = por %p4769_p6, %p4768_p3 }
  0xe8   : > { %p4766_p2 = pneg %p4765_p13 }
  0xea   : > { %p4771_p11 = pnand %p4770_p7, %p4766_p2 }
  0xec   : > { %4774 = shalt.err (!%p4771_p11)
}
  0xed   : > { %s4775_s28 = scalar_lea.vmem %s1379_s27, 16  ;;  %s5414_s15 = smov [#allocation15]  }
  0xee   : > { %p4776_p0 = scmp.ne.s32.totalorder %s1379_s27, %s4775_s28  ;;  %s4779_s7 = sshll.u32 %s5414_s15, 4  ;;  %s4780_s7 = int_to_ptr.vmem [resolvable:$false] %s4779_s7 }
  0xef   : > { %s4781_s20 = scalar_lea.vmem %s4780_s7, 32  ;;  %p4782_p4 = scmp.lt.s32.totalorder %s1379_s27, %s4780_s7 }
  0xf0   : > { %p4777_p1 = pnand %p4776_p0, %p6680_p5  ;;  %p4783_p8 = scmp.lt.s32.totalorder %s4781_s20, %s4775_s28 }
  0xf2   : > { %p4778_p9 = pneg %p4777_p1  ;;  %p4784_p10 = por %p4783_p8, %p4782_p4 }
  0xf4   : > { %p4785_p12 = pnand %p4784_p10, %p4778_p9 }
  0xf6   : > { %4788 = shalt.err (!%p4785_p12)
}
  0xf7   : > { %4463 = dma.hbm_to_vmem [thread:$0]  (%p6680_p5), %s5827_s30, 16, %s1379_s27, %s6604_s2  }
  0xf8   : > { %s5847_s26 = scalar_lea.hbm %s5546_s17, %s5727_s13  ;;  %s1416_s20 = scalar_lea.vmem [#allocation18], %s5730_s0 }
  0xf9   : > { %s1423_s22 = sshll.u32 %s1416_s20, 4  ;;  %s6605_s28 = scalar_lea.sflag [#allocation19], %s5733_s16  ;;  %s5850_s22 = int_to_ptr.vmem [resolvable:$true] %s1423_s22 }
  0xfa   : > { %s4789_s15 = scalar_lea.hbm %s5847_s26, 256  ;;  %s4793_s7 = scalar_lea.hbm %s5546_s17, 1280 }
  0xfb   : > { %p4790_p13 = scmp.ne.s32.totalorder %s5847_s26, %s4789_s15  ;;  %p4794_p6 = scmp.lt.s32.totalorder %s5847_s26, %s5546_s17 }
  0xfc   : > { %p4795_p7 = scmp.lt.s32.totalorder %s4793_s7, %s4789_s15 }
  0xfd   : > { %p4791_p2 = pnand %p4790_p13, %p6680_p5 }
  0xfe   : > { %p4796_p11 = por %p4795_p7, %p4794_p6 }
  0xff   : > { %p4792_p3 = pneg %p4791_p2 }
 0x101   : > { %p4797_p0 = pnand %p4796_p11, %p4792_p3 }
 0x103   : > { %4800 = shalt.err (!%p4797_p0)
}
 0x104   : > { %s4801_s30 = scalar_lea.vmem %s5850_s22, 256  ;;  %s5415_s27 = smov [#allocation18]  }
 0x105   : > { %p4802_p1 = scmp.ne.s32.totalorder %s5850_s22, %s4801_s30  ;;  %s4805_s20 = sshll.u32 %s5415_s27, 4  ;;  %s4806_s20 = int_to_ptr.vmem [resolvable:$false] %s4805_s20 }
 0x106   : > { %s4807_s2 = scalar_lea.vmem %s4806_s20, 512  ;;  %p4808_p8 = scmp.lt.s32.totalorder %s5850_s22, %s4806_s20 }
 0x107   : > { %p4803_p9 = pnand %p4802_p1, %p6680_p5  ;;  %p4809_p10 = scmp.lt.s32.totalorder %s4807_s2, %s4801_s30 }
 0x109   : > { %p4804_p4 = pneg %p4803_p9  ;;  %p4810_p12 = por %p4809_p10, %p4808_p8 }
 0x10b   : > { %p4811_p13 = pnand %p4810_p12, %p4804_p4 }
 0x10d   : > { %4814 = shalt.err (!%p4811_p13)
}
 0x10e   : > { %4465 = dma.hbm_to_vmem [thread:$0]  (%p6680_p5), %s5847_s26, 256, %s5850_s22, %s6605_s28, %s5410_s29, %s5410_s29, %s5411_s1  }
 0x10f   : > { %s5876_s2 = scalar_lea.hbm %s6660_s9, %s5727_s13  ;;  %s1454_s15 = scalar_lea.vmem [#allocation21], %s5730_s0 }
 0x110   : > { %s1461_s7 = sshll.u32 %s1454_s15, 4  ;;  %s6606_s30 = scalar_lea.sflag [#allocation22], %s5733_s16  ;;  %s5879_s7 = int_to_ptr.vmem [resolvable:$true] %s1461_s7 }
 0x111   : > { %s4815_s27 = scalar_lea.hbm %s5876_s2, 256  ;;  %s4819_s20 = scalar_lea.hbm %s6660_s9, 1280 }
 0x112   : > { %p4816_p2 = scmp.ne.s32.totalorder %s5876_s2, %s4815_s27  ;;  %p4820_p7 = scmp.lt.s32.totalorder %s5876_s2, %s6660_s9 }
 0x113   : > { %p4821_p11 = scmp.lt.s32.totalorder %s4819_s20, %s4815_s27 }
 0x114   : > { %p4817_p3 = pnand %p4816_p2, %p6680_p5 }
 0x115   : > { %p4822_p0 = por %p4821_p11, %p4820_p7 }
 0x116   : > { %p4818_p6 = pneg %p4817_p3 }
 0x118   : > { %p4823_p1 = pnand %p4822_p0, %p4818_p6 }
 0x11a   : > { %4826 = shalt.err (!%p4823_p1)
}
 0x11b   : > { %s4827_s26 = scalar_lea.vmem %s5879_s7, 256  ;;  %s5416_s22 = smov [#allocation21]  }
 0x11c   : > { %p4828_p9 = scmp.ne.s32.totalorder %s5879_s7, %s4827_s26  ;;  %s4831_s15 = sshll.u32 %s5416_s22, 4  ;;  %s4832_s15 = int_to_ptr.vmem [resolvable:$false] %s4831_s15 }
 0x11d   : > { %s4833_s28 = scalar_lea.vmem %s4832_s15, 512  ;;  %p4834_p10 = scmp.lt.s32.totalorder %s5879_s7, %s4832_s15 }
 0x11e   : > { %p4829_p4 = pnand %p4828_p9, %p6680_p5  ;;  %p4835_p12 = scmp.lt.s32.totalorder %s4833_s28, %s4827_s26 }
 0x120   : > { %p4830_p8 = pneg %p4829_p4  ;;  %p4836_p13 = por %p4835_p12, %p4834_p10 }
 0x122   : > { %p4837_p2 = pnand %p4836_p13, %p4830_p8 }
 0x124   : > { %4840 = shalt.err (!%p4837_p2)
}
 0x125   : > { %4467 = dma.hbm_to_vmem [thread:$0]  (%p6680_p5), %s5876_s2, 256, %s5879_s7, %s6606_s30, %s5410_s29, %s5410_s29, %s5411_s1  }
 0x126   : > { %s5905_s28 = scalar_lea.hbm %s5566_s21, %s5801_s11  ;;  %s1495_s27 = scalar_lea.vmem [#allocation24], %s5724_s10 }
 0x127   : > { %s1502_s20 = sshll.u32 %s1495_s27, 4  ;;  %s6607_s26 = scalar_lea.sflag [#allocation25], %s5733_s16  ;;  %s1503_s20 = int_to_ptr.vmem [resolvable:$true] %s1502_s20 }
 0x128   : > { %s4841_s22 = scalar_lea.hbm %s5905_s28, 16  ;;  %s4845_s15 = scalar_lea.hbm %s5566_s21, 80 }
 0x129   : > { %p4842_p3 = scmp.ne.s32.totalorder %s5905_s28, %s4841_s22  ;;  %p4846_p11 = scmp.lt.s32.totalorder %s5905_s28, %s5566_s21 }
 0x12a   : > { %p4847_p0 = scmp.lt.s32.totalorder %s4845_s15, %s4841_s22 }
 0x12b   : > { %p4843_p6 = pnand %p4842_p3, %p6680_p5 }
 0x12c   : > { %p4848_p1 = por %p4847_p0, %p4846_p11 }
 0x12d   : > { %p4844_p7 = pneg %p4843_p6 }
 0x12f   : > { %p4849_p9 = pnand %p4848_p1, %p4844_p7 }
 0x131   : > { %4852 = shalt.err (!%p4849_p9)
}
 0x132   : > { %s4853_s2 = scalar_lea.vmem %s1503_s20, 16  ;;  %s5417_s7 = smov [#allocation24]  }
 0x133   : > { %p4854_p4 = scmp.ne.s32.totalorder %s1503_s20, %s4853_s2  ;;  %s4857_s27 = sshll.u32 %s5417_s7, 4  ;;  %s4858_s27 = int_to_ptr.vmem [resolvable:$false] %s4857_s27 }
 0x134   : > { %s4859_s30 = scalar_lea.vmem %s4858_s27, 32  ;;  %p4860_p12 = scmp.lt.s32.totalorder %s1503_s20, %s4858_s27 }
 0x135   : > { %p4855_p8 = pnand %p4854_p4, %p6680_p5  ;;  %p4861_p13 = scmp.lt.s32.totalorder %s4859_s30, %s4853_s2 }
 0x137   : > { %p4856_p10 = pneg %p4855_p8  ;;  %p4862_p2 = por %p4861_p13, %p4860_p12 }
 0x139   : > { %p4863_p3 = pnand %p4862_p2, %p4856_p10 }
 0x13b   : > { %4866 = shalt.err (!%p4863_p3)
}
 0x13c   : > { %4469 = dma.hbm_to_vmem [thread:$0]  (%p6680_p5), %s5905_s28, 16, %s1503_s20, %s6607_s26  }
 0x13d   : > { %s5925_s22 = scalar_lea.hbm %s5576_s14, %s5801_s11  ;;  %s1533_s30 = scalar_lea.vmem [#allocation27], %s5724_s10 }
 0x13e   : > { %s1540_s15 = sshll.u32 %s1533_s30, 4  ;;  %s6608_s2 = scalar_lea.sflag [#allocation28], %s5733_s16  ;;  %s1541_s15 = int_to_ptr.vmem [resolvable:$true] %s1540_s15 }
 0x13f   : > { %s4867_s7 = scalar_lea.hbm %s5925_s22, 16  ;;  %s4871_s27 = scalar_lea.hbm %s5576_s14, 80 }
 0x140   : > { %p4868_p6 = scmp.ne.s32.totalorder %s5925_s22, %s4867_s7  ;;  %p4872_p0 = scmp.lt.s32.totalorder %s5925_s22, %s5576_s14 }
 0x141   : > { %p4873_p1 = scmp.lt.s32.totalorder %s4871_s27, %s4867_s7 }
 0x142   : > { %p4869_p7 = pnand %p4868_p6, %p6680_p5 }
 0x143   : > { %p4874_p9 = por %p4873_p1, %p4872_p0 }
 0x144   : > { %p4870_p11 = pneg %p4869_p7 }
 0x146   : > { %p4875_p4 = pnand %p4874_p9, %p4870_p11 }
 0x148   : > { %4878 = shalt.err (!%p4875_p4)
}
 0x149   : > { %s4879_s28 = scalar_lea.vmem %s1541_s15, 16  ;;  %s5418_s20 = smov [#allocation27]  }
 0x14a   : > { %p4880_p8 = scmp.ne.s32.totalorder %s1541_s15, %s4879_s28  ;;  %s4883_s30 = sshll.u32 %s5418_s20, 4  ;;  %s4884_s30 = int_to_ptr.vmem [resolvable:$false] %s4883_s30 }
 0x14b   : > { %s4885_s26 = scalar_lea.vmem %s4884_s30, 32  ;;  %p4886_p13 = scmp.lt.s32.totalorder %s1541_s15, %s4884_s30 }
 0x14c   : > { %p4881_p10 = pnand %p4880_p8, %p6680_p5  ;;  %p4887_p2 = scmp.lt.s32.totalorder %s4885_s26, %s4879_s28 }
 0x14e   : > { %p4882_p12 = pneg %p4881_p10  ;;  %p4888_p3 = por %p4887_p2, %p4886_p13 }
 0x150   : > { %p4889_p6 = pnand %p4888_p3, %p4882_p12 }
 0x152   : > { %4892 = shalt.err (!%p4889_p6)
}
 0x153   : > { %4471 = dma.hbm_to_vmem [thread:$0]  (%p6680_p5), %s5925_s22, 16, %s1541_s15, %s6608_s2  }
 0x154   : > { %s5945_s7 = scalar_lea.hbm %s6665_s3, %s5727_s13  ;;  %s1572_s26 = scalar_lea.vmem [#allocation30], %s5730_s0 }
 0x155   : > { %s1579_s27 = sshll.u32 %s1572_s26, 4  ;;  %s6609_s28 = scalar_lea.sflag [#allocation31], %s5733_s16  ;;  %s5948_s27 = int_to_ptr.vmem [resolvable:$true] %s1579_s27 }
 0x156   : > { %s4893_s20 = scalar_lea.hbm %s5945_s7, 256  ;;  %s4897_s30 = scalar_lea.hbm %s6665_s3, 1280 }
 0x157   : > { %p4894_p7 = scmp.ne.s32.totalorder %s5945_s7, %s4893_s20  ;;  %p4898_p1 = scmp.lt.s32.totalorder %s5945_s7, %s6665_s3 }
 0x158   : > { %p4899_p9 = scmp.lt.s32.totalorder %s4897_s30, %s4893_s20 }
 0x159   : > { %p4895_p11 = pnand %p4894_p7, %p6680_p5 }
 0x15a   : > { %p4900_p4 = por %p4899_p9, %p4898_p1 }
 0x15b   : > { %p4896_p0 = pneg %p4895_p11 }
 0x15d   : > { %p4901_p8 = pnand %p4900_p4, %p4896_p0 }
 0x15f   : > { %4904 = shalt.err (!%p4901_p8)
}
 0x160   : > { %s4905_s22 = scalar_lea.vmem %s5948_s27, 256  ;;  %s5419_s15 = smov [#allocation30]  }
 0x161   : > { %p4906_p10 = scmp.ne.s32.totalorder %s5948_s27, %s4905_s22  ;;  %s4909_s26 = sshll.u32 %s5419_s15, 4  ;;  %s4910_s26 = int_to_ptr.vmem [resolvable:$false] %s4909_s26 }
 0x162   : > { %s4911_s2 = scalar_lea.vmem %s4910_s26, 512  ;;  %p4912_p2 = scmp.lt.s32.totalorder %s5948_s27, %s4910_s26 }
 0x163   : > { %p4907_p12 = pnand %p4906_p10, %p6680_p5  ;;  %p4913_p3 = scmp.lt.s32.totalorder %s4911_s2, %s4905_s22 }
 0x165   : > { %p4908_p13 = pneg %p4907_p12  ;;  %p4914_p6 = por %p4913_p3, %p4912_p2 }
 0x167   : > { %p4915_p7 = pnand %p4914_p6, %p4908_p13 }
 0x169   : > { %4918 = shalt.err (!%p4915_p7)
}
 0x16a   : > { %4473 = dma.hbm_to_vmem [thread:$0]  (%p6680_p5), %s5945_s7, 256, %s5948_s27, %s6609_s28, %s5410_s29, %s5410_s29, %s5411_s1  }
 0x16b   : > { %s5974_s2 = scalar_lea.hbm %s6663_s5, %s5727_s13  ;;  %s1610_s20 = scalar_lea.vmem [#allocation33], %s5730_s0 }
 0x16c   : > { %s1617_s30 = sshll.u32 %s1610_s20, 4  ;;  %s6610_s22 = scalar_lea.sflag [#allocation34], %s5733_s16  ;;  %s5977_s30 = int_to_ptr.vmem [resolvable:$true] %s1617_s30 }
 0x16d   : > { %s4919_s15 = scalar_lea.hbm %s5974_s2, 256  ;;  %s4923_s26 = scalar_lea.hbm %s6663_s5, 1280 }
 0x16e   : > { %p4920_p11 = scmp.ne.s32.totalorder %s5974_s2, %s4919_s15  ;;  %p4924_p9 = scmp.lt.s32.totalorder %s5974_s2, %s6663_s5 }
 0x16f   : > { %p4925_p4 = scmp.lt.s32.totalorder %s4923_s26, %s4919_s15 }
 0x170   : > { %p4921_p0 = pnand %p4920_p11, %p6680_p5 }
 0x171   : > { %p4926_p8 = por %p4925_p4, %p4924_p9 }
 0x172   : > { %p4922_p1 = pneg %p4921_p0 }
 0x174   : > { %p4927_p10 = pnand %p4926_p8, %p4922_p1 }
 0x176   : > { %4930 = shalt.err (!%p4927_p10)
}
 0x177   : > { %s4931_s7 = scalar_lea.vmem %s5977_s30, 256  ;;  %s5420_s27 = smov [#allocation33]  }
 0x178   : > { %p4932_p12 = scmp.ne.s32.totalorder %s5977_s30, %s4931_s7  ;;  %s4935_s20 = sshll.u32 %s5420_s27, 4  ;;  %s4936_s20 = int_to_ptr.vmem [resolvable:$false] %s4935_s20 }
 0x179   : > { %s4937_s28 = scalar_lea.vmem %s4936_s20, 512  ;;  %p4938_p3 = scmp.lt.s32.totalorder %s5977_s30, %s4936_s20 }
 0x17a   : > { %p4933_p13 = pnand %p4932_p12, %p6680_p5  ;;  %p4939_p6 = scmp.lt.s32.totalorder %s4937_s28, %s4931_s7 }
 0x17c   : > { %p4934_p2 = pneg %p4933_p13  ;;  %p4940_p7 = por %p4939_p6, %p4938_p3 }
 0x17e   : > { %p4941_p11 = pnand %p4940_p7, %p4934_p2 }
 0x180   : > { %4944 = shalt.err (!%p4941_p11)
}
 0x181   : > { %4475 = dma.hbm_to_vmem [thread:$0]  (%p6680_p5), %s5974_s2, 256, %s5977_s30, %s6610_s22, %s5410_s29, %s5410_s29, %s5411_s1  }
 0x182   : > { %s6003_s28 = scalar_lea.hbm %s5616_s25, %s5801_s11  ;;  %s1659_s15 = scalar_lea.vmem [#allocation36], %s5724_s10 }
 0x183   : > { %s1666_s26 = sshll.u32 %s1659_s15, 4  ;;  %s6611_s7 = scalar_lea.sflag [#allocation37], %s5733_s16  ;;  %s1667_s26 = int_to_ptr.vmem [resolvable:$true] %s1666_s26 }
 0x184   : > { %s4945_s27 = scalar_lea.hbm %s6003_s28, 16  ;;  %s4949_s20 = scalar_lea.hbm %s5616_s25, 80 }
 0x185   : > { %p4946_p0 = scmp.ne.s32.totalorder %s6003_s28, %s4945_s27  ;;  %p4950_p4 = scmp.lt.s32.totalorder %s6003_s28, %s5616_s25 }
 0x186   : > { %p4951_p8 = scmp.lt.s32.totalorder %s4949_s20, %s4945_s27 }
 0x187   : > { %p4947_p1 = pnand %p4946_p0, %p6680_p5 }
 0x188   : > { %p4952_p10 = por %p4951_p8, %p4950_p4 }
 0x189   : > { %p4948_p9 = pneg %p4947_p1 }
 0x18b   : > { %p4953_p12 = pnand %p4952_p10, %p4948_p9 }
 0x18d   : > { %4956 = shalt.err (!%p4953_p12)
}
 0x18e   : > { %s4957_s2 = scalar_lea.vmem %s1667_s26, 16  ;;  %s5421_s30 = smov [#allocation36]  }
 0x18f   : > { %p4958_p13 = scmp.ne.s32.totalorder %s1667_s26, %s4957_s2  ;;  %s4961_s15 = sshll.u32 %s5421_s30, 4  ;;  %s4962_s15 = int_to_ptr.vmem [resolvable:$false] %s4961_s15 }
 0x190   : > { %s4963_s22 = scalar_lea.vmem %s4962_s15, 32  ;;  %p4964_p6 = scmp.lt.s32.totalorder %s1667_s26, %s4962_s15 }
 0x191   : > { %p4959_p2 = pnand %p4958_p13, %p6680_p5  ;;  %p4965_p7 = scmp.lt.s32.totalorder %s4963_s22, %s4957_s2 }
 0x193   : > { %p4960_p3 = pneg %p4959_p2  ;;  %p4966_p11 = por %p4965_p7, %p4964_p6 }
 0x195   : > { %p4967_p0 = pnand %p4966_p11, %p4960_p3 }
 0x197   : > { %4970 = shalt.err (!%p4967_p0)
}
 0x198   : > { %4477 = dma.hbm_to_vmem [thread:$0]  (%p6680_p5), %s6003_s28, 16, %s1667_s26, %s6611_s7  }
 0x199   : > { %s6023_s27 = scalar_lea.hbm %s6661_s8, %s5727_s13  ;;  %s1221_s22 = scalar_lea.vmem [#allocation4], %s5730_s0 }
 0x19a   : > { %s1228_s20 = sshll.u32 %s1221_s22, 4  ;;  %s1218_s2 = scalar_lea.sflag [#allocation5], %s5724_s10  ;;  %s6026_s20 = int_to_ptr.vmem [resolvable:$true] %s1228_s20 }
 0x19b   : > { %s4971_s30 = scalar_lea.hbm %s6023_s27, 256  ;;  %s4975_s15 = scalar_lea.hbm %s6661_s8, 1280 }
 0x19c   : > { %p4972_p1 = scmp.ne.s32.totalorder %s6023_s27, %s4971_s30  ;;  %p4976_p8 = scmp.lt.s32.totalorder %s6023_s27, %s6661_s8 }
 0x19d   : > { %p4977_p10 = scmp.lt.s32.totalorder %s4975_s15, %s4971_s30 }
 0x19e   : > { %p4973_p9 = pnand %p4972_p1, %p6680_p5 }
 0x19f   : > { %p4978_p12 = por %p4977_p10, %p4976_p8 }
 0x1a0   : > { %p4974_p4 = pneg %p4973_p9 }
 0x1a2   : > { %p4979_p13 = pnand %p4978_p12, %p4974_p4 }
 0x1a4   : > { %4982 = shalt.err (!%p4979_p13)
}
 0x1a5   : > { %s4983_s28 = scalar_lea.vmem %s6026_s20, 256  ;;  %s5422_s26 = smov [#allocation4]  }
 0x1a6   : > { %p4984_p2 = scmp.ne.s32.totalorder %s6026_s20, %s4983_s28  ;;  %s4987_s22 = sshll.u32 %s5422_s26, 4  ;;  %s4988_s22 = int_to_ptr.vmem [resolvable:$false] %s4987_s22 }
 0x1a7   : > { %s4989_s7 = scalar_lea.vmem %s4988_s22, 512  ;;  %p4990_p7 = scmp.lt.s32.totalorder %s6026_s20, %s4988_s22 }
 0x1a8   : > { %p4985_p3 = pnand %p4984_p2, %p6680_p5  ;;  %p4991_p11 = scmp.lt.s32.totalorder %s4989_s7, %s4983_s28 }
 0x1aa   : > { %p4986_p6 = pneg %p4985_p3  ;;  %p4992_p0 = por %p4991_p11, %p4990_p7 }
 0x1ac   : > { %p4993_p1 = pnand %p4992_p0, %p4986_p6 }
 0x1ae   : > { %4996 = shalt.err (!%p4993_p1)
}
 0x1af   : > { %4456 = dma.hbm_to_vmem [thread:$0]  (%p6680_p5), %s6023_s27, 256, %s6026_s20, %s1218_s2, %s5410_s29, %s5410_s29, %s5411_s1  }
 0x1b0   : > { %s1273_s30 = scalar_lea.hbm %s5501_s24, %s5801_s11  ;;  %s1268_s15 = scalar_lea.vmem [#allocation8], %s5724_s10 }
 0x1b1   : > { %s1275_s7 = sshll.u32 %s1268_s15, 4  ;;  %s4997_s28 = scalar_lea.hbm %s1273_s30, 16  ;;  %s1276_s7 = int_to_ptr.vmem [resolvable:$true] %s1275_s7 }
 0x1b2   : > { %p4998_p9 = scmp.ne.s32.totalorder %s1273_s30, %s4997_s28  ;;  %s5001_s26 = scalar_lea.hbm %s5501_s24, 80 }
 0x1b3   : > { %p5002_p10 = scmp.lt.s32.totalorder %s1273_s30, %s5501_s24  ;;  %p5003_p12 = scmp.lt.s32.totalorder %s5001_s26, %s4997_s28 }
 0x1b4   : > { %p4999_p4 = pnand %p4998_p9, %p6680_p5 }
 0x1b5   : > { %p5004_p13 = por %p5003_p12, %p5002_p10 }
 0x1b6   : > { %p5000_p8 = pneg %p4999_p4 }
 0x1b8   : > { %p5005_p2 = pnand %p5004_p13, %p5000_p8 }
 0x1ba   : > { %5008 = shalt.err (!%p5005_p2)
}
 0x1bb   : > { %s5009_s22 = scalar_lea.vmem %s1276_s7, 16  ;;  %s5423_s27 = smov [#allocation8]  }
 0x1bc   : > { %p5010_p3 = scmp.ne.s32.totalorder %s1276_s7, %s5009_s22  ;;  %s5013_s20 = sshll.u32 %s5423_s27, 4  ;;  %s5014_s20 = int_to_ptr.vmem [resolvable:$false] %s5013_s20 }
 0x1bd   : > { %s5015_s2 = scalar_lea.vmem %s5014_s20, 32  ;;  %p5016_p11 = scmp.lt.s32.totalorder %s1276_s7, %s5014_s20 }
 0x1be   : > { %p5011_p6 = pnand %p5010_p3, %p6680_p5  ;;  %p5017_p0 = scmp.lt.s32.totalorder %s5015_s2, %s5009_s22 }
 0x1c0   : > { %p5012_p7 = pneg %p5011_p6  ;;  %p5018_p1 = por %p5017_p0, %p5016_p11 }
 0x1c2   : > { %p5019_p9 = pnand %p5018_p1, %p5012_p7 }
 0x1c4   : > { %5022 = shalt.err (!%p5019_p9)
}
 0x1c5   : > { %s6682_s15 = scalar_lea.sflag [#allocation7], %s5733_s16  ;;  %s1311_s28 = scalar_lea.hbm %s6662_s6, %s5801_s11 }
 0x1c6   : > { %4458 = dma.hbm_to_vmem [thread:$0]  (%p6680_p5), %s1273_s30, 16, %s1276_s7, %s6682_s15  }
 0x1c7   : > { %s1306_s26 = scalar_lea.vmem [#allocation11], %s5724_s10  ;;  %s5023_s20 = scalar_lea.hbm %s1311_s28, 16 }
 0x1c8   : > { %s1313_s27 = sshll.u32 %s1306_s26, 4  ;;  %p5024_p4 = scmp.ne.s32.totalorder %s1311_s28, %s5023_s20  ;;  %s1314_s27 = int_to_ptr.vmem [resolvable:$true] %s1313_s27 }
 0x1c9   : > { %s5027_s22 = scalar_lea.hbm %s6662_s6, 80  ;;  %p5028_p12 = scmp.lt.s32.totalorder %s1311_s28, %s6662_s6 }
 0x1ca   : > { %p5025_p8 = pnand %p5024_p4, %p6680_p5  ;;  %p5029_p13 = scmp.lt.s32.totalorder %s5027_s22, %s5023_s20 }
 0x1cc   : > { %p5026_p10 = pneg %p5025_p8  ;;  %p5030_p2 = por %p5029_p13, %p5028_p12 }
 0x1ce   : > { %p5031_p3 = pnand %p5030_p2, %p5026_p10 }
 0x1d0   : > { %5034 = shalt.err (!%p5031_p3)
}
 0x1d1   : > { %s5035_s2 = scalar_lea.vmem %s1314_s27, 16  ;;  %s5424_s30 = smov [#allocation11]  }
 0x1d2   : > { %p5036_p6 = scmp.ne.s32.totalorder %s1314_s27, %s5035_s2  ;;  %s5039_s7 = sshll.u32 %s5424_s30, 4  ;;  %s5040_s7 = int_to_ptr.vmem [resolvable:$false] %s5039_s7 }
 0x1d3   : > { %s5041_s15 = scalar_lea.vmem %s5040_s7, 32  ;;  %p5042_p0 = scmp.lt.s32.totalorder %s1314_s27, %s5040_s7 }
 0x1d4   : > { %p5037_p7 = pnand %p5036_p6, %p6680_p5  ;;  %p5043_p1 = scmp.lt.s32.totalorder %s5041_s15, %s5035_s2 }
 0x1d6   : > { %p5038_p11 = pneg %p5037_p7  ;;  %p5044_p9 = por %p5043_p1, %p5042_p0 }
 0x1d8   : > { %p5045_p4 = pnand %p5044_p9, %p5038_p11 }
 0x1da   : > { %5048 = shalt.err (!%p5045_p4)
}
 0x1db   : > { %s6683_s26 = sld [smem:[#allocation70_spill]]  ;;  %s1351_s22 = scalar_lea.vmem [#allocation14], %s5730_s0 }
 0x1dc   : > { %4460 = dma.hbm_to_vmem [thread:$0]  (%p6680_p5), %s1311_s28, 16, %s1314_s27, %s1283_s19  }
 0x1dd   : > { %s1358_s2 = sshll.u32 %s1351_s22, 4  ;;  %s1359_s2 = int_to_ptr.vmem [resolvable:$true] %s1358_s2 }
 0x1e1   : > { %s6076_s20 = scalar_lea.hbm %s6683_s26, %s5727_s13  ;;  %s5053_s7 = scalar_lea.hbm %s6683_s26, 1280 }
 0x1e2   : > { %s5049_s30 = scalar_lea.hbm %s6076_s20, 256  ;;  %p5054_p13 = scmp.lt.s32.totalorder %s6076_s20, %s6683_s26 }
 0x1e3   : > { %p5050_p8 = scmp.ne.s32.totalorder %s6076_s20, %s5049_s30  ;;  %p5055_p2 = scmp.lt.s32.totalorder %s5053_s7, %s5049_s30 }
 0x1e5   : > { %p5051_p10 = pnand %p5050_p8, %p6680_p5  ;;  %p5056_p3 = por %p5055_p2, %p5054_p13 }
 0x1e7   : > { %p5052_p12 = pneg %p5051_p10 }
 0x1e9   : > { %p5057_p6 = pnand %p5056_p3, %p5052_p12 }
 0x1eb   : > { %5060 = shalt.err (!%p5057_p6)
}
 0x1ec   : > { %s5061_s19 = scalar_lea.vmem %s1359_s2, 256  ;;  %s5425_s28 = smov [#allocation14]  }
 0x1ed   : > { %p5062_p7 = scmp.ne.s32.totalorder %s1359_s2, %s5061_s19  ;;  %s5065_s27 = sshll.u32 %s5425_s28, 4  ;;  %s5066_s27 = int_to_ptr.vmem [resolvable:$false] %s5065_s27 }
 0x1ee   : > { %s5067_s15 = scalar_lea.vmem %s5066_s27, 512  ;;  %p5068_p1 = scmp.lt.s32.totalorder %s1359_s2, %s5066_s27 }
 0x1ef   : > { %p5063_p11 = pnand %p5062_p7, %p6680_p5  ;;  %p5069_p9 = scmp.lt.s32.totalorder %s5067_s15, %s5061_s19 }
 0x1f1   : > { %p5064_p0 = pneg %p5063_p11  ;;  %p5070_p4 = por %p5069_p9, %p5068_p1 }
 0x1f3   : > { %p5071_p8 = pnand %p5070_p4, %p5064_p0 }
 0x1f5   : > { %5074 = shalt.err (!%p5071_p8)
}
 0x1f6   : > { %s6684_s22 = scalar_lea.sflag [#allocation13], %s5733_s16  ;;  %s6685_s30 = sld [smem:[#allocation72_spill]] }
 0x1f7   : > { %4462 = dma.hbm_to_vmem [thread:$0]  (%p6680_p5), %s6076_s20, 256, %s1359_s2, %s6684_s22, %s5410_s29, %s5410_s29, %s5411_s1  }
 0x1f8   : > { %s1389_s19 = scalar_lea.vmem [#allocation17], %s5730_s0 }
 0x1f9   : > { %s1396_s28 = sshll.u32 %s1389_s19, 4  ;;  %s1397_s28 = int_to_ptr.vmem [resolvable:$true] %s1396_s28 }
 0x1fc   : > { %s6098_s7 = scalar_lea.hbm %s6685_s30, %s5727_s13  ;;  %s5079_s15 = scalar_lea.hbm %s6685_s30, 1280 }
 0x1fd   : > { %s5075_s27 = scalar_lea.hbm %s6098_s7, 256  ;;  %p5080_p2 = scmp.lt.s32.totalorder %s6098_s7, %s6685_s30 }
 0x1fe   : > { %p5076_p10 = scmp.ne.s32.totalorder %s6098_s7, %s5075_s27  ;;  %p5081_p3 = scmp.lt.s32.totalorder %s5079_s15, %s5075_s27 }
 0x200   : > { %p5077_p12 = pnand %p5076_p10, %p6680_p5  ;;  %p5082_p6 = por %p5081_p3, %p5080_p2 }
 0x202   : > { %p5078_p13 = pneg %p5077_p12 }
 0x204   : > { %p5083_p7 = pnand %p5082_p6, %p5078_p13 }
 0x206   : > { %5086 = shalt.err (!%p5083_p7)
}
 0x207   : > { %s5087_s20 = scalar_lea.vmem %s1397_s28, 256  ;;  %s5426_s2 = smov [#allocation17]  }
 0x208   : > { %p5088_p11 = scmp.ne.s32.totalorder %s1397_s28, %s5087_s20  ;;  %s5091_s22 = sshll.u32 %s5426_s2, 4  ;;  %s5092_s22 = int_to_ptr.vmem [resolvable:$false] %s5091_s22 }
 0x209   : > { %s5093_s19 = scalar_lea.vmem %s5092_s22, 512  ;;  %p5094_p9 = scmp.lt.s32.totalorder %s1397_s28, %s5092_s22 }
 0x20a   : > { %p5089_p0 = pnand %p5088_p11, %p6680_p5  ;;  %p5095_p4 = scmp.lt.s32.totalorder %s5093_s19, %s5087_s20 }
 0x20c   : > { %p5090_p1 = pneg %p5089_p0  ;;  %p5096_p8 = por %p5095_p4, %p5094_p9 }
 0x20e   : > { %p5097_p10 = pnand %p5096_p8, %p5090_p1 }
 0x210   : > { %5100 = shalt.err (!%p5097_p10)
}
 0x211   : > { %s6686_s27 = scalar_lea.sflag [#allocation16], %s5733_s16  ;;  %s6687_s15 = sld [smem:[#allocation74_spill]] }
 0x212   : > { %4464 = dma.hbm_to_vmem [thread:$0]  (%p6680_p5), %s6098_s7, 256, %s1397_s28, %s6686_s27, %s5410_s29, %s5410_s29, %s5411_s1  }
 0x213   : > { %s1436_s20 = scalar_lea.vmem [#allocation20], %s5724_s10 }
 0x214   : > { %s1443_s22 = sshll.u32 %s1436_s20, 4  ;;  %s1444_s22 = int_to_ptr.vmem [resolvable:$true] %s1443_s22 }
 0x217   : > { %s1441_s2 = scalar_lea.hbm %s6687_s15, %s5801_s11  ;;  %s5105_s3 = scalar_lea.hbm %s6687_s15, 80 }
 0x218   : > { %s5101_s19 = scalar_lea.hbm %s1441_s2, 16  ;;  %p5106_p3 = scmp.lt.s32.totalorder %s1441_s2, %s6687_s15 }
 0x219   : > { %p5102_p12 = scmp.ne.s32.totalorder %s1441_s2, %s5101_s19  ;;  %p5107_p6 = scmp.lt.s32.totalorder %s5105_s3, %s5101_s19 }
 0x21b   : > { %p5103_p13 = pnand %p5102_p12, %p6680_p5  ;;  %p5108_p7 = por %p5107_p6, %p5106_p3 }
 0x21d   : > { %p5104_p2 = pneg %p5103_p13 }
 0x21f   : > { %p5109_p11 = pnand %p5108_p7, %p5104_p2 }
 0x221   : > { %5112 = shalt.err (!%p5109_p11)
}
 0x222   : > { %s5113_s4 = scalar_lea.vmem %s1444_s22, 16  ;;  %s5427_s7 = smov [#allocation20]  }
 0x223   : > { %p5114_p0 = scmp.ne.s32.totalorder %s1444_s22, %s5113_s4  ;;  %s5117_s28 = sshll.u32 %s5427_s7, 4  ;;  %s5118_s28 = int_to_ptr.vmem [resolvable:$false] %s5117_s28 }
 0x224   : > { %s5119_s27 = scalar_lea.vmem %s5118_s28, 32  ;;  %p5120_p4 = scmp.lt.s32.totalorder %s1444_s22, %s5118_s28 }
 0x225   : > { %p5115_p1 = pnand %p5114_p0, %p6680_p5  ;;  %p5121_p8 = scmp.lt.s32.totalorder %s5119_s27, %s5113_s4 }
 0x227   : > { %p5116_p9 = pneg %p5115_p1  ;;  %p5122_p10 = por %p5121_p8, %p5120_p4 }
 0x229   : > { %p5123_p12 = pnand %p5122_p10, %p5116_p9 }
 0x22b   : > { %5126 = shalt.err (!%p5123_p12)
}
 0x22c   : > { %s6688_s3 = scalar_lea.sflag [#allocation19], %s5733_s16  ;;  %s6689_s20 = sld [smem:[#allocation76_spill]] }
 0x22d   : > { %4466 = dma.hbm_to_vmem [thread:$0]  (%p6680_p5), %s1441_s2, 16, %s1444_s22, %s6688_s3  }
 0x22e   : > { %s1475_s4 = scalar_lea.vmem [#allocation23], %s5730_s0 }
 0x22f   : > { %s1482_s7 = sshll.u32 %s1475_s4, 4  ;;  %s1483_s7 = int_to_ptr.vmem [resolvable:$true] %s1482_s7 }
 0x232   : > { %s6133_s19 = scalar_lea.hbm %s6689_s20, %s5727_s13  ;;  %s5131_s27 = scalar_lea.hbm %s6689_s20, 1280 }
 0x233   : > { %s5127_s28 = scalar_lea.hbm %s6133_s19, 256  ;;  %p5132_p6 = scmp.lt.s32.totalorder %s6133_s19, %s6689_s20 }
 0x234   : > { %p5128_p13 = scmp.ne.s32.totalorder %s6133_s19, %s5127_s28  ;;  %p5133_p7 = scmp.lt.s32.totalorder %s5131_s27, %s5127_s28 }
 0x236   : > { %p5129_p2 = pnand %p5128_p13, %p6680_p5  ;;  %p5134_p11 = por %p5133_p7, %p5132_p6 }
 0x238   : > { %p5130_p3 = pneg %p5129_p2 }
 0x23a   : > { %p5135_p0 = pnand %p5134_p11, %p5130_p3 }
 0x23c   : > { %5138 = shalt.err (!%p5135_p0)
}
 0x23d   : > { %s5139_s2 = scalar_lea.vmem %s1483_s7, 256  ;;  %s5428_s22 = smov [#allocation23]  }
 0x23e   : > { %p5140_p1 = scmp.ne.s32.totalorder %s1483_s7, %s5139_s2  ;;  %s5143_s3 = sshll.u32 %s5428_s22, 4  ;;  %s5144_s3 = int_to_ptr.vmem [resolvable:$false] %s5143_s3 }
 0x23f   : > { %s5145_s4 = scalar_lea.vmem %s5144_s3, 512  ;;  %p5146_p8 = scmp.lt.s32.totalorder %s1483_s7, %s5144_s3 }
 0x240   : > { %p5141_p9 = pnand %p5140_p1, %p6680_p5  ;;  %p5147_p10 = scmp.lt.s32.totalorder %s5145_s4, %s5139_s2 }
 0x242   : > { %p5142_p4 = pneg %p5141_p9  ;;  %p5148_p12 = por %p5147_p10, %p5146_p8 }
 0x244   : > { %p5149_p13 = pnand %p5148_p12, %p5142_p4 }
 0x246   : > { %5152 = shalt.err (!%p5149_p13)
}
 0x247   : > { %s6690_s28 = scalar_lea.sflag [#allocation22], %s5733_s16  ;;  %s6691_s27 = sld [smem:[#allocation77_spill]] }
 0x248   : > { %4468 = dma.hbm_to_vmem [thread:$0]  (%p6680_p5), %s6133_s19, 256, %s1483_s7, %s6690_s28, %s5410_s29, %s5410_s29, %s5411_s1  }
 0x249   : > { %s1513_s2 = scalar_lea.vmem [#allocation26], %s5730_s0 }
 0x24a   : > { %s1520_s3 = sshll.u32 %s1513_s2, 4  ;;  %s1521_s3 = int_to_ptr.vmem [resolvable:$true] %s1520_s3 }
 0x24d   : > { %s6155_s22 = scalar_lea.hbm %s6691_s27, %s5727_s13  ;;  %s5157_s5 = scalar_lea.hbm %s6691_s27, 1280 }
 0x24e   : > { %s5153_s4 = scalar_lea.hbm %s6155_s22, 256  ;;  %p5158_p7 = scmp.lt.s32.totalorder %s6155_s22, %s6691_s27 }
 0x24f   : > { %p5154_p2 = scmp.ne.s32.totalorder %s6155_s22, %s5153_s4  ;;  %p5159_p11 = scmp.lt.s32.totalorder %s5157_s5, %s5153_s4 }
 0x251   : > { %p5155_p3 = pnand %p5154_p2, %p6680_p5  ;;  %p5160_p0 = por %p5159_p11, %p5158_p7 }
 0x253   : > { %p5156_p6 = pneg %p5155_p3 }
 0x255   : > { %p5161_p1 = pnand %p5160_p0, %p5156_p6 }
 0x257   : > { %5164 = shalt.err (!%p5161_p1)
}
 0x258   : > { %s5165_s19 = scalar_lea.vmem %s1521_s3, 256  ;;  %s5429_s7 = smov [#allocation26]  }
 0x259   : > { %p5166_p9 = scmp.ne.s32.totalorder %s1521_s3, %s5165_s19  ;;  %s5169_s28 = sshll.u32 %s5429_s7, 4  ;;  %s5170_s28 = int_to_ptr.vmem [resolvable:$false] %s5169_s28 }
 0x25a   : > { %s5171_s2 = scalar_lea.vmem %s5170_s28, 512  ;;  %p5172_p10 = scmp.lt.s32.totalorder %s1521_s3, %s5170_s28 }
 0x25b   : > { %p5167_p4 = pnand %p5166_p9, %p6680_p5  ;;  %p5173_p12 = scmp.lt.s32.totalorder %s5171_s2, %s5165_s19 }
 0x25d   : > { %p5168_p8 = pneg %p5167_p4  ;;  %p5174_p13 = por %p5173_p12, %p5172_p10 }
 0x25f   : > { %p5175_p2 = pnand %p5174_p13, %p5168_p8 }
 0x261   : > { %5178 = shalt.err (!%p5175_p2)
}
 0x262   : > { %s6692_s5 = scalar_lea.sflag [#allocation25], %s5733_s16  ;;  %s6693_s4 = sld [smem:[#allocation78_spill]] }
 0x263   : > { %4470 = dma.hbm_to_vmem [thread:$0]  (%p6680_p5), %s6155_s22, 256, %s1521_s3, %s6692_s5, %s5410_s29, %s5410_s29, %s5411_s1  }
 0x264   : > { %s1551_s19 = scalar_lea.vmem [#allocation29], %s5730_s0 }
 0x265   : > { %s1558_s28 = sshll.u32 %s1551_s19, 4  ;;  %s1559_s28 = int_to_ptr.vmem [resolvable:$true] %s1558_s28 }
 0x268   : > { %s6177_s7 = scalar_lea.hbm %s6693_s4, %s5727_s13  ;;  %s5183_s6 = scalar_lea.hbm %s6693_s4, 1280 }
 0x269   : > { %s5179_s2 = scalar_lea.hbm %s6177_s7, 256  ;;  %p5184_p11 = scmp.lt.s32.totalorder %s6177_s7, %s6693_s4 }
 0x26a   : > { %p5180_p3 = scmp.ne.s32.totalorder %s6177_s7, %s5179_s2  ;;  %p5185_p0 = scmp.lt.s32.totalorder %s5183_s6, %s5179_s2 }
 0x26c   : > { %p5181_p6 = pnand %p5180_p3, %p6680_p5  ;;  %p5186_p1 = por %p5185_p0, %p5184_p11 }
 0x26e   : > { %p5182_p7 = pneg %p5181_p6 }
 0x270   : > { %p5187_p9 = pnand %p5186_p1, %p5182_p7 }
 0x272   : > { %5190 = shalt.err (!%p5187_p9)
}
 0x273   : > { %s5191_s22 = scalar_lea.vmem %s1559_s28, 256  ;;  %s5430_s13 = smov [#allocation29]  }
 0x274   : > { %p5192_p4 = scmp.ne.s32.totalorder %s1559_s28, %s5191_s22  ;;  %s5195_s0 = sshll.u32 %s5430_s13, 4  ;;  %s5196_s0 = int_to_ptr.vmem [resolvable:$false] %s5195_s0 }
 0x275   : > { %s5197_s3 = scalar_lea.vmem %s5196_s0, 512  ;;  %p5198_p12 = scmp.lt.s32.totalorder %s1559_s28, %s5196_s0 }
 0x276   : > { %p5193_p8 = pnand %p5192_p4, %p6680_p5  ;;  %p5199_p13 = scmp.lt.s32.totalorder %s5197_s3, %s5191_s22 }
 0x278   : > { %p5194_p10 = pneg %p5193_p8  ;;  %p5200_p2 = por %p5199_p13, %p5198_p12 }
 0x27a   : > { %p5201_p3 = pnand %p5200_p2, %p5194_p10 }
 0x27c   : > { %5204 = shalt.err (!%p5201_p3)
}
 0x27d   : > { %s6694_s6 = scalar_lea.sflag [#allocation28], %s5733_s16  ;;  %s6695_s5 = sld [smem:[#allocation80_spill]] }
 0x27e   : > { %4472 = dma.hbm_to_vmem [thread:$0]  (%p6680_p5), %s6177_s7, 256, %s1559_s28, %s6694_s6, %s5410_s29, %s5410_s29, %s5411_s1  }
 0x27f   : > { %s1592_s2 = scalar_lea.vmem [#allocation32], %s5724_s10 }
 0x280   : > { %s1599_s22 = sshll.u32 %s1592_s2, 4  ;;  %s1600_s22 = int_to_ptr.vmem [resolvable:$true] %s1599_s22 }
 0x283   : > { %s1597_s19 = scalar_lea.hbm %s6695_s5, %s5801_s11  ;;  %s5209_s0 = scalar_lea.hbm %s6695_s5, 80 }
 0x284   : > { %s5205_s13 = scalar_lea.hbm %s1597_s19, 16  ;;  %p5210_p0 = scmp.lt.s32.totalorder %s1597_s19, %s6695_s5 }
 0x285   : > { %p5206_p6 = scmp.ne.s32.totalorder %s1597_s19, %s5205_s13  ;;  %p5211_p1 = scmp.lt.s32.totalorder %s5209_s0, %s5205_s13 }
 0x287   : > { %p5207_p7 = pnand %p5206_p6, %p6680_p5  ;;  %p5212_p9 = por %p5211_p1, %p5210_p0 }
 0x289   : > { %p5208_p11 = pneg %p5207_p7 }
 0x28b   : > { %p5213_p4 = pnand %p5212_p9, %p5208_p11 }
 0x28d   : > { %5216 = shalt.err (!%p5213_p4)
}
 0x28e   : > { %s5217_s3 = scalar_lea.vmem %s1600_s22, 16  ;;  %s5431_s29 = smov [#allocation32]  }
 0x28f   : > { %p5218_p8 = scmp.ne.s32.totalorder %s1600_s22, %s5217_s3  ;;  %s5221_s1 = sshll.u32 %s5431_s29, 4  ;;  %s5222_s1 = int_to_ptr.vmem [resolvable:$false] %s5221_s1 }
 0x290   : > { %s5223_s7 = scalar_lea.vmem %s5222_s1, 32  ;;  %p5224_p13 = scmp.lt.s32.totalorder %s1600_s22, %s5222_s1 }
 0x291   : > { %p5219_p10 = pnand %p5218_p8, %p6680_p5  ;;  %p5225_p2 = scmp.lt.s32.totalorder %s5223_s7, %s5217_s3 }
 0x293   : > { %p5220_p12 = pneg %p5219_p10  ;;  %p5226_p3 = por %p5225_p2, %p5224_p13 }
 0x295   : > { %p5227_p6 = pnand %p5226_p3, %p5220_p12 }
 0x297   : > { %5230 = shalt.err (!%p5227_p6)
}
 0x298   : > { %s6696_s28 = scalar_lea.sflag [#allocation31], %s5733_s16  ;;  %s6697_s6 = sld [smem:[#allocation82_spill]] }
 0x299   : > { %4474 = dma.hbm_to_vmem [thread:$0]  (%p6680_p5), %s1597_s19, 16, %s1600_s22, %s6696_s28  }
 0x29a   : > { %s1630_s13 = scalar_lea.vmem [#allocation35], %s5724_s10 }
 0x29b   : > { %s1637_s0 = sshll.u32 %s1630_s13, 4  ;;  %s1638_s0 = int_to_ptr.vmem [resolvable:$true] %s1637_s0 }
 0x29e   : > { %s1635_s2 = scalar_lea.hbm %s6697_s6, %s5801_s11  ;;  %s5235_s3 = scalar_lea.hbm %s6697_s6, 80 }
 0x29f   : > { %s5231_s29 = scalar_lea.hbm %s1635_s2, 16  ;;  %p5236_p1 = scmp.lt.s32.totalorder %s1635_s2, %s6697_s6 }
 0x2a0   : > { %p5232_p7 = scmp.ne.s32.totalorder %s1635_s2, %s5231_s29  ;;  %p5237_p9 = scmp.lt.s32.totalorder %s5235_s3, %s5231_s29 }
 0x2a2   : > { %p5233_p11 = pnand %p5232_p7, %p6680_p5  ;;  %p5238_p4 = por %p5237_p9, %p5236_p1 }
 0x2a4   : > { %p5234_p0 = pneg %p5233_p11 }
 0x2a6   : > { %p5239_p8 = pnand %p5238_p4, %p5234_p0 }
 0x2a8   : > { %5242 = shalt.err (!%p5239_p8)
}
 0x2a9   : > { %s5243_s1 = scalar_lea.vmem %s1638_s0, 16  ;;  %s5432_s19 = smov [#allocation35]  }
 0x2aa   : > { %p5244_p10 = scmp.ne.s32.totalorder %s1638_s0, %s5243_s1  ;;  %s5247_s22 = sshll.u32 %s5432_s19, 4  ;;  %s5248_s22 = int_to_ptr.vmem [resolvable:$false] %s5247_s22 }
 0x2ab   : > { %s5249_s7 = scalar_lea.vmem %s5248_s22, 32  ;;  %p5250_p2 = scmp.lt.s32.totalorder %s1638_s0, %s5248_s22 }
 0x2ac   : > { %p5245_p12 = pnand %p5244_p10, %p6680_p5  ;;  %p5251_p3 = scmp.lt.s32.totalorder %s5249_s7, %s5243_s1 }
 0x2ae   : > { %p5246_p13 = pneg %p5245_p12  ;;  %p5252_p6 = por %p5251_p3, %p5250_p2 }
 0x2b0   : > { %p5253_p7 = pnand %p5252_p6, %p5246_p13 }
 0x2b2   : > { %5256 = shalt.err (!%p5253_p7)
}
 0x2b3   : > { %s6698_s28 = scalar_lea.sflag [#allocation34], %s5733_s16  ;;  %s6699_s13 = sld [smem:[#allocation85_spill]] }
 0x2b4   : > { %4476 = dma.hbm_to_vmem [thread:$0]  (%p6680_p5), %s1635_s2, 16, %s1638_s0, %s6698_s28  }
 0x2b5   : > { %s1676_s3 = scalar_lea.vmem [#allocation38], %s5724_s10 }
 0x2b6   : > { %s1683_s19 = sshll.u32 %s1676_s3, 4  ;;  %s1684_s19 = int_to_ptr.vmem [resolvable:$true] %s1683_s19 }
 0x2b9   : > { %s1681_s29 = scalar_lea.hbm %s6699_s13, %s5801_s11  ;;  %s5261_s1 = scalar_lea.hbm %s6699_s13, 80 }
 0x2ba   : > { %s5257_s22 = scalar_lea.hbm %s1681_s29, 16  ;;  %p5262_p9 = scmp.lt.s32.totalorder %s1681_s29, %s6699_s13 }
 0x2bb   : > { %p5258_p11 = scmp.ne.s32.totalorder %s1681_s29, %s5257_s22  ;;  %p5263_p4 = scmp.lt.s32.totalorder %s5261_s1, %s5257_s22 }
 0x2bd   : > { %p5259_p0 = pnand %p5258_p11, %p6680_p5  ;;  %p5264_p8 = por %p5263_p4, %p5262_p9 }
 0x2bf   : > { %p5260_p1 = pneg %p5259_p0 }
 0x2c1   : > { %p5265_p10 = pnand %p5264_p8, %p5260_p1 }
 0x2c3   : > { %5268 = shalt.err (!%p5265_p10)
}
 0x2c4   : > { %s5269_s7 = scalar_lea.vmem %s1684_s19, 16  ;;  %s5433_s10 = smov [#allocation38]  }
 0x2c5   : > { %p5270_p12 = scmp.ne.s32.totalorder %s1684_s19, %s5269_s7  ;;  %s5273_s11 = sshll.u32 %s5433_s10, 4  ;;  %s5274_s11 = int_to_ptr.vmem [resolvable:$false] %s5273_s11 }
 0x2c6   : > { %s5275_s2 = scalar_lea.vmem %s5274_s11, 32  ;;  %p5276_p3 = scmp.lt.s32.totalorder %s1684_s19, %s5274_s11 }
 0x2c7   : > { %p5271_p13 = pnand %p5270_p12, %p6680_p5  ;;  %p5277_p6 = scmp.lt.s32.totalorder %s5275_s2, %s5269_s7 }
 0x2c9   : > { %p5272_p2 = pneg %p5271_p13  ;;  %p5278_p7 = por %p5277_p6, %p5276_p3 }
 0x2cb   : > { %p5279_p11 = pnand %p5278_p7, %p5272_p2 }
 0x2cd   : > { %5282 = shalt.err (!%p5279_p11)
}
 0x2ce   : > { %s6700_s0 = scalar_lea.sflag [#allocation37], %s5733_s16 }
 0x2cf   : > { %4478 = dma.hbm_to_vmem [thread:$0]  (%p6680_p5), %s1681_s29, 16, %s1684_s19, %s6700_s0  }
 0x2d0 PF: > { %p6701_p0 = scmp.ne.s32.totalorder %s6676_s23, 0 }
 0x2d1   : > { %s6702_s28 = sld [smem:[#allocation91_spill]] (!%p6701_p0) }
 0x2d2   : > { %1692 = sbr.rel (%p6701_p0) target bundleno = 2463 (0x99f), region = 180  ;;  %s6703_s3 = sld [smem:[#allocation96_spill]] (!%p6701_p0) }
 0x2d7   : > { %s6239_s22 = sand.u32 1, %s6702_s28  }
 0x2d8   : > { %s6242_s1 = sshll.u32 %s6239_s22, 4  ;;  %s1695_s7 = scalar_lea.sflag [#allocation5], %s6239_s22 }
 0x2d9   : > { %p6704_p1 = scmp.ne.s32.totalorder %s6703_s3, 0 }
 0x2db   : > { %5300 = dma.done.wait (%p6704_p1), %s1695_s7, 256  }
 0x2dc   : > { %5302 = vsyncadd (%p6704_p1), %s1695_s7, 4294967040  ;;  %s6705_s18 = sld [smem:[#allocation93_spill]] }
 0x2e2   : > { %s6251_s23 = sand.u32 1, %s6705_s18  }
 0x2e3   : > { %s1704_s16 = scalar_lea.sflag [#allocation7], %s6251_s23 }
 0x2e4   : > { %5304 = dma.done.wait (%p6704_p1), %s1704_s16, 272  }
 0x2e5   : > { %5306 = vsyncadd (%p6704_p1), %s1704_s16, 4294967024  ;;  %s1721_s11 = scalar_lea.sflag [#allocation10], %s6251_s23 }
 0x2e6   : > { %5308 = dma.done.wait (%p6704_p1), %s1721_s11, 272  }
 0x2e7   : > { %5310 = vsyncadd (%p6704_p1), %s1721_s11, 4294967024  ;;  %s1738_s28 = scalar_lea.sflag [#allocation13], %s6251_s23 }
 0x2e8   : > { %5312 = dma.done.wait (%p6704_p1), %s1738_s28, 512  }
 0x2e9   : > { %5314 = vsyncadd (%p6704_p1), %s1738_s28, 4294966784  ;;  %s1756_s19 = scalar_lea.sflag [#allocation16], %s6251_s23 }
 0x2ea   : > { %5316 = dma.done.wait (%p6704_p1), %s1756_s19, 272  }
 0x2eb   : > { %5318 = vsyncadd (%p6704_p1), %s1756_s19, 4294967024  ;;  %s1773_s0 = scalar_lea.sflag [#allocation19], %s6251_s23 }
 0x2ec   : > { %5320 = dma.done.wait (%p6704_p1), %s1773_s0, 272  }
 0x2ed   : > { %5322 = vsyncadd (%p6704_p1), %s1773_s0, 4294967024  ;;  %s1790_s2 = scalar_lea.sflag [#allocation22], %s6251_s23 }
 0x2ee   : > { %5324 = dma.done.wait (%p6704_p1), %s1790_s2, 512  }
 0x2ef   : > { %5326 = vsyncadd (%p6704_p1), %s1790_s2, 4294966784  ;;  %s1808_s10 = scalar_lea.sflag [#allocation25], %s6251_s23 }
 0x2f0   : > { %5328 = dma.done.wait (%p6704_p1), %s1808_s10, 272  }
 0x2f1   : > { %5330 = vsyncadd (%p6704_p1), %s1808_s10, 4294967024  ;;  %s1825_s16 = scalar_lea.sflag [#allocation28], %s6251_s23 }
 0x2f2   : > { %5332 = dma.done.wait (%p6704_p1), %s1825_s16, 272  }
 0x2f3   : > { %5334 = vsyncadd (%p6704_p1), %s1825_s16, 4294967024  ;;  %s1842_s11 = scalar_lea.sflag [#allocation31], %s6251_s23 }
 0x2f4   : > { %5336 = dma.done.wait (%p6704_p1), %s1842_s11, 272  }
 0x2f5   : > { %5338 = vsyncadd (%p6704_p1), %s1842_s11, 4294967024  ;;  %s1859_s28 = scalar_lea.sflag [#allocation34], %s6251_s23 }
 0x2f6   : > { %5340 = dma.done.wait (%p6704_p1), %s1859_s28, 272  }
 0x2f7   : > { %5342 = vsyncadd (%p6704_p1), %s1859_s28, 4294967024  ;;  %s1876_s2 = scalar_lea.sflag [#allocation37], %s6251_s23 }
 0x2f8   : > { %5344 = dma.done.wait (%p6704_p1), %s1876_s2, 32  }
 0x2f9   : > { %5346 = vsyncadd (%p6704_p1), %s1876_s2, 4294967264  ;;  %p6706_p5 = scmp.eq.s32.totalorder %s6705_s18, 0 }
 0x2fb   : > { %5348 = dma.done.wait (%p6706_p5), [#allocation40], 32   ;;  %p6707_p9 = pmov %p6706_p5 }
 0x2fc   : > { %s6708_s28 = sld [smem:[#allocation62_spill]]  ;;  %p2109_p4 = scmp.lt.s32.totalorder %s6705_s18, 4 }
 0x2fd   : > { %5350 = vsyncadd (%p6707_p9), [#allocation40], 4294967264  ;;  %s6709_s10 = sld [smem:[#allocation61_spill]]  ;;  %p6715_p8 = scmp.ne.s32.totalorder %s6705_s18, 0 }
 0x2fe   : > { %s6710_s16 = sld [smem:[#allocation64_spill]] }
 0x2ff   : > { %s6711_s23 = sld [smem:[#allocation69_spill]] }
 0x300   : > { %s6712_s19 = sld [smem:[#allocation73_spill]] }
 0x301   : > { %s6713_s0 = sld [smem:[#allocation83_spill]] }
 0x302   : > { %s6714_s7 = sld [smem:[#allocation84_spill]] }
 0x303   : > { %s6336_s3 = scalar_select %p2109_p4, %s6705_s18, 4 }
 0x304   : > { %2136 = sbr.rel (%p6715_p8) target bundleno = 787 (0x313), region = 284  ;;  %s6716_s12 = sld [smem:[#allocation55_spill]] (!%p6715_p8) }
 0x305   : > { %s4243_s2 = sshll.u32 %s6336_s3, 4  ;;  %s2116_s11 = scalar_lea.vmem %s6708_s28, %s6336_s3 }
 0x306   : > { %s2113_s29 = scalar_lea.vmem %s6709_s10, %s4243_s2  ;;  %s2119_s4 = scalar_lea.vmem %s6710_s16, %s6336_s3 }
 0x307   : > { %s2122_s5 = scalar_lea.vmem %s6711_s23, %s6336_s3  ;;  %s2125_s6 = scalar_lea.vmem %s6712_s19, %s6336_s3 }
 0x308   : > { %s2128_s8 = scalar_lea.vmem %s6713_s0, %s6336_s3  ;;  %s2131_s9 = scalar_lea.vmem %s6714_s7, %s6336_s3 }
 0x309   : > { %s6717_s13 = sld [smem:[#allocation56_spill]]  ;;  %vm2139_vm0 = vcmask 261120  }
 0x30a   : > { %v2137_v0 = vld [vmem:[%s6716_s12] sm:$0xf] }
 0x30b   : > { %v2138_v2 = vunpack.c.l.bf16 %v2137_v0 }
 0x30d   : > { %2140 = vst.msk [vmem:[#allocation2] sm:$0xff] %vm2139_vm0, %v2138_v2 }
 0x30f   : > { %v2141_v1 = vld [vmem:[%s6717_s13] sm:$0xf] }
 0x310   : > { %v2142_v3 = vunpack.c.l.bf16 %v2141_v1 }
 0x312   : > { %2143 = vst.msk [vmem:[#allocation3] sm:$0xff] %vm2139_vm0, %v2142_v3 }
 0x313 PF: > { %v4597_v4 = vld [vmem:[%s2113_s29 + $0x8] sm:$0xff]   ;;  %v5434_v5 = vmov 0.0   ;;  %v4598_v6 = vld [vmem:[%s2113_s29] sm:$0xff]   ;;  %vm5435_vm1 = vmmov 0   ;;  %vm2171_vm2 = vcmask 261120   ;;  %s6718_s12 = scalar_lea.vmem [#allocation6], %s6242_s1 }
 0x314   : > { %4300 = vmatprep.subr.bf16.mxu0 %v5434_v5  ;;  %4308 = vmatprep.subr.bf16.mxu1 %v5434_v5  ;;  %v4599_v9 = vld [vmem:[%s6718_s12 + $0x8] sm:$0xff]   ;;  %s6719_s13 = smov %s6718_s12  ;;  %s6720_s18 = scalar_lea.vmem [#allocation12], %s6242_s1  ;;  %v2144_v13 = vld [vmem:[#allocation2] sm:$0xff]  ;;  %vm2693_vm3 = vcmask 1043456   ;;  %vm2689_vm4 = vcmask 64512  }
 0x315   : > { %4301 = vmatpush3.bf16.msra.mxu0 %v4597_v4  ;;  %4304 = vmatprep.mubr.msk.bf16.mxu0 %vm5435_vm1, %v5434_v5  ;;  %v4600_v10 = vld [vmem:[%s6719_s13] sm:$0xff]   ;;  %s6721_s29 = smov %s6720_s18  ;;  %v6385_v14 = vpack.c.bf16 %v2144_v13, %v2144_v13  ;;  %s6722_s7 = scalar_lea.vmem [#allocation17], %s6242_s1 }
 0x316   : > { %4302 = vmatprep.subr.bf16.mxu0 %v5434_v5  ;;  %4312 = vmatprep.mubr.msk.bf16.mxu1 %vm5435_vm1, %v5434_v5  ;;  %v4601_v11 = vld [vmem:[%s6720_s18 + $0x8] sm:$0xff]   ;;  %s6724_s0 = smov %s6722_s7  ;;  %s6725_s10 = scalar_lea.vmem [#allocation4], %s6242_s1 }
 0x317   : > { %v4602_v12 = vld [vmem:[%s6721_s29] sm:$0xff]   ;;  %v4605_v17 = vld [vmem:[%s6725_s10 + $0x8] sm:$0xff]   ;;  %s6726_s16 = smov %s6725_s10  ;;  %s6727_s28 = scalar_lea.vmem [#allocation9], %s6242_s1 }
 0x318   : > { %v4603_v15 = vld [vmem:[%s6722_s7 + $0x8] sm:$0xff]   ;;  %4309 = vmatpush3.bf16.msra.mxu1 %v4605_v17  ;;  %s6728_s23 = scalar_lea.vmem [#allocation8], %s6239_s22  ;;  %s6730_s12 = smov %s6727_s28 }
 0x319   : > { %v2146_v7 = vld [vmem:[#allocation3] sm:$0xff]  ;;  %4303 = vmatpush3.bf16.msra.mxu0 %v4598_v6  ;;  %v4604_v16 = vld [vmem:[%s6724_s0] sm:$0xff]   ;;  %4310 = vmatprep.subr.bf16.mxu1 %v5434_v5  ;;  %s6738_s19 = scalar_lea.vmem [#allocation11], %s6239_s22  ;;  %s6739_s0 = sld [smem:[#allocation58_spill]] }
 0x31a   : > { %v6363_v8 = vpack.c.bf16 %v2146_v7, %v2146_v7  ;;  %4316 = vmatprep.subr.bf16.mxu0 %v5434_v5  ;;  %v4606_v18 = vld [vmem:[%s6726_s16] sm:$0xff]   ;;  %s6741_s10 = sld [smem:[#allocation59_spill]]  ;;  %s6742_s16 = scalar_lea.vmem [#allocation20], %s6239_s22 }
 0x31b   : > { %v4161_v19 = vld [vmem:[%s2116_s11] ss:$0 sm:$0xff]  ;;  %s6731_s11 = scalar_lea.vmem [#allocation14], %s6242_s1  ;;  %s6745_s2 = scalar_lea.vmem [#allocation23], %s6242_s1 }
 0x31c   : > { %4305 = vmatmul.mubr.msk.bf16.vlgmr.msra.gmra.mxu0 %vm2171_vm2, %v6363_v8  ;;  %4311 = vmatpush3.bf16.msra.mxu1 %v4606_v18  ;;  %v4607_v25 = vld [vmem:[%s6727_s28 + $0x8] sm:$0xff]   ;;  %s6733_s18 = smov %s6731_s11  ;;  %s6743_s28 = sld [smem:[#allocation60_spill]] }
 0x31d   : > { %4317 = vmatpush3.bf16.msra.mxu0 %v4599_v9  ;;  %4320 = vmatprep.mubr.msk.bf16.mxu0 %vm5435_vm1, %v5434_v5  ;;  %v4169_v28 = vld [vmem:[%s6728_s23] ss:$0 sm:$0xff]  ;;  %s6744_s23 = scalar_lea.vmem [#allocation21], %s6242_s1  ;;  %s6748_s13 = scalar_lea.vmem [#allocation30], %s6242_s1 }
 0x31e   : > { %4318 = vmatprep.subr.bf16.mxu0 %v5434_v5  ;;  %4324 = vmatprep.subr.bf16.mxu1 %v5434_v5  ;;  %v4608_v30 = vld [vmem:[%s6730_s12] sm:$0xff]   ;;  %s6746_s12 = smov %s6744_s23  ;;  %s6764_s3 = sld [smem:[#allocation93_spill]] }
 0x31f   : > { %v4609_v35 = vld [vmem:[%s6731_s11 + $0x8] sm:$0xff]   ;;  %s6747_s11 = smov %s6745_s2 }
 0x320   : > { %v4177_v38 = vld [vmem:[%s2122_s5] ss:$0 sm:$0xff]  ;;  %s6734_s5 = scalar_lea.vmem [#allocation18], %s6242_s1 }
 0x321   : > { %4319 = vmatpush3.bf16.msra.mxu0 %v4600_v10  ;;  %v4610_v40 = vld [vmem:[%s6733_s18] sm:$0xff]   ;;  %s6736_s7 = smov %s6734_s5  ;;  %s6749_s18 = smov %s6748_s13 }
 0x322   : > { %4332 = vmatprep.subr.bf16.mxu0 %v5434_v5  ;;  %v4611_v45 = vld [vmem:[%s6734_s5 + $0x8] sm:$0xff]   ;;  %s6750_s5 = scalar_lea.vmem [#allocation26], %s6242_s1 }
 0x323   : > { %v4185_v48 = vld [vmem:[%s2125_s6] ss:$0 sm:$0xff]  ;;  %s6737_s6 = sld [smem:[#allocation57_spill]]  ;;  %s6751_s29 = smov %s6750_s5 }
 0x324   : > { %4321 = vmatmul.mubr.msk.bf16.vlgmr.msra.gmra.mxu0 %vm2171_vm2, %v6363_v8  ;;  %v4612_v50 = vld [vmem:[%s6736_s7] sm:$0xff]   ;;  %s6752_s7 = scalar_lea.vmem [#allocation24], %s6239_s22  ;;  %p4219_p10 = scmp.ne.s32.totalorder %s6764_s3, 4 }
 0x325   : > { %4333 = vmatpush3.bf16.msra.mxu0 %v4601_v11  ;;  %4336 = vmatprep.mubr.msk.bf16.mxu0 %vm5435_vm1, %v5434_v5  ;;  %v4165_v57 = vld [vmem:[%s2119_s4] ss:$0 sm:$0xff]  ;;  %s6740_s4 = scalar_lea.vmem [#allocation15], %s6239_s22 }
 0x326   : > { %4334 = vmatprep.subr.bf16.mxu0 %v5434_v5  ;;  %v4173_v1 = vld [vmem:[%s6738_s19] ss:$0 sm:$0xff] }
 0x327   : > { %v4181_v13 = vld [vmem:[%s6740_s4] ss:$0 sm:$0xff] }
 0x329   : > { %4335 = vmatpush3.bf16.msra.mxu0 %v4602_v12  ;;  %v2687_v4 = vld [vmem:[%s6737_s6] sm:$0xf]  ;;  %s6753_s6 = scalar_lea.vmem [#allocation29], %s6242_s1 }
 0x32a   : > { %4348 = vmatprep.subr.bf16.mxu0 %v5434_v5  ;;  %s6754_s19 = smov %s6753_s6 }
 0x32c   : > { %4337 = vmatmul.mubr.msk.bf16.vlgmr.msra.gmra.mxu0 %vm2171_vm2, %v6385_v14 }
 0x32d   : > { %4349 = vmatpush3.bf16.msra.mxu0 %v4603_v15  ;;  %4352 = vmatprep.mubr.msk.bf16.mxu0 %vm5435_vm1, %v5434_v5 }
 0x32e   : > { %4350 = vmatprep.subr.bf16.mxu0 %v5434_v5 }
 0x331   : > { %4351 = vmatpush3.bf16.msra.mxu0 %v4604_v16  ;;  %v2688_v16 = vld [vmem:[%s6739_s0] sm:$0xf]  ;;  %s6755_s0 = scalar_lea.vmem [#allocation33], %s6242_s1  ;;  %s6758_s1 = scalar_lea.vmem [#allocation32], %s6239_s22 }
 0x332   : > { %4364 = vmatprep.subr.bf16.mxu0 %v5434_v5  ;;  %s6756_s4 = smov %s6755_s0 }
 0x334   : > { %4353 = vmatmul.mubr.msk.bf16.vlgmr.msra.gmra.mxu0 %vm2171_vm2, %v6385_v14 }
 0x335   : > { %4366 = vmatprep.mubr.msk.bf16.mxu0 %vm5435_vm1, %v5434_v5 }
 0x3dc   : > { %v2209_v20 = vpop.f32.mrf.mxu0 }
 0x3dd   : > { %v2210_v21 = vadd.f32 %v4161_v19, %v2209_v20 }
 0x3de   : > { %v4306_v22 = vpop.f32.mrf.mxu0 }
 0x3df   : > { %v2215_v23 = vmax.f32 %v2210_v21, 0.0 }
 0x3e0   : > { %v2212_v24 = vpop.f32.mrf.mxu0 }
 0x3e1   : > { %v2216_v26 = vpack.c.bf16 %v2215_v23, %v2215_v23  ;;  %v4189_v24 = vld [vmem:[%s6742_s16] ss:$0 sm:$0xff] }
 0x3e2   : > { %v4307_v27 = vpop.f32.mrf.mxu0 }
 0x3e3   : > { %4313 = vmatmul.mubr.msk.bf16.vlgmr.msra.gmra.mxu1 %vm2171_vm2, %v2216_v26  ;;  %v2784_v27 = vld [vmem:[%s6741_s10] sm:$0xf]  ;;  %s6757_s10 = scalar_lea.vmem [#allocation27], %s6239_s22 }
 0x3e4   : > { %v2342_v29 = vpop.f32.mrf.mxu0  ;;  %4325 = vmatpush3.bf16.msra.mxu1 %v4607_v25  ;;  %4328 = vmatprep.mubr.msk.bf16.mxu1 %vm5435_vm1, %v5434_v5 }
 0x3e5   : > { %v2343_v31 = vadd.f32 %v4169_v28, %v2342_v29  ;;  %4326 = vmatprep.subr.bf16.mxu1 %v5434_v5  ;;  %v4613_v28 = vld [vmem:[%s6744_s23 + $0x8] sm:$0xff]   ;;  %s6761_s23 = scalar_lea.vmem [#allocation35], %s6239_s22 }
 0x3e6   : > { %v4322_v32 = vpop.f32.mrf.mxu0 }
 0x3e7   : > { %v2348_v33 = vmax.f32 %v2343_v31, 0.0 }
 0x3e8   : > { %v2345_v34 = vpop.f32.mrf.mxu0  ;;  %4327 = vmatpush3.bf16.msra.mxu1 %v4608_v30 }
 0x3e9   : > { %v2349_v36 = vpack.c.bf16 %v2348_v33, %v2348_v33  ;;  %4340 = vmatprep.subr.bf16.mxu1 %v5434_v5 }
 0x3ea   : > { %v4323_v37 = vpop.f32.mrf.mxu0 }
 0x3eb   : > { %4329 = vmatmul.mubr.msk.bf16.vlgmr.msra.gmra.mxu1 %vm2171_vm2, %v2349_v36  ;;  %v2785_v36 = vld [vmem:[%s6743_s28] sm:$0xf] }
 0x3ec   : > { %v2478_v39 = vpop.f32.mrf.mxu0  ;;  %4341 = vmatpush3.bf16.msra.mxu1 %v4609_v35  ;;  %4344 = vmatprep.mubr.msk.bf16.mxu1 %vm5435_vm1, %v5434_v5  ;;  %v4614_v37 = vld [vmem:[%s6745_s2 + $0x8] sm:$0xff]   ;;  %s6765_s2 = sld [smem:[#allocation86_spill]] (!%p4219_p10) }
 0x3ed   : > { %v2479_v41 = vadd.f32 %v4177_v38, %v2478_v39  ;;  %4342 = vmatprep.subr.bf16.mxu1 %v5434_v5  ;;  %v4615_v38 = vld [vmem:[%s6746_s12] sm:$0xff]  }
 0x3ee   : > { %v4338_v42 = vpop.f32.mrf.mxu0  ;;  %v4616_v39 = vld [vmem:[%s6747_s11] sm:$0xff]   ;;  %s6767_s11 = sld [smem:[#allocation88_spill]] (!%p4219_p10) }
 0x3ef   : > { %v2484_v43 = vmax.f32 %v2479_v41, 0.0  ;;  %v4618_v41 = vld [vmem:[%s6749_s18] sm:$0xff]  }
 0x3f0   : > { %v2481_v44 = vpop.f32.mrf.mxu0  ;;  %4343 = vmatpush3.bf16.msra.mxu1 %v4610_v40  ;;  %v4617_v40 = vld [vmem:[%s6748_s13 + $0x8] sm:$0xff]  }
 0x3f1   : > { %v2485_v46 = vpack.c.bf16 %v2484_v43, %v2484_v43  ;;  %4356 = vmatprep.subr.bf16.mxu1 %v5434_v5 }
 0x3f2   : > { %v4339_v47 = vpop.f32.mrf.mxu0  ;;  %s6766_s12 = smov (!%p4219_p10), %s6765_s2 }
 0x3f3   : > { %4345 = vmatmul.mubr.msk.bf16.vlgmr.msra.gmra.mxu1 %vm2171_vm2, %v2485_v46 }
 0x3f4   : > { %v2611_v49 = vpop.f32.mrf.mxu0  ;;  %4357 = vmatpush3.bf16.msra.mxu1 %v4611_v45  ;;  %4360 = vmatprep.mubr.msk.bf16.mxu1 %vm5435_vm1, %v5434_v5 }
 0x3f5   : > { %v2612_v51 = vadd.f32 %v4185_v48, %v2611_v49  ;;  %4358 = vmatprep.subr.bf16.mxu1 %v5434_v5 }
 0x3f6   : > { %v4354_v52 = vpop.f32.mrf.mxu0 }
 0x3f7   : > { %v2617_v53 = vmax.f32 %v2612_v51, 0.0 }
 0x3f8   : > { %v2614_v54 = vpop.f32.mrf.mxu0  ;;  %4359 = vmatpush3.bf16.msra.mxu1 %v4612_v50 }
 0x3f9   : > { %v2618_v55 = vpack.c.bf16 %v2617_v53, %v2617_v53  ;;  %4370 = vmatprep.subr.bf16.mxu1 %v5434_v5 }
 0x3fa   : > { %v4355_v56 = vpop.f32.mrf.mxu0 }
 0x3fb   : > { %4361 = vmatmul.mubr.msk.bf16.vlgmr.msra.gmra.mxu1 %vm2171_vm2, %v2618_v55 }
 0x3fc   : > { %4372 = vmatprep.mubr.msk.bf16.mxu1 %vm5435_vm1, %v5434_v5 }
 0x4a3   : > { %v2277_v58 = vpop.f32.mrf.mxu1 }
 0x4a4   : > { %v2278_v59 = vadd.f32 %v4165_v57, %v2277_v58 }
 0x4a5   : > { %v4314_v60 = vpop.f32.mrf.mxu1 }
 0x4a6   : > { %v2283_v61 = vmax.f32 %v2278_v59, 0.0 }
 0x4a7   : > { %v2280_v62 = vpop.f32.mrf.mxu1 }
 0x4a8   : > { %v2284_v63 = vpack.c.bf16 %v2283_v61, %v2283_v61 }
 0x4a9   : > { %v4315_v0 = vpop.f32.mrf.mxu1 }
 0x4aa   : > { %v2741_v2 = vsel %vm2693_vm3, %v2284_v63, 0  ;;  %v4619_v0 = vld [vmem:[%s6750_s5 + $0x8] sm:$0xff]  }
 0x4ab   : > { %v2410_v3 = vpop.f32.mrf.mxu1  ;;  %4371 = vmatpush3.bf16.msra.mxu1 %v2741_v2  ;;  %v4620_v2 = vld [vmem:[%s6751_s29] sm:$0xff]  }
 0x4ac   : > { %v2411_v6 = vadd.f32 %v4173_v1, %v2410_v3  ;;  %4382 = vmatprep.subr.bf16.mxu1 %v5434_v5 }
 0x4ad   : > { %v4330_v7 = vpop.f32.mrf.mxu1 }
 0x4ae   : > { %v2416_v9 = vmax.f32 %v2411_v6, 0.0  ;;  %4373 = vmatmul.mubr.msk.bf16.vlgmr.msra.gmra.mxu1 %vm2689_vm4, %v2687_v4  ;;  %v4203_v4 = vld [vmem:[%s6752_s7] ss:$0 sm:$0xff] }
 0x4af   : > { %v2413_v10 = vpop.f32.mrf.mxu1  ;;  %4384 = vmatprep.mubr.msk.bf16.mxu1 %vm5435_vm1, %v5434_v5 }
 0x4b0   : > { %v2417_v11 = vpack.c.bf16 %v2416_v9, %v2416_v9 }
 0x4b1   : > { %v4331_v12 = vpop.f32.mrf.mxu1 }
 0x4b2   : > { %v2695_v15 = vsel %vm2693_vm3, %v2417_v11, 0 }
 0x4b3   : > { %4365 = vmatpush3.bf16.msra.mxu0 %v2695_v15  ;;  %v2546_v17 = vpop.f32.mrf.mxu1 }
 0x4b4   : > { %v2547_v18 = vadd.f32 %v4181_v13, %v2546_v17  ;;  %4376 = vmatprep.subr.bf16.mxu0 %v5434_v5  ;;  %v4621_v13 = vld [vmem:[%s6753_s6 + $0x8] sm:$0xff]  }
 0x4b5   : > { %v4346_v19 = vpop.f32.mrf.mxu1 }
 0x4b6   : > { %4367 = vmatmul.mubr.msk.bf16.vlgmr.msra.gmra.mxu0 %vm2689_vm4, %v2688_v16  ;;  %v2552_v20 = vmax.f32 %v2547_v18, 0.0  ;;  %v4622_v16 = vld [vmem:[%s6754_s19] sm:$0xff]  }
 0x4b7   : > { %v2549_v21 = vpop.f32.mrf.mxu1  ;;  %4378 = vmatprep.mubr.msk.bf16.mxu0 %vm5435_vm1, %v5434_v5 }
 0x4b8   : > { %v2553_v22 = vpack.c.bf16 %v2552_v20, %v2552_v20  ;;  %v4623_v21 = vld [vmem:[%s6755_s0 + $0x8] sm:$0xff]  }
 0x4b9   : > { %v4347_v23 = vpop.f32.mrf.mxu1 }
 0x4ba   : > { %v2836_v25 = vsel %vm2693_vm3, %v2553_v22, 0  ;;  %v4624_v22 = vld [vmem:[%s6756_s4] sm:$0xff]  }
 0x4bb   : > { %v2679_v26 = vpop.f32.mrf.mxu1  ;;  %4383 = vmatpush3.bf16.msra.mxu1 %v2836_v25  ;;  %v4204_v23 = vld [vmem:[%s6757_s10] ss:$0 sm:$0xff] }
 0x4bc   : > { %v2680_v29 = vadd.f32 %v4189_v24, %v2679_v26  ;;  %4396 = vmatprep.subr.bf16.mxu1 %v5434_v5 }
 0x4bd   : > { %v4362_v30 = vpop.f32.mrf.mxu1 }
 0x4be   : > { %v2685_v31 = vmax.f32 %v2680_v29, 0.0  ;;  %4385 = vmatmul.mubr.msk.bf16.vlgmr.msra.gmra.mxu1 %vm2689_vm4, %v2784_v27 }
 0x4bf   : > { %v2682_v32 = vpop.f32.mrf.mxu1  ;;  %4397 = vmatpush3.bf16.msra.mxu1 %v4613_v28  ;;  %4400 = vmatprep.mubr.msk.bf16.mxu1 %vm5435_vm1, %v5434_v5 }
 0x4c0   : > { %v2686_v33 = vpack.c.bf16 %v2685_v31, %v2685_v31  ;;  %4398 = vmatprep.subr.bf16.mxu1 %v5434_v5 }
 0x4c1   : > { %v4363_v34 = vpop.f32.mrf.mxu1 }
 0x4c2   : > { %v2790_v35 = vsel %vm2693_vm3, %v2686_v33, 0 }
 0x4c3   : > { %4377 = vmatpush3.bf16.msra.mxu0 %v2790_v35  ;;  %4399 = vmatpush3.bf16.msra.mxu1 %v4615_v38  ;;  %v4214_v35 = vld [vmem:[%s6758_s1] ss:$0 sm:$0xff] }
 0x4c4   : > { %4388 = vmatprep.subr.bf16.mxu0 %v5434_v5  ;;  %4412 = vmatprep.subr.bf16.mxu1 %v5434_v5 }
 0x4c6   : > { %4379 = vmatmul.mubr.msk.bf16.vlgmr.msra.gmra.mxu0 %vm2689_vm4, %v2785_v36  ;;  %4401 = vmatmul.mubr.msk.bf16.vlgmr.msra.gmra.mxu1 %vm2171_vm2, %v6385_v14 }
 0x4c7   : > { %4389 = vmatpush3.bf16.msra.mxu0 %v4614_v37  ;;  %4392 = vmatprep.mubr.msk.bf16.mxu0 %vm5435_vm1, %v5434_v5 }
 0x4c8   : > { %4390 = vmatprep.subr.bf16.mxu0 %v5434_v5  ;;  %4416 = vmatprep.mubr.msk.bf16.mxu1 %vm5435_vm1, %v5434_v5 }
 0x4c9   : > { %4413 = vmatpush3.bf16.msra.mxu1 %v4617_v40 }
 0x4ca   : > { %4414 = vmatprep.subr.bf16.mxu1 %v5434_v5 }
 0x4cb   : > { %4391 = vmatpush3.bf16.msra.mxu0 %v4616_v39 }
 0x4cc   : > { %4404 = vmatprep.subr.bf16.mxu0 %v5434_v5 }
 0x4cd   : > { %4415 = vmatpush3.bf16.msra.mxu1 %v4618_v41 }
 0x4ce   : > { %4428 = vmatprep.subr.bf16.mxu1 %v5434_v5 }
 0x56e   : > { %v2777_v42 = vpop.f32.mrf.mxu1 }
 0x570   : > { %v4374_v14 = vpop.f32.mrf.mxu1 }
 0x572   : > { %v2780_v43 = vpop.f32.mrf.mxu1 }
 0x574   : > { %v4375_v44 = vpop.f32.mrf.mxu1 }
 0x576   : > { %v2731_v45 = vpop.f32.mrf.mxu0 }
 0x577   : > { %v2778_v46 = vadd.f32 %v2777_v42, %v2731_v45 }
 0x578   : > { %v4368_v47 = vpop.f32.mrf.mxu0 }
 0x579   : > { %v2783_v48 = vpack.c.bf16 %v2778_v46, %v2778_v46 }
 0x57a   : > { %v2734_v49 = vpop.f32.mrf.mxu0 }
 0x57b   : > { %4393 = vmatmul.mubr.msk.bf16.vlgmr.msra.gmra.mxu0 %vm2171_vm2, %v2783_v48 }
 0x57c   : > { %v4369_v50 = vpop.f32.mrf.mxu0  ;;  %4408 = vmatprep.mubr.msk.bf16.mxu0 %vm5435_vm1, %v5434_v5  ;;  %4405 = vmatpush3.bf16.msra.mxu0 %v4619_v0 }
 0x57d   : > { %4406 = vmatprep.subr.bf16.mxu0 %v5434_v5 }
 0x57e   : > { %v2872_v51 = vpop.f32.mrf.mxu1 }
 0x580   : > { %v4386_v52 = vpop.f32.mrf.mxu1  ;;  %4407 = vmatpush3.bf16.msra.mxu0 %v4620_v2 }
 0x581   : > { %4420 = vmatprep.subr.bf16.mxu0 %v5434_v5 }
 0x582   : > { %v2875_v53 = vpop.f32.mrf.mxu1 }
 0x584   : > { %v4387_v54 = vpop.f32.mrf.mxu1 }
 0x586   : > { %v2826_v55 = vpop.f32.mrf.mxu0  ;;  %v2988_v61 = vpop.f32.mrf.mxu1 }
 0x587   : > { %v2873_v56 = vadd.f32 %v2872_v51, %v2826_v55 }
 0x588   : > { %v4380_v57 = vpop.f32.mrf.mxu0  ;;  %v4402_v62 = vpop.f32.mrf.mxu1 }
 0x589   : > { %v2878_v58 = vpack.c.bf16 %v2873_v56, %v2873_v56  ;;  %v3289_v56 = vlaneseq  ;;  %v3264_v62 = vld [vmem:[%s2131_s9] sm:$0x1]  ;;  %s6762_s9 = scalar_lea.vmem [#allocation36], %s6239_s22 }
 0x58a   : > { %v2829_v59 = vpop.f32.mrf.mxu0  ;;  %v2991_v63 = vpop.f32.mrf.mxu1 }
 0x58b   : > { %4417 = vmatmul.mubr.msk.bf16.vlgmr.msra.gmra.mxu1 %vm2171_vm2, %v2878_v58  ;;  %v3290_v57 = vshrl.u32 %v3289_v56, 7  ;;  %v3263_v58 = vld [vmem:[%s2128_s8] sm:$0x1]  ;;  %s6763_s8 = scalar_lea.vmem [#allocation38], %s6239_s22  ;;  %s6768_s22 = sld [smem:[#allocation90_spill]] (!%p4219_p10) }
 0x58c   : > { %v4381_v60 = vpop.f32.mrf.mxu0  ;;  %4432 = vmatprep.mubr.msk.bf16.mxu1 %vm5435_vm1, %v5434_v5  ;;  %v4403_v1 = vpop.f32.mrf.mxu1  ;;  %4429 = vmatpush3.bf16.msra.mxu1 %v4623_v21 }
 0x58d   : > { %4430 = vmatprep.subr.bf16.mxu1 %v5434_v5  ;;  %v3291_v59 = vsub.s32 0, %v3290_v57 }
 0x590   : > { %4431 = vmatpush3.bf16.msra.mxu1 %v4624_v22 }
 0x63b   : > { %v2936_v3 = vpop.f32.mrf.mxu0 }
 0x63c   : > { %v2989_v6 = vadd.f32 %v2988_v61, %v2936_v3 }
 0x63d   : > { %v4394_v7 = vpop.f32.mrf.mxu0 }
 0x63e   : > { %v3001_v9 = vadd.f32 %v4203_v4, %v2989_v6  ;;  %v4215_v6 = vld [vmem:[%s6761_s23] ss:$0 sm:$0xff] }
 0x63f   : > { %v2939_v10 = vpop.f32.mrf.mxu0 }
 0x640   : > { %v3002_v11 = vmax.f32 %v3001_v9, 0.0 }
 0x641   : > { %v4395_v12 = vpop.f32.mrf.mxu0 }
 0x642   : > { %v3003_v15 = vpack.c.bf16 %v3002_v11, %v3002_v11 }
 0x644   : > { %4409 = vmatmul.mubr.msk.bf16.vlgmr.msra.gmra.mxu0 %vm2171_vm2, %v3003_v15 }
 0x645   : > { %4421 = vmatpush3.bf16.msra.mxu0 %v4621_v13  ;;  %4424 = vmatprep.mubr.msk.bf16.mxu0 %vm5435_vm1, %v5434_v5 }
 0x646   : > { %4422 = vmatprep.subr.bf16.mxu0 %v5434_v5 }
 0x649   : > { %4423 = vmatpush3.bf16.msra.mxu0 %v4622_v16 }
 0x64b   : > { %v3128_v17 = vpop.f32.mrf.mxu1 }
 0x64c   : > { %4425 = vmatmul.mubr.msk.bf16.vlgmr.msra.gmra.mxu0 %vm2171_vm2, %v6363_v8 }
 0x64d   : > { %v4418_v18 = vpop.f32.mrf.mxu1 }
 0x64f   : > { %v3131_v19 = vpop.f32.mrf.mxu1 }
 0x651   : > { %v4419_v20 = vpop.f32.mrf.mxu1 }
 0x704   : > { %v3064_v24 = vpop.f32.mrf.mxu0 }
 0x705   : > { %v3065_v25 = vadd.f32 %v4204_v23, %v3064_v24 }
 0x706   : > { %v4410_v26 = vpop.f32.mrf.mxu0 }
 0x707   : > { %v3070_v27 = vmax.f32 %v3065_v25, 0.0 }
 0x708   : > { %v3067_v28 = vpop.f32.mrf.mxu0 }
 0x709   : > { %v3265_v8 = vsel %vm2171_vm2, %v3070_v27, 0.0  ;;  %v3273_v29 = vmul.f32 %v3070_v27, %v3070_v27 }
 0x70a   : > { %v3266_v30 = vrot.slane %v3265_v8, 4  ;;  %v4411_v31 = vpop.f32.mrf.mxu0 }
 0x70b   : > { %v3274_v32 = vsel %vm2171_vm2, %v3273_v29, 0.0 }
 0x70c   : > { %v3267_v33 = vadd.f32 %v3266_v30, %v3265_v8  ;;  %v3275_v5 = vrot.slane %v3274_v32, 4  ;;  %v3180_v34 = vpop.f32.mrf.mxu0 }
 0x70d   : > { %v3181_v36 = vadd.f32 %v3180_v34, %v3128_v17 }
 0x70e   : > { %v3268_v37 = vrot.slane %v3267_v33, 2  ;;  %v3276_v38 = vadd.f32 %v3275_v5, %v3274_v32  ;;  %v4426_v39 = vpop.f32.mrf.mxu0  ;;  %v3301_v5 = vld [vmem:[%s6762_s9] sm:$0x1] }
 0x70f   : > { %v3193_v40 = vadd.f32 %v4214_v35, %v3181_v36  ;;  %v3302_v36 = vld [vmem:[%s6763_s8] sm:$0x1] }
 0x710   : > { %v3269_v41 = vadd.f32 %v3268_v37, %v3267_v33  ;;  %v3277_v42 = vrot.slane %v3276_v38, 2  ;;  %v3183_v14 = vpop.f32.mrf.mxu0 }
 0x711   : > { %v3194_v43 = vmax.f32 %v3193_v40, 0.0 }
 0x712   : > { %v3270_v44 = vrot.slane %v3269_v41, 1  ;;  %v3278_v45 = vadd.f32 %v3277_v42, %v3276_v38  ;;  %v4427_v46 = vpop.f32.mrf.mxu0 }
 0x713   : > { %v3195_v47 = vpack.c.bf16 %v3194_v43, %v3194_v43 }
 0x714   : > { %v3271_v48 = vadd.f32 %v3270_v44, %v3269_v41  ;;  %v3279_v49 = vrot.slane %v3278_v45, 1 }
 0x715   : > { %4433 = vmatmul.mubr.msk.bf16.vlgmr.msra.gmra.mxu1 %vm2171_vm2, %v3195_v47 }
 0x716   : > { %v3272_v50 = vmul.f32 0.125, %v3271_v48  ;;  %v3280_v51 = vadd.f32 %v3279_v49, %v3278_v45 }
 0x718   : > { %v3281_v52 = vmul.f32 0.125, %v3280_v51  ;;  %v3282_v53 = vmul.f32 %v3272_v50, %v3272_v50 }
 0x71a   : > { %v3283_v54 = vsub.f32 %v3281_v52, %v3282_v53 }
 0x71c   : > { %v3284_v55 = vadd.f32 1e-05, %v3283_v54 }
 0x71e   : > { %4625 = vrsqrt.f32 %v3284_v55 }
 0x72b   : > { %v4626_v60 = vpop.eup %4625 }
 0x72c   : > { %v3286_v61 = vmul.f32 %v4626_v60, %v3263_v58 }
 0x72e   : > { %v3287_v63 = vmul.f32 %v3286_v61, %v3272_v50  ;;  %v3292_v0 = vrot.slane %v3286_v61, %v3291_v59 }
 0x730   : > { %v3288_v1 = vsub.f32 %v3264_v62, %v3287_v63  ;;  %v3293_v2 = vmul.f32 %v3292_v0, %v3070_v27 }
 0x732   : > { %v3298_v3 = vrot.slane %v3288_v1, %v3291_v59 }
 0x734   : > { %v3300_v4 = vadd.f32 %v3298_v3, %v3293_v2 }
 0x736   : > { %3339 = vst.msk [vmem:[#allocation2] sm:$0xff] %vm2171_vm2, %v3300_v4 }
 0x7d5   : > { %v3256_v7 = vpop.f32.mrf.mxu1 }
 0x7d6   : > { %v3257_v9 = vadd.f32 %v4215_v6, %v3256_v7 }
 0x7d7   : > { %v4434_v10 = vpop.f32.mrf.mxu1 }
 0x7d8   : > { %v3262_v11 = vmax.f32 %v3257_v9, 0.0 }
 0x7d9   : > { %v3259_v12 = vpop.f32.mrf.mxu1 }
 0x7da   : > { %v3303_v13 = vsel %vm2171_vm2, %v3262_v11, 0.0  ;;  %v3311_v15 = vmul.f32 %v3262_v11, %v3262_v11 }
 0x7db   : > { %v3304_v16 = vrot.slane %v3303_v13, 4  ;;  %v4435_v17 = vpop.f32.mrf.mxu1 }
 0x7dc   : > { %v3312_v18 = vsel %vm2171_vm2, %v3311_v15, 0.0 }
 0x7dd   : > { %v3305_v19 = vadd.f32 %v3304_v16, %v3303_v13  ;;  %v3313_v20 = vrot.slane %v3312_v18, 4 }
 0x7df   : > { %v3306_v21 = vrot.slane %v3305_v19, 2  ;;  %v3314_v22 = vadd.f32 %v3313_v20, %v3312_v18 }
 0x7e1   : > { %v3307_v23 = vadd.f32 %v3306_v21, %v3305_v19  ;;  %v3315_v24 = vrot.slane %v3314_v22, 2 }
 0x7e3   : > { %v3308_v25 = vrot.slane %v3307_v23, 1  ;;  %v3316_v26 = vadd.f32 %v3315_v24, %v3314_v22 }
 0x7e5   : > { %v3309_v27 = vadd.f32 %v3308_v25, %v3307_v23  ;;  %v3317_v28 = vrot.slane %v3316_v26, 1 }
 0x7e7   : > { %v3310_v8 = vmul.f32 0.125, %v3309_v27  ;;  %v3318_v29 = vadd.f32 %v3317_v28, %v3316_v26 }
 0x7e9   : > { %v3319_v30 = vmul.f32 0.125, %v3318_v29  ;;  %v3320_v31 = vmul.f32 %v3310_v8, %v3310_v8 }
 0x7eb   : > { %v3321_v32 = vsub.f32 %v3319_v30, %v3320_v31 }
 0x7ed   : > { %v3322_v33 = vadd.f32 1e-05, %v3321_v32 }
 0x7ef   : > { %4627 = vrsqrt.f32 %v3322_v33 }
 0x7fc   : > { %v4628_v34 = vpop.eup %4627 }
 0x7fd   : > { %v3324_v35 = vmul.f32 %v4628_v34, %v3301_v5 }
 0x7ff   : > { %v3325_v37 = vmul.f32 %v3324_v35, %v3310_v8  ;;  %v3330_v38 = vrot.slane %v3324_v35, %v3291_v59 }
 0x801   : > { %v3326_v39 = vsub.f32 %v3302_v36, %v3325_v37  ;;  %v3331_v40 = vmul.f32 %v3330_v38, %v3262_v11 }
 0x803   : > { %v3336_v41 = vrot.slane %v3326_v39, %v3291_v59  ;;  %3344 = sbr.rel (%p4219_p10) target bundleno = 2463 (0x99f), region = 288 }
 0x805   : > { %v3338_v42 = vadd.f32 %v3336_v41, %v3331_v40 }
 0x807   : > { %3340 = vst.msk [vmem:[#allocation3] sm:$0xff] %vm2171_vm2, %v3338_v42 }
 0x808   : > { %v4629_v14 = vld [vmem:[%s6765_s2 + $0x8] sm:$0xff]   ;;  %v5436_v43 = vmov 0.0   ;;  %v4630_v44 = vld [vmem:[%s6766_s12] sm:$0xff]   ;;  %vm5437_vm5 = vmmov 0   ;;  %v3345_v45 = vpack.c.bf16 %v3300_v4, %v3300_v4 }
 0x809   : > { %4436 = vmatprep.subr.bf16.mxu0 %v5436_v43  ;;  %4444 = vmatprep.subr.bf16.mxu1 %v5436_v43  ;;  %v4631_v46 = vld [vmem:[%s6767_s11 + $0x8] sm:$0xff]   ;;  %v4632_v47 = vld [vmem:[%s6767_s11] sm:$0xff]  }
 0x80a   : > { %4437 = vmatpush3.bf16.msra.mxu0 %v4629_v14  ;;  %4440 = vmatprep.mubr.msk.bf16.mxu0 %vm5437_vm5, %v5436_v43  ;;  %v4220_v48 = vld [vmem:[#allocation39] ss:$0 sm:$0xff]  ;;  %v4224_v56 = vld [vmem:[#allocation41] ss:$0 sm:$0xff] }
 0x80b   : > { %4438 = vmatprep.subr.bf16.mxu0 %v5436_v43  ;;  %4448 = vmatprep.mubr.msk.bf16.mxu1 %vm5437_vm5, %v5436_v43 }
 0x80c   : > { %4445 = vmatpush3.bf16.msra.mxu1 %v4631_v46 }
 0x80d   : > { %4446 = vmatprep.subr.bf16.mxu1 %v5436_v43 }
 0x80e   : > { %4439 = vmatpush3.bf16.msra.mxu0 %v4630_v44 }
 0x810   : > { %4447 = vmatpush3.bf16.msra.mxu1 %v4632_v47 }
 0x811   : > { %4441 = vmatmul.mubr.msk.bf16.vlgmr.msra.gmra.mxu0 %vm2171_vm2, %v3345_v45 }
 0x8d1   : > { %v3406_v49 = vpop.f32.mrf.mxu0 }
 0x8d2   : > { %v3407_v50 = vadd.f32 %v4220_v48, %v3406_v49 }
 0x8d3   : > { %v4442_v51 = vpop.f32.mrf.mxu0 }
 0x8d4   : > { %v3412_v52 = vmax.f32 %v3407_v50, 0.0 }
 0x8d5   : > { %v3409_v53 = vpop.f32.mrf.mxu0 }
 0x8d6   : > { %v3413_v54 = vpack.c.bf16 %v3412_v52, %v3412_v52 }
 0x8d7   : > { %v4443_v55 = vpop.f32.mrf.mxu0 }
 0x8d8   : > { %4449 = vmatmul.mubr.msk.bf16.vlgmr.msra.gmra.mxu1 %vm2171_vm2, %v3413_v54 }
 0x998   : > { %v3474_v57 = vpop.f32.mrf.mxu1 }
 0x999   : > { %v3475_v58 = vadd.f32 %v4224_v56, %v3474_v57 }
 0x99a   : > { %v4450_v59 = vpop.f32.mrf.mxu1 }
 0x99b   : > { %3480 = vst [vmem:[%s6768_s22] sm:$0xff] %v3475_v58 }
 0x99c   : > { %v3477_v60 = vpop.f32.mrf.mxu1 }
 0x99e   : > { %v4451_v61 = vpop.f32.mrf.mxu1 }
 0x99f PF: > { %s6769_s2 = sld [smem:[#allocation94_spill]] }
 0x9a0   : > { %s6770_s0 = sld [smem:[#allocation91_spill]] }
 0x9a1   : > { %s6771_s28 = sld [smem:[#allocation92_spill]] }
 0x9a2   : > { %s6772_s1 = sld [smem:[#allocation95_spill]] }
 0x9a5   : > { %p125_p12 = scmp.ge.s32.totalorder %s6769_s2, 7  }
 0x9a7   :  { %127 = sbr.rel (!%p125_p12) target bundleno = 107 (0x6b), region = 557 }
 0x9ac   :  { %3492 = vsyncpa [#allocation5], 1 }
 0x9ad   :  { %3494 = vsyncpa [#allocation5 + $0x1], 1 }
 0x9ae   :  { %3495 = vsyncpa [#allocation7], 1 }
 0x9af   :  { %3497 = vsyncpa [#allocation7 + $0x1], 1 }
 0x9b0   :  { %3498 = vsyncpa [#allocation10], 1 }
 0x9b1   :  { %3500 = vsyncpa [#allocation10 + $0x1], 1 }
 0x9b2   :  { %3501 = vsyncpa [#allocation13], 1 }
 0x9b3   :  { %3503 = vsyncpa [#allocation13 + $0x1], 1 }
 0x9b4   :  { %3504 = vsyncpa [#allocation16], 1 }
 0x9b5   :  { %3506 = vsyncpa [#allocation16 + $0x1], 1 }
 0x9b6   :  { %3507 = vsyncpa [#allocation19], 1 }
 0x9b7   :  { %3509 = vsyncpa [#allocation19 + $0x1], 1 }
 0x9b8   :  { %3510 = vsyncpa [#allocation22], 1 }
 0x9b9   :  { %3512 = vsyncpa [#allocation22 + $0x1], 1 }
 0x9ba   :  { %3513 = vsyncpa [#allocation25], 1 }
 0x9bb   :  { %3515 = vsyncpa [#allocation25 + $0x1], 1 }
 0x9bc   :  { %3516 = vsyncpa [#allocation28], 1 }
 0x9bd   :  { %3518 = vsyncpa [#allocation28 + $0x1], 1 }
 0x9be   :  { %3519 = vsyncpa [#allocation31], 1 }
 0x9bf   :  { %3521 = vsyncpa [#allocation31 + $0x1], 1 }
 0x9c0   :  { %3522 = vsyncpa [#allocation34], 1 }
 0x9c1   :  { %3524 = vsyncpa [#allocation34 + $0x1], 1 }
 0x9c2   :  { %3525 = vsyncpa [#allocation37], 1 }
 0x9c3   :  { %3527 = vsyncpa [#allocation37 + $0x1], 1 }
 0x9c4   :  { %3528 = vsyncpa [#allocation40], 1 }

</bundles_post_ra>
